<compile_context>
chip_gen: v7x
topology: tpu7x:2x2x1
jax: 0.10.0
libtpu: 0.0.40
codegen_flags: <defaults>
</compile_context>

<pallas_src>
import jax
import jax.numpy as jnp
from jax.experimental import pallas as pl
from jax.experimental.pallas import tpu as pltpu


def _counts_from_paths(path_ref, counts_ref):
    """counts_ref[b, v] = number of t with path_ref[t, b] == v.

    path_ref   : SMEM (seq, batch) int32 token ids
    counts_ref : VMEM (batch, vocab_pad) f32
    """
    seq, batch = path_ref.shape
    vocab_pad = counts_ref.shape[1]
    lane = jax.lax.broadcasted_iota(jnp.int32, (1, vocab_pad), 1)

    for b in range(batch):                      # static unroll; batch is tiny
        def body(t, acc):
            tok = path_ref[t, b]                # SMEM scalar read (dynamic t)
            return acc + (lane == tok).astype(jnp.float32)

        counts_ref[pl.ds(b, 1), :] = jax.lax.fori_loop(
            0, seq, body, jnp.zeros((1, vocab_pad), jnp.float32), unroll=True)


def _innerproduct_kernel(w_ref, b_ref, wn_path_ref, wd_path_ref,
                         wn_tab_ref, wd_tab_ref, out_ref,
                         wn_counts_ref, wd_counts_ref):
    # Per-batch token counts from the SMEM paths (VPU, tiny).
    _counts_from_paths(wn_path_ref, wn_counts_ref)
    _counts_from_paths(wd_path_ref, wd_counts_ref)

    # Embedding-lookup + seq-sum as one MXU matmul per table.
    # (Row 1 of each table is zero => padding_idx=1 tokens contribute nothing.)
    wn_sum = jnp.dot(wn_counts_ref[...], wn_tab_ref[...],
                     preferred_element_type=jnp.float32,
                     precision=jax.lax.Precision.HIGHEST)      # (batch, emb_pad)
    wd_sum = jnp.dot(wd_counts_ref[...], wd_tab_ref[...],
                     preferred_element_type=jnp.float32,
                     precision=jax.lax.Precision.HIGHEST)

    # cosine_similarity along emb, torch semantics:
    #   dot / (max(||x||, eps) * max(||y||, eps))
    # == dot * rsqrt(max(nx2, eps^2)) * rsqrt(max(ny2, eps^2))
    dot = jnp.sum(wn_sum * wd_sum, axis=-1, keepdims=True)     # (batch, 1)
    nx2 = jnp.sum(wn_sum * wn_sum, axis=-1, keepdims=True)
    ny2 = jnp.sum(wd_sum * wd_sum, axis=-1, keepdims=True)
    eps2 = 1e-16                                               # (1e-8)^2
    cos = (dot
           * jax.lax.rsqrt(jnp.maximum(nx2, eps2))
           * jax.lax.rsqrt(jnp.maximum(ny2, eps2)))

    # cosLinear (Linear(1,1)) + sigmoid.
    z = cos * w_ref[0] + b_ref[0]
    out_ref[...] = jax.nn.sigmoid(z)


def innerproduct_baseline(wn_path, wd_path, wn_table, wd_table, w, b):
    """wn_path/wd_path: (seq, batch) int32 token ids (seq-first, torchtext style);
    wn_table/wd_table: (vocab, emb) f32 embedding tables (row 1 == padding == 0);
    w, b: params of the 1x1 cosLinear layer.  Returns (batch, 1) f32."""
    batch = wn_path.shape[1]
    emb = wn_table.shape[1]
    assert wd_table.shape[1] == emb and wd_path.shape[1] == batch

    # Lane-align emb and vocab once; zero padding is inert for the math.
    emb_pad = max(128, ((emb + 127) // 128) * 128)

    def pad_table(tab):
        vocab = tab.shape[0]
        vocab_pad = max(128, ((vocab + 127) // 128) * 128)
        return jnp.pad(tab.astype(jnp.float32),
                       ((0, vocab_pad - vocab), (0, emb_pad - emb)))

    wn_tab = pad_table(wn_table)      # (vocab_pad_wn, emb_pad) -- VMEM resident
    wd_tab = pad_table(wd_table)      # (vocab_pad_wd, emb_pad)

    smem = pl.BlockSpec(memory_space=pltpu.MemorySpace.SMEM)
    vmem = pl.BlockSpec(memory_space=pltpu.MemorySpace.VMEM)

    # TODO(synk): for genuinely large vocab (tables exceeding the per-generation
    # VMEM budget, esp. v7x's 64 MiB) fall back to a tiled counts@table_tile
    # streaming pass over a vocab grid axis instead of full VMEM residency.
    return pl.pallas_call(
        _innerproduct_kernel,
        out_shape=jax.ShapeDtypeStruct((batch, 1), jnp.float32),
        in_specs=[smem, smem, smem, smem, vmem, vmem],
        out_specs=vmem,
        scratch_shapes=[
            pltpu.VMEM((batch, wn_tab.shape[0]), jnp.float32),  # wn counts
            pltpu.VMEM((batch, wd_tab.shape[0]), jnp.float32),  # wd counts
        ],
        compiler_params=pltpu.CompilerParams(
            vmem_limit_bytes=32 * 1024 * 1024),
    )(jnp.asarray(w, jnp.float32).reshape(-1),
      jnp.asarray(b, jnp.float32).reshape(-1),
      wn_path.astype(jnp.int32), wd_path.astype(jnp.int32),
      wn_tab, wd_tab)


if __name__ == "__main__":
    key = jax.random.PRNGKey(0)
    emb_dim = 300                     # module default; padded to 384 in wrapper
    wn_vocab, wd_vocab = 64, 80
    batch, wn_seq, wd_seq = 8, 10, 12

    k1, k2, k3, k4, k5, k6 = jax.random.split(key, 6)

    # Embedding tables (torch default init ~ N(0,1)); padding_idx=1 row zeroed.
    wn_table = jax.random.normal(k1, (wn_vocab, emb_dim), jnp.float32).at[1].set(0.0)
    wd_table = jax.random.normal(k2, (wd_vocab, emb_dim), jnp.float32).at[1].set(0.0)

    # cosLinear: Linear(1,1); xavier_uniform weight (bound = sqrt(6/(1+1))),
    # default bias init uniform(-1/sqrt(fan_in), 1/sqrt(fan_in)) = uniform(-1, 1).
    xav = float(jnp.sqrt(3.0))
    w = jax.random.uniform(k3, (1,), jnp.float32, -xav, xav)
    b = jax.random.uniform(k4, (1,), jnp.float32, -1.0, 1.0)

    # Integer token paths, seq-first layout (seq, batch); ids may include pad (1).
    wn_path = jax.random.randint(k5, (wn_seq, batch), 0, wn_vocab, jnp.int32)
    wd_path = jax.random.randint(k6, (wd_seq, batch), 0, wd_vocab, jnp.int32)

    out = jax.block_until_ready(
        innerproduct_baseline(wn_path, wd_path, wn_table, wd_table, w, b))

    # Pure-JAX reference (mirrors the PyTorch forward, incl. per-norm eps clamp).
    wn_sum = jnp.sum(wn_table[wn_path], axis=0)
    wd_sum = jnp.sum(wd_table[wd_path], axis=0)
    eps = 1e-8
    cos = jnp.sum(wn_sum * wd_sum, axis=-1) / (
        jnp.maximum(jnp.linalg.norm(wn_sum, axis=-1), eps)
        * jnp.maximum(jnp.linalg.norm(wd_sum, axis=-1), eps))
    ref = jax.nn.sigmoid(cos[:, None] * w[0] + b[0])

    assert out.shape == (batch, 1)
    assert jnp.allclose(out, ref, atol=1e-4, rtol=1e-4), (out, ref)
    print("KERNEL_OK")
</pallas_src>

<mosaic_0001>
module attributes {stable_mosaic.version = 11 : i64} {
  func.func @_innerproduct_kernel(%arg0: memref<1xf32, #tpu.memory_space<smem>>, %arg1: memref<1xf32, #tpu.memory_space<smem>>, %arg2: memref<10x8xi32, #tpu.memory_space<smem>>, %arg3: memref<12x8xi32, #tpu.memory_space<smem>>, %arg4: memref<128x384xf32, #tpu.memory_space<vmem>>, %arg5: memref<128x384xf32, #tpu.memory_space<vmem>>, %arg6: memref<8x1xf32, #tpu.memory_space<vmem>>, %arg7: memref<8x128xf32, #tpu.memory_space<vmem>>, %arg8: memref<8x128xf32, #tpu.memory_space<vmem>>) attributes {dimension_semantics = [], scalar_prefetch = 0 : i64, scratch_operands = 2 : i64, tpu.core_type = #tpu.core_type<tc>} {
    %0 = tpu.iota {dimensions = array<i32: 1>} : vector<1x128xi32>
    %cst = arith.constant 0.000000e+00 : f32
    %1 = vector.broadcast %cst : f32 to vector<1x128xf32>
    %c0_i32 = arith.constant 0 : i32
    %2 = arith.index_cast %c0_i32 : i32 to index
    %c0 = arith.constant 0 : index
    %3 = memref.load %arg2[%2, %c0] : memref<10x8xi32, #tpu.memory_space<smem>>
    %4 = vector.broadcast %3 : i32 to vector<1x128xi32>
    %5 = arith.cmpi eq, %0, %4 : vector<1x128xi32>
    %6 = arith.extui %5 : vector<1x128xi1> to vector<1x128xi32>
    %7 = arith.sitofp %6 : vector<1x128xi32> to vector<1x128xf32>
    %8 = arith.addf %1, %7 : vector<1x128xf32>
    %c1_i32 = arith.constant 1 : i32
    %9 = arith.index_cast %c1_i32 : i32 to index
    %c0_0 = arith.constant 0 : index
    %10 = memref.load %arg2[%9, %c0_0] : memref<10x8xi32, #tpu.memory_space<smem>>
    %11 = vector.broadcast %10 : i32 to vector<1x128xi32>
    %12 = arith.cmpi eq, %0, %11 : vector<1x128xi32>
    %13 = arith.extui %12 : vector<1x128xi1> to vector<1x128xi32>
    %14 = arith.sitofp %13 : vector<1x128xi32> to vector<1x128xf32>
    %15 = arith.addf %8, %14 : vector<1x128xf32>
    %c2_i32 = arith.constant 2 : i32
    %16 = arith.index_cast %c2_i32 : i32 to index
    %c0_1 = arith.constant 0 : index
    %17 = memref.load %arg2[%16, %c0_1] : memref<10x8xi32, #tpu.memory_space<smem>>
    %18 = vector.broadcast %17 : i32 to vector<1x128xi32>
    %19 = arith.cmpi eq, %0, %18 : vector<1x128xi32>
    %20 = arith.extui %19 : vector<1x128xi1> to vector<1x128xi32>
    %21 = arith.sitofp %20 : vector<1x128xi32> to vector<1x128xf32>
    %22 = arith.addf %15, %21 : vector<1x128xf32>
    %c3_i32 = arith.constant 3 : i32
    %23 = arith.index_cast %c3_i32 : i32 to index
    %c0_2 = arith.constant 0 : index
    %24 = memref.load %arg2[%23, %c0_2] : memref<10x8xi32, #tpu.memory_space<smem>>
    %25 = vector.broadcast %24 : i32 to vector<1x128xi32>
    %26 = arith.cmpi eq, %0, %25 : vector<1x128xi32>
    %27 = arith.extui %26 : vector<1x128xi1> to vector<1x128xi32>
    %28 = arith.sitofp %27 : vector<1x128xi32> to vector<1x128xf32>
    %29 = arith.addf %22, %28 : vector<1x128xf32>
    %c4_i32 = arith.constant 4 : i32
    %30 = arith.index_cast %c4_i32 : i32 to index
    %c0_3 = arith.constant 0 : index
    %31 = memref.load %arg2[%30, %c0_3] : memref<10x8xi32, #tpu.memory_space<smem>>
    %32 = vector.broadcast %31 : i32 to vector<1x128xi32>
    %33 = arith.cmpi eq, %0, %32 : vector<1x128xi32>
    %34 = arith.extui %33 : vector<1x128xi1> to vector<1x128xi32>
    %35 = arith.sitofp %34 : vector<1x128xi32> to vector<1x128xf32>
    %36 = arith.addf %29, %35 : vector<1x128xf32>
    %c5_i32 = arith.constant 5 : i32
    %37 = arith.index_cast %c5_i32 : i32 to index
    %c0_4 = arith.constant 0 : index
    %38 = memref.load %arg2[%37, %c0_4] : memref<10x8xi32, #tpu.memory_space<smem>>
    %39 = vector.broadcast %38 : i32 to vector<1x128xi32>
    %40 = arith.cmpi eq, %0, %39 : vector<1x128xi32>
    %41 = arith.extui %40 : vector<1x128xi1> to vector<1x128xi32>
    %42 = arith.sitofp %41 : vector<1x128xi32> to vector<1x128xf32>
    %43 = arith.addf %36, %42 : vector<1x128xf32>
    %c6_i32 = arith.constant 6 : i32
    %44 = arith.index_cast %c6_i32 : i32 to index
    %c0_5 = arith.constant 0 : index
    %45 = memref.load %arg2[%44, %c0_5] : memref<10x8xi32, #tpu.memory_space<smem>>
    %46 = vector.broadcast %45 : i32 to vector<1x128xi32>
    %47 = arith.cmpi eq, %0, %46 : vector<1x128xi32>
    %48 = arith.extui %47 : vector<1x128xi1> to vector<1x128xi32>
    %49 = arith.sitofp %48 : vector<1x128xi32> to vector<1x128xf32>
    %50 = arith.addf %43, %49 : vector<1x128xf32>
    %c7_i32 = arith.constant 7 : i32
    %51 = arith.index_cast %c7_i32 : i32 to index
    %c0_6 = arith.constant 0 : index
    %52 = memref.load %arg2[%51, %c0_6] : memref<10x8xi32, #tpu.memory_space<smem>>
    %53 = vector.broadcast %52 : i32 to vector<1x128xi32>
    %54 = arith.cmpi eq, %0, %53 : vector<1x128xi32>
    %55 = arith.extui %54 : vector<1x128xi1> to vector<1x128xi32>
    %56 = arith.sitofp %55 : vector<1x128xi32> to vector<1x128xf32>
    %57 = arith.addf %50, %56 : vector<1x128xf32>
    %c8_i32 = arith.constant 8 : i32
    %58 = arith.index_cast %c8_i32 : i32 to index
    %c0_7 = arith.constant 0 : index
    %59 = memref.load %arg2[%58, %c0_7] : memref<10x8xi32, #tpu.memory_space<smem>>
    %60 = vector.broadcast %59 : i32 to vector<1x128xi32>
    %61 = arith.cmpi eq, %0, %60 : vector<1x128xi32>
    %62 = arith.extui %61 : vector<1x128xi1> to vector<1x128xi32>
    %63 = arith.sitofp %62 : vector<1x128xi32> to vector<1x128xf32>
    %64 = arith.addf %57, %63 : vector<1x128xf32>
    %c9_i32 = arith.constant 9 : i32
    %65 = arith.index_cast %c9_i32 : i32 to index
    %c0_8 = arith.constant 0 : index
    %66 = memref.load %arg2[%65, %c0_8] : memref<10x8xi32, #tpu.memory_space<smem>>
    %67 = vector.broadcast %66 : i32 to vector<1x128xi32>
    %68 = arith.cmpi eq, %0, %67 : vector<1x128xi32>
    %69 = arith.extui %68 : vector<1x128xi1> to vector<1x128xi32>
    %70 = arith.sitofp %69 : vector<1x128xi32> to vector<1x128xf32>
    %71 = arith.addf %64, %70 : vector<1x128xf32>
    %c10_i32 = arith.constant 10 : i32
    %c0_9 = arith.constant 0 : index
    %c0_10 = arith.constant 0 : index
    %72 = vector.load %arg7[%c0_9, %c0_10] : memref<8x128xf32, #tpu.memory_space<vmem>>, vector<1x128xf32>
    tpu.vector_store %arg7[%c0_9, %c0_10], %71 {strides = array<i32>} : memref<8x128xf32, #tpu.memory_space<vmem>>, vector<1x128xf32>,
    %cst_11 = arith.constant 0.000000e+00 : f32
    %73 = vector.broadcast %cst_11 : f32 to vector<1x128xf32>
    %c0_i32_12 = arith.constant 0 : i32
    %74 = arith.index_cast %c0_i32_12 : i32 to index
    %c1 = arith.constant 1 : index
    %75 = memref.load %arg2[%74, %c1] : memref<10x8xi32, #tpu.memory_space<smem>>
    %76 = vector.broadcast %75 : i32 to vector<1x128xi32>
    %77 = arith.cmpi eq, %0, %76 : vector<1x128xi32>
    %78 = arith.extui %77 : vector<1x128xi1> to vector<1x128xi32>
    %79 = arith.sitofp %78 : vector<1x128xi32> to vector<1x128xf32>
    %80 = arith.addf %73, %79 : vector<1x128xf32>
    %c1_i32_13 = arith.constant 1 : i32
    %81 = arith.index_cast %c1_i32_13 : i32 to index
    %c1_14 = arith.constant 1 : index
    %82 = memref.load %arg2[%81, %c1_14] : memref<10x8xi32, #tpu.memory_space<smem>>
    %83 = vector.broadcast %82 : i32 to vector<1x128xi32>
    %84 = arith.cmpi eq, %0, %83 : vector<1x128xi32>
    %85 = arith.extui %84 : vector<1x128xi1> to vector<1x128xi32>
    %86 = arith.sitofp %85 : vector<1x128xi32> to vector<1x128xf32>
    %87 = arith.addf %80, %86 : vector<1x128xf32>
    %c2_i32_15 = arith.constant 2 : i32
    %88 = arith.index_cast %c2_i32_15 : i32 to index
    %c1_16 = arith.constant 1 : index
    %89 = memref.load %arg2[%88, %c1_16] : memref<10x8xi32, #tpu.memory_space<smem>>
    %90 = vector.broadcast %89 : i32 to vector<1x128xi32>
    %91 = arith.cmpi eq, %0, %90 : vector<1x128xi32>
    %92 = arith.extui %91 : vector<1x128xi1> to vector<1x128xi32>
    %93 = arith.sitofp %92 : vector<1x128xi32> to vector<1x128xf32>
    %94 = arith.addf %87, %93 : vector<1x128xf32>
    %c3_i32_17 = arith.constant 3 : i32
    %95 = arith.index_cast %c3_i32_17 : i32 to index
    %c1_18 = arith.constant 1 : index
    %96 = memref.load %arg2[%95, %c1_18] : memref<10x8xi32, #tpu.memory_space<smem>>
    %97 = vector.broadcast %96 : i32 to vector<1x128xi32>
    %98 = arith.cmpi eq, %0, %97 : vector<1x128xi32>
    %99 = arith.extui %98 : vector<1x128xi1> to vector<1x128xi32>
    %100 = arith.sitofp %99 : vector<1x128xi32> to vector<1x128xf32>
    %101 = arith.addf %94, %100 : vector<1x128xf32>
    %c4_i32_19 = arith.constant 4 : i32
    %102 = arith.index_cast %c4_i32_19 : i32 to index
    %c1_20 = arith.constant 1 : index
    %103 = memref.load %arg2[%102, %c1_20] : memref<10x8xi32, #tpu.memory_space<smem>>
    %104 = vector.broadcast %103 : i32 to vector<1x128xi32>
    %105 = arith.cmpi eq, %0, %104 : vector<1x128xi32>
    %106 = arith.extui %105 : vector<1x128xi1> to vector<1x128xi32>
    %107 = arith.sitofp %106 : vector<1x128xi32> to vector<1x128xf32>
    %108 = arith.addf %101, %107 : vector<1x128xf32>
    %c5_i32_21 = arith.constant 5 : i32
    %109 = arith.index_cast %c5_i32_21 : i32 to index
    %c1_22 = arith.constant 1 : index
    %110 = memref.load %arg2[%109, %c1_22] : memref<10x8xi32, #tpu.memory_space<smem>>
    %111 = vector.broadcast %110 : i32 to vector<1x128xi32>
    %112 = arith.cmpi eq, %0, %111 : vector<1x128xi32>
    %113 = arith.extui %112 : vector<1x128xi1> to vector<1x128xi32>
    %114 = arith.sitofp %113 : vector<1x128xi32> to vector<1x128xf32>
    %115 = arith.addf %108, %114 : vector<1x128xf32>
    %c6_i32_23 = arith.constant 6 : i32
    %116 = arith.index_cast %c6_i32_23 : i32 to index
    %c1_24 = arith.constant 1 : index
    %117 = memref.load %arg2[%116, %c1_24] : memref<10x8xi32, #tpu.memory_space<smem>>
    %118 = vector.broadcast %117 : i32 to vector<1x128xi32>
    %119 = arith.cmpi eq, %0, %118 : vector<1x128xi32>
    %120 = arith.extui %119 : vector<1x128xi1> to vector<1x128xi32>
    %121 = arith.sitofp %120 : vector<1x128xi32> to vector<1x128xf32>
    %122 = arith.addf %115, %121 : vector<1x128xf32>
    %c7_i32_25 = arith.constant 7 : i32
    %123 = arith.index_cast %c7_i32_25 : i32 to index
    %c1_26 = arith.constant 1 : index
    %124 = memref.load %arg2[%123, %c1_26] : memref<10x8xi32, #tpu.memory_space<smem>>
    %125 = vector.broadcast %124 : i32 to vector<1x128xi32>
    %126 = arith.cmpi eq, %0, %125 : vector<1x128xi32>
    %127 = arith.extui %126 : vector<1x128xi1> to vector<1x128xi32>
    %128 = arith.sitofp %127 : vector<1x128xi32> to vector<1x128xf32>
    %129 = arith.addf %122, %128 : vector<1x128xf32>
    %c8_i32_27 = arith.constant 8 : i32
    %130 = arith.index_cast %c8_i32_27 : i32 to index
    %c1_28 = arith.constant 1 : index
    %131 = memref.load %arg2[%130, %c1_28] : memref<10x8xi32, #tpu.memory_space<smem>>
    %132 = vector.broadcast %131 : i32 to vector<1x128xi32>
    %133 = arith.cmpi eq, %0, %132 : vector<1x128xi32>
    %134 = arith.extui %133 : vector<1x128xi1> to vector<1x128xi32>
    %135 = arith.sitofp %134 : vector<1x128xi32> to vector<1x128xf32>
    %136 = arith.addf %129, %135 : vector<1x128xf32>
    %c9_i32_29 = arith.constant 9 : i32
    %137 = arith.index_cast %c9_i32_29 : i32 to index
    %c1_30 = arith.constant 1 : index
    %138 = memref.load %arg2[%137, %c1_30] : memref<10x8xi32, #tpu.memory_space<smem>>
    %139 = vector.broadcast %138 : i32 to vector<1x128xi32>
    %140 = arith.cmpi eq, %0, %139 : vector<1x128xi32>
    %141 = arith.extui %140 : vector<1x128xi1> to vector<1x128xi32>
    %142 = arith.sitofp %141 : vector<1x128xi32> to vector<1x128xf32>
    %143 = arith.addf %136, %142 : vector<1x128xf32>
    %c10_i32_31 = arith.constant 10 : i32
    %c1_32 = arith.constant 1 : index
    %c0_33 = arith.constant 0 : index
    %144 = vector.load %arg7[%c1_32, %c0_33] : memref<8x128xf32, #tpu.memory_space<vmem>>, vector<1x128xf32>
    tpu.vector_store %arg7[%c1_32, %c0_33], %143 {strides = array<i32>} : memref<8x128xf32, #tpu.memory_space<vmem>>, vector<1x128xf32>,
    %cst_34 = arith.constant 0.000000e+00 : f32
    %145 = vector.broadcast %cst_34 : f32 to vector<1x128xf32>
    %c0_i32_35 = arith.constant 0 : i32
    %146 = arith.index_cast %c0_i32_35 : i32 to index
    %c2 = arith.constant 2 : index
    %147 = memref.load %arg2[%146, %c2] : memref<10x8xi32, #tpu.memory_space<smem>>
    %148 = vector.broadcast %147 : i32 to vector<1x128xi32>
    %149 = arith.cmpi eq, %0, %148 : vector<1x128xi32>
    %150 = arith.extui %149 : vector<1x128xi1> to vector<1x128xi32>
    %151 = arith.sitofp %150 : vector<1x128xi32> to vector<1x128xf32>
    %152 = arith.addf %145, %151 : vector<1x128xf32>
    %c1_i32_36 = arith.constant 1 : i32
    %153 = arith.index_cast %c1_i32_36 : i32 to index
    %c2_37 = arith.constant 2 : index
    %154 = memref.load %arg2[%153, %c2_37] : memref<10x8xi32, #tpu.memory_space<smem>>
    %155 = vector.broadcast %154 : i32 to vector<1x128xi32>
    %156 = arith.cmpi eq, %0, %155 : vector<1x128xi32>
    %157 = arith.extui %156 : vector<1x128xi1> to vector<1x128xi32>
    %158 = arith.sitofp %157 : vector<1x128xi32> to vector<1x128xf32>
    %159 = arith.addf %152, %158 : vector<1x128xf32>
    %c2_i32_38 = arith.constant 2 : i32
    %160 = arith.index_cast %c2_i32_38 : i32 to index
    %c2_39 = arith.constant 2 : index
    %161 = memref.load %arg2[%160, %c2_39] : memref<10x8xi32, #tpu.memory_space<smem>>
    %162 = vector.broadcast %161 : i32 to vector<1x128xi32>
    %163 = arith.cmpi eq, %0, %162 : vector<1x128xi32>
    %164 = arith.extui %163 : vector<1x128xi1> to vector<1x128xi32>
    %165 = arith.sitofp %164 : vector<1x128xi32> to vector<1x128xf32>
    %166 = arith.addf %159, %165 : vector<1x128xf32>
    %c3_i32_40 = arith.constant 3 : i32
    %167 = arith.index_cast %c3_i32_40 : i32 to index
    %c2_41 = arith.constant 2 : index
    %168 = memref.load %arg2[%167, %c2_41] : memref<10x8xi32, #tpu.memory_space<smem>>
    %169 = vector.broadcast %168 : i32 to vector<1x128xi32>
    %170 = arith.cmpi eq, %0, %169 : vector<1x128xi32>
    %171 = arith.extui %170 : vector<1x128xi1> to vector<1x128xi32>
    %172 = arith.sitofp %171 : vector<1x128xi32> to vector<1x128xf32>
    %173 = arith.addf %166, %172 : vector<1x128xf32>
    %c4_i32_42 = arith.constant 4 : i32
    %174 = arith.index_cast %c4_i32_42 : i32 to index
    %c2_43 = arith.constant 2 : index
    %175 = memref.load %arg2[%174, %c2_43] : memref<10x8xi32, #tpu.memory_space<smem>>
    %176 = vector.broadcast %175 : i32 to vector<1x128xi32>
    %177 = arith.cmpi eq, %0, %176 : vector<1x128xi32>
    %178 = arith.extui %177 : vector<1x128xi1> to vector<1x128xi32>
    %179 = arith.sitofp %178 : vector<1x128xi32> to vector<1x128xf32>
    %180 = arith.addf %173, %179 : vector<1x128xf32>
    %c5_i32_44 = arith.constant 5 : i32
    %181 = arith.index_cast %c5_i32_44 : i32 to index
    %c2_45 = arith.constant 2 : index
    %182 = memref.load %arg2[%181, %c2_45] : memref<10x8xi32, #tpu.memory_space<smem>>
    %183 = vector.broadcast %182 : i32 to vector<1x128xi32>
    %184 = arith.cmpi eq, %0, %183 : vector<1x128xi32>
    %185 = arith.extui %184 : vector<1x128xi1> to vector<1x128xi32>
    %186 = arith.sitofp %185 : vector<1x128xi32> to vector<1x128xf32>
    %187 = arith.addf %180, %186 : vector<1x128xf32>
    %c6_i32_46 = arith.constant 6 : i32
    %188 = arith.index_cast %c6_i32_46 : i32 to index
    %c2_47 = arith.constant 2 : index
    %189 = memref.load %arg2[%188, %c2_47] : memref<10x8xi32, #tpu.memory_space<smem>>
    %190 = vector.broadcast %189 : i32 to vector<1x128xi32>
    %191 = arith.cmpi eq, %0, %190 : vector<1x128xi32>
    %192 = arith.extui %191 : vector<1x128xi1> to vector<1x128xi32>
    %193 = arith.sitofp %192 : vector<1x128xi32> to vector<1x128xf32>
    %194 = arith.addf %187, %193 : vector<1x128xf32>
    %c7_i32_48 = arith.constant 7 : i32
    %195 = arith.index_cast %c7_i32_48 : i32 to index
    %c2_49 = arith.constant 2 : index
    %196 = memref.load %arg2[%195, %c2_49] : memref<10x8xi32, #tpu.memory_space<smem>>
    %197 = vector.broadcast %196 : i32 to vector<1x128xi32>
    %198 = arith.cmpi eq, %0, %197 : vector<1x128xi32>
    %199 = arith.extui %198 : vector<1x128xi1> to vector<1x128xi32>
    %200 = arith.sitofp %199 : vector<1x128xi32> to vector<1x128xf32>
    %201 = arith.addf %194, %200 : vector<1x128xf32>
    %c8_i32_50 = arith.constant 8 : i32
    %202 = arith.index_cast %c8_i32_50 : i32 to index
    %c2_51 = arith.constant 2 : index
    %203 = memref.load %arg2[%202, %c2_51] : memref<10x8xi32, #tpu.memory_space<smem>>
    %204 = vector.broadcast %203 : i32 to vector<1x128xi32>
    %205 = arith.cmpi eq, %0, %204 : vector<1x128xi32>
    %206 = arith.extui %205 : vector<1x128xi1> to vector<1x128xi32>
    %207 = arith.sitofp %206 : vector<1x128xi32> to vector<1x128xf32>
    %208 = arith.addf %201, %207 : vector<1x128xf32>
    %c9_i32_52 = arith.constant 9 : i32
    %209 = arith.index_cast %c9_i32_52 : i32 to index
    %c2_53 = arith.constant 2 : index
    %210 = memref.load %arg2[%209, %c2_53] : memref<10x8xi32, #tpu.memory_space<smem>>
    %211 = vector.broadcast %210 : i32 to vector<1x128xi32>
    %212 = arith.cmpi eq, %0, %211 : vector<1x128xi32>
    %213 = arith.extui %212 : vector<1x128xi1> to vector<1x128xi32>
    %214 = arith.sitofp %213 : vector<1x128xi32> to vector<1x128xf32>
    %215 = arith.addf %208, %214 : vector<1x128xf32>
    %c10_i32_54 = arith.constant 10 : i32
    %c2_55 = arith.constant 2 : index
    %c0_56 = arith.constant 0 : index
    %216 = vector.load %arg7[%c2_55, %c0_56] : memref<8x128xf32, #tpu.memory_space<vmem>>, vector<1x128xf32>
    tpu.vector_store %arg7[%c2_55, %c0_56], %215 {strides = array<i32>} : memref<8x128xf32, #tpu.memory_space<vmem>>, vector<1x128xf32>,
    %cst_57 = arith.constant 0.000000e+00 : f32
    %217 = vector.broadcast %cst_57 : f32 to vector<1x128xf32>
    %c0_i32_58 = arith.constant 0 : i32
    %218 = arith.index_cast %c0_i32_58 : i32 to index
    %c3 = arith.constant 3 : index
    %219 = memref.load %arg2[%218, %c3] : memref<10x8xi32, #tpu.memory_space<smem>>
    %220 = vector.broadcast %219 : i32 to vector<1x128xi32>
    %221 = arith.cmpi eq, %0, %220 : vector<1x128xi32>
    %222 = arith.extui %221 : vector<1x128xi1> to vector<1x128xi32>
    %223 = arith.sitofp %222 : vector<1x128xi32> to vector<1x128xf32>
    %224 = arith.addf %217, %223 : vector<1x128xf32>
    %c1_i32_59 = arith.constant 1 : i32
    %225 = arith.index_cast %c1_i32_59 : i32 to index
    %c3_60 = arith.constant 3 : index
    %226 = memref.load %arg2[%225, %c3_60] : memref<10x8xi32, #tpu.memory_space<smem>>
    %227 = vector.broadcast %226 : i32 to vector<1x128xi32>
    %228 = arith.cmpi eq, %0, %227 : vector<1x128xi32>
    %229 = arith.extui %228 : vector<1x128xi1> to vector<1x128xi32>
    %230 = arith.sitofp %229 : vector<1x128xi32> to vector<1x128xf32>
    %231 = arith.addf %224, %230 : vector<1x128xf32>
    %c2_i32_61 = arith.constant 2 : i32
    %232 = arith.index_cast %c2_i32_61 : i32 to index
    %c3_62 = arith.constant 3 : index
    %233 = memref.load %arg2[%232, %c3_62] : memref<10x8xi32, #tpu.memory_space<smem>>
    %234 = vector.broadcast %233 : i32 to vector<1x128xi32>
    %235 = arith.cmpi eq, %0, %234 : vector<1x128xi32>
    %236 = arith.extui %235 : vector<1x128xi1> to vector<1x128xi32>
    %237 = arith.sitofp %236 : vector<1x128xi32> to vector<1x128xf32>
    %238 = arith.addf %231, %237 : vector<1x128xf32>
    %c3_i32_63 = arith.constant 3 : i32
    %239 = arith.index_cast %c3_i32_63 : i32 to index
    %c3_64 = arith.constant 3 : index
    %240 = memref.load %arg2[%239, %c3_64] : memref<10x8xi32, #tpu.memory_space<smem>>
    %241 = vector.broadcast %240 : i32 to vector<1x128xi32>
    %242 = arith.cmpi eq, %0, %241 : vector<1x128xi32>
    %243 = arith.extui %242 : vector<1x128xi1> to vector<1x128xi32>
    %244 = arith.sitofp %243 : vector<1x128xi32> to vector<1x128xf32>
    %245 = arith.addf %238, %244 : vector<1x128xf32>
    %c4_i32_65 = arith.constant 4 : i32
    %246 = arith.index_cast %c4_i32_65 : i32 to index
    %c3_66 = arith.constant 3 : index
    %247 = memref.load %arg2[%246, %c3_66] : memref<10x8xi32, #tpu.memory_space<smem>>
    %248 = vector.broadcast %247 : i32 to vector<1x128xi32>
    %249 = arith.cmpi eq, %0, %248 : vector<1x128xi32>
    %250 = arith.extui %249 : vector<1x128xi1> to vector<1x128xi32>
    %251 = arith.sitofp %250 : vector<1x128xi32> to vector<1x128xf32>
    %252 = arith.addf %245, %251 : vector<1x128xf32>
    %c5_i32_67 = arith.constant 5 : i32
    %253 = arith.index_cast %c5_i32_67 : i32 to index
    %c3_68 = arith.constant 3 : index
    %254 = memref.load %arg2[%253, %c3_68] : memref<10x8xi32, #tpu.memory_space<smem>>
    %255 = vector.broadcast %254 : i32 to vector<1x128xi32>
    %256 = arith.cmpi eq, %0, %255 : vector<1x128xi32>
    %257 = arith.extui %256 : vector<1x128xi1> to vector<1x128xi32>
    %258 = arith.sitofp %257 : vector<1x128xi32> to vector<1x128xf32>
    %259 = arith.addf %252, %258 : vector<1x128xf32>
    %c6_i32_69 = arith.constant 6 : i32
    %260 = arith.index_cast %c6_i32_69 : i32 to index
    %c3_70 = arith.constant 3 : index
    %261 = memref.load %arg2[%260, %c3_70] : memref<10x8xi32, #tpu.memory_space<smem>>
    %262 = vector.broadcast %261 : i32 to vector<1x128xi32>
    %263 = arith.cmpi eq, %0, %262 : vector<1x128xi32>
    %264 = arith.extui %263 : vector<1x128xi1> to vector<1x128xi32>
    %265 = arith.sitofp %264 : vector<1x128xi32> to vector<1x128xf32>
    %266 = arith.addf %259, %265 : vector<1x128xf32>
    %c7_i32_71 = arith.constant 7 : i32
    %267 = arith.index_cast %c7_i32_71 : i32 to index
    %c3_72 = arith.constant 3 : index
    %268 = memref.load %arg2[%267, %c3_72] : memref<10x8xi32, #tpu.memory_space<smem>>
    %269 = vector.broadcast %268 : i32 to vector<1x128xi32>
    %270 = arith.cmpi eq, %0, %269 : vector<1x128xi32>
    %271 = arith.extui %270 : vector<1x128xi1> to vector<1x128xi32>
    %272 = arith.sitofp %271 : vector<1x128xi32> to vector<1x128xf32>
    %273 = arith.addf %266, %272 : vector<1x128xf32>
    %c8_i32_73 = arith.constant 8 : i32
    %274 = arith.index_cast %c8_i32_73 : i32 to index
    %c3_74 = arith.constant 3 : index
    %275 = memref.load %arg2[%274, %c3_74] : memref<10x8xi32, #tpu.memory_space<smem>>
    %276 = vector.broadcast %275 : i32 to vector<1x128xi32>
    %277 = arith.cmpi eq, %0, %276 : vector<1x128xi32>
    %278 = arith.extui %277 : vector<1x128xi1> to vector<1x128xi32>
    %279 = arith.sitofp %278 : vector<1x128xi32> to vector<1x128xf32>
    %280 = arith.addf %273, %279 : vector<1x128xf32>
    %c9_i32_75 = arith.constant 9 : i32
    %281 = arith.index_cast %c9_i32_75 : i32 to index
    %c3_76 = arith.constant 3 : index
    %282 = memref.load %arg2[%281, %c3_76] : memref<10x8xi32, #tpu.memory_space<smem>>
    %283 = vector.broadcast %282 : i32 to vector<1x128xi32>
    %284 = arith.cmpi eq, %0, %283 : vector<1x128xi32>
    %285 = arith.extui %284 : vector<1x128xi1> to vector<1x128xi32>
    %286 = arith.sitofp %285 : vector<1x128xi32> to vector<1x128xf32>
    %287 = arith.addf %280, %286 : vector<1x128xf32>
    %c10_i32_77 = arith.constant 10 : i32
    %c3_78 = arith.constant 3 : index
    %c0_79 = arith.constant 0 : index
    %288 = vector.load %arg7[%c3_78, %c0_79] : memref<8x128xf32, #tpu.memory_space<vmem>>, vector<1x128xf32>
    tpu.vector_store %arg7[%c3_78, %c0_79], %287 {strides = array<i32>} : memref<8x128xf32, #tpu.memory_space<vmem>>, vector<1x128xf32>,
    %cst_80 = arith.constant 0.000000e+00 : f32
    %289 = vector.broadcast %cst_80 : f32 to vector<1x128xf32>
    %c0_i32_81 = arith.constant 0 : i32
    %290 = arith.index_cast %c0_i32_81 : i32 to index
    %c4 = arith.constant 4 : index
    %291 = memref.load %arg2[%290, %c4] : memref<10x8xi32, #tpu.memory_space<smem>>
    %292 = vector.broadcast %291 : i32 to vector<1x128xi32>
    %293 = arith.cmpi eq, %0, %292 : vector<1x128xi32>
    %294 = arith.extui %293 : vector<1x128xi1> to vector<1x128xi32>
    %295 = arith.sitofp %294 : vector<1x128xi32> to vector<1x128xf32>
    %296 = arith.addf %289, %295 : vector<1x128xf32>
    %c1_i32_82 = arith.constant 1 : i32
    %297 = arith.index_cast %c1_i32_82 : i32 to index
    %c4_83 = arith.constant 4 : index
    %298 = memref.load %arg2[%297, %c4_83] : memref<10x8xi32, #tpu.memory_space<smem>>
    %299 = vector.broadcast %298 : i32 to vector<1x128xi32>
    %300 = arith.cmpi eq, %0, %299 : vector<1x128xi32>
    %301 = arith.extui %300 : vector<1x128xi1> to vector<1x128xi32>
    %302 = arith.sitofp %301 : vector<1x128xi32> to vector<1x128xf32>
    %303 = arith.addf %296, %302 : vector<1x128xf32>
    %c2_i32_84 = arith.constant 2 : i32
    %304 = arith.index_cast %c2_i32_84 : i32 to index
    %c4_85 = arith.constant 4 : index
    %305 = memref.load %arg2[%304, %c4_85] : memref<10x8xi32, #tpu.memory_space<smem>>
    %306 = vector.broadcast %305 : i32 to vector<1x128xi32>
    %307 = arith.cmpi eq, %0, %306 : vector<1x128xi32>
    %308 = arith.extui %307 : vector<1x128xi1> to vector<1x128xi32>
    %309 = arith.sitofp %308 : vector<1x128xi32> to vector<1x128xf32>
    %310 = arith.addf %303, %309 : vector<1x128xf32>
    %c3_i32_86 = arith.constant 3 : i32
    %311 = arith.index_cast %c3_i32_86 : i32 to index
    %c4_87 = arith.constant 4 : index
    %312 = memref.load %arg2[%311, %c4_87] : memref<10x8xi32, #tpu.memory_space<smem>>
    %313 = vector.broadcast %312 : i32 to vector<1x128xi32>
    %314 = arith.cmpi eq, %0, %313 : vector<1x128xi32>
    %315 = arith.extui %314 : vector<1x128xi1> to vector<1x128xi32>
    %316 = arith.sitofp %315 : vector<1x128xi32> to vector<1x128xf32>
    %317 = arith.addf %310, %316 : vector<1x128xf32>
    %c4_i32_88 = arith.constant 4 : i32
    %318 = arith.index_cast %c4_i32_88 : i32 to index
    %c4_89 = arith.constant 4 : index
    %319 = memref.load %arg2[%318, %c4_89] : memref<10x8xi32, #tpu.memory_space<smem>>
    %320 = vector.broadcast %319 : i32 to vector<1x128xi32>
    %321 = arith.cmpi eq, %0, %320 : vector<1x128xi32>
    %322 = arith.extui %321 : vector<1x128xi1> to vector<1x128xi32>
    %323 = arith.sitofp %322 : vector<1x128xi32> to vector<1x128xf32>
    %324 = arith.addf %317, %323 : vector<1x128xf32>
    %c5_i32_90 = arith.constant 5 : i32
    %325 = arith.index_cast %c5_i32_90 : i32 to index
    %c4_91 = arith.constant 4 : index
    %326 = memref.load %arg2[%325, %c4_91] : memref<10x8xi32, #tpu.memory_space<smem>>
    %327 = vector.broadcast %326 : i32 to vector<1x128xi32>
    %328 = arith.cmpi eq, %0, %327 : vector<1x128xi32>
    %329 = arith.extui %328 : vector<1x128xi1> to vector<1x128xi32>
    %330 = arith.sitofp %329 : vector<1x128xi32> to vector<1x128xf32>
    %331 = arith.addf %324, %330 : vector<1x128xf32>
    %c6_i32_92 = arith.constant 6 : i32
    %332 = arith.index_cast %c6_i32_92 : i32 to index
    %c4_93 = arith.constant 4 : index
    %333 = memref.load %arg2[%332, %c4_93] : memref<10x8xi32, #tpu.memory_space<smem>>
    %334 = vector.broadcast %333 : i32 to vector<1x128xi32>
    %335 = arith.cmpi eq, %0, %334 : vector<1x128xi32>
    %336 = arith.extui %335 : vector<1x128xi1> to vector<1x128xi32>
    %337 = arith.sitofp %336 : vector<1x128xi32> to vector<1x128xf32>
    %338 = arith.addf %331, %337 : vector<1x128xf32>
    %c7_i32_94 = arith.constant 7 : i32
    %339 = arith.index_cast %c7_i32_94 : i32 to index
    %c4_95 = arith.constant 4 : index
    %340 = memref.load %arg2[%339, %c4_95] : memref<10x8xi32, #tpu.memory_space<smem>>
    %341 = vector.broadcast %340 : i32 to vector<1x128xi32>
    %342 = arith.cmpi eq, %0, %341 : vector<1x128xi32>
    %343 = arith.extui %342 : vector<1x128xi1> to vector<1x128xi32>
    %344 = arith.sitofp %343 : vector<1x128xi32> to vector<1x128xf32>
    %345 = arith.addf %338, %344 : vector<1x128xf32>
    %c8_i32_96 = arith.constant 8 : i32
    %346 = arith.index_cast %c8_i32_96 : i32 to index
    %c4_97 = arith.constant 4 : index
    %347 = memref.load %arg2[%346, %c4_97] : memref<10x8xi32, #tpu.memory_space<smem>>
    %348 = vector.broadcast %347 : i32 to vector<1x128xi32>
    %349 = arith.cmpi eq, %0, %348 : vector<1x128xi32>
    %350 = arith.extui %349 : vector<1x128xi1> to vector<1x128xi32>
    %351 = arith.sitofp %350 : vector<1x128xi32> to vector<1x128xf32>
    %352 = arith.addf %345, %351 : vector<1x128xf32>
    %c9_i32_98 = arith.constant 9 : i32
    %353 = arith.index_cast %c9_i32_98 : i32 to index
    %c4_99 = arith.constant 4 : index
    %354 = memref.load %arg2[%353, %c4_99] : memref<10x8xi32, #tpu.memory_space<smem>>
    %355 = vector.broadcast %354 : i32 to vector<1x128xi32>
    %356 = arith.cmpi eq, %0, %355 : vector<1x128xi32>
    %357 = arith.extui %356 : vector<1x128xi1> to vector<1x128xi32>
    %358 = arith.sitofp %357 : vector<1x128xi32> to vector<1x128xf32>
    %359 = arith.addf %352, %358 : vector<1x128xf32>
    %c10_i32_100 = arith.constant 10 : i32
    %c4_101 = arith.constant 4 : index
    %c0_102 = arith.constant 0 : index
    %360 = vector.load %arg7[%c4_101, %c0_102] : memref<8x128xf32, #tpu.memory_space<vmem>>, vector<1x128xf32>
    tpu.vector_store %arg7[%c4_101, %c0_102], %359 {strides = array<i32>} : memref<8x128xf32, #tpu.memory_space<vmem>>, vector<1x128xf32>,
    %cst_103 = arith.constant 0.000000e+00 : f32
    %361 = vector.broadcast %cst_103 : f32 to vector<1x128xf32>
    %c0_i32_104 = arith.constant 0 : i32
    %362 = arith.index_cast %c0_i32_104 : i32 to index
    %c5 = arith.constant 5 : index
    %363 = memref.load %arg2[%362, %c5] : memref<10x8xi32, #tpu.memory_space<smem>>
    %364 = vector.broadcast %363 : i32 to vector<1x128xi32>
    %365 = arith.cmpi eq, %0, %364 : vector<1x128xi32>
    %366 = arith.extui %365 : vector<1x128xi1> to vector<1x128xi32>
    %367 = arith.sitofp %366 : vector<1x128xi32> to vector<1x128xf32>
    %368 = arith.addf %361, %367 : vector<1x128xf32>
    %c1_i32_105 = arith.constant 1 : i32
    %369 = arith.index_cast %c1_i32_105 : i32 to index
    %c5_106 = arith.constant 5 : index
    %370 = memref.load %arg2[%369, %c5_106] : memref<10x8xi32, #tpu.memory_space<smem>>
    %371 = vector.broadcast %370 : i32 to vector<1x128xi32>
    %372 = arith.cmpi eq, %0, %371 : vector<1x128xi32>
    %373 = arith.extui %372 : vector<1x128xi1> to vector<1x128xi32>
    %374 = arith.sitofp %373 : vector<1x128xi32> to vector<1x128xf32>
    %375 = arith.addf %368, %374 : vector<1x128xf32>
    %c2_i32_107 = arith.constant 2 : i32
    %376 = arith.index_cast %c2_i32_107 : i32 to index
    %c5_108 = arith.constant 5 : index
    %377 = memref.load %arg2[%376, %c5_108] : memref<10x8xi32, #tpu.memory_space<smem>>
    %378 = vector.broadcast %377 : i32 to vector<1x128xi32>
    %379 = arith.cmpi eq, %0, %378 : vector<1x128xi32>
    %380 = arith.extui %379 : vector<1x128xi1> to vector<1x128xi32>
    %381 = arith.sitofp %380 : vector<1x128xi32> to vector<1x128xf32>
    %382 = arith.addf %375, %381 : vector<1x128xf32>
    %c3_i32_109 = arith.constant 3 : i32
    %383 = arith.index_cast %c3_i32_109 : i32 to index
    %c5_110 = arith.constant 5 : index
    %384 = memref.load %arg2[%383, %c5_110] : memref<10x8xi32, #tpu.memory_space<smem>>
    %385 = vector.broadcast %384 : i32 to vector<1x128xi32>
    %386 = arith.cmpi eq, %0, %385 : vector<1x128xi32>
    %387 = arith.extui %386 : vector<1x128xi1> to vector<1x128xi32>
    %388 = arith.sitofp %387 : vector<1x128xi32> to vector<1x128xf32>
    %389 = arith.addf %382, %388 : vector<1x128xf32>
    %c4_i32_111 = arith.constant 4 : i32
    %390 = arith.index_cast %c4_i32_111 : i32 to index
    %c5_112 = arith.constant 5 : index
    %391 = memref.load %arg2[%390, %c5_112] : memref<10x8xi32, #tpu.memory_space<smem>>
    %392 = vector.broadcast %391 : i32 to vector<1x128xi32>
    %393 = arith.cmpi eq, %0, %392 : vector<1x128xi32>
    %394 = arith.extui %393 : vector<1x128xi1> to vector<1x128xi32>
    %395 = arith.sitofp %394 : vector<1x128xi32> to vector<1x128xf32>
    %396 = arith.addf %389, %395 : vector<1x128xf32>
    %c5_i32_113 = arith.constant 5 : i32
    %397 = arith.index_cast %c5_i32_113 : i32 to index
    %c5_114 = arith.constant 5 : index
    %398 = memref.load %arg2[%397, %c5_114] : memref<10x8xi32, #tpu.memory_space<smem>>
    %399 = vector.broadcast %398 : i32 to vector<1x128xi32>
    %400 = arith.cmpi eq, %0, %399 : vector<1x128xi32>
    %401 = arith.extui %400 : vector<1x128xi1> to vector<1x128xi32>
    %402 = arith.sitofp %401 : vector<1x128xi32> to vector<1x128xf32>
    %403 = arith.addf %396, %402 : vector<1x128xf32>
    %c6_i32_115 = arith.constant 6 : i32
    %404 = arith.index_cast %c6_i32_115 : i32 to index
    %c5_116 = arith.constant 5 : index
    %405 = memref.load %arg2[%404, %c5_116] : memref<10x8xi32, #tpu.memory_space<smem>>
    %406 = vector.broadcast %405 : i32 to vector<1x128xi32>
    %407 = arith.cmpi eq, %0, %406 : vector<1x128xi32>
    %408 = arith.extui %407 : vector<1x128xi1> to vector<1x128xi32>
    %409 = arith.sitofp %408 : vector<1x128xi32> to vector<1x128xf32>
    %410 = arith.addf %403, %409 : vector<1x128xf32>
    %c7_i32_117 = arith.constant 7 : i32
    %411 = arith.index_cast %c7_i32_117 : i32 to index
    %c5_118 = arith.constant 5 : index
    %412 = memref.load %arg2[%411, %c5_118] : memref<10x8xi32, #tpu.memory_space<smem>>
    %413 = vector.broadcast %412 : i32 to vector<1x128xi32>
    %414 = arith.cmpi eq, %0, %413 : vector<1x128xi32>
    %415 = arith.extui %414 : vector<1x128xi1> to vector<1x128xi32>
    %416 = arith.sitofp %415 : vector<1x128xi32> to vector<1x128xf32>
    %417 = arith.addf %410, %416 : vector<1x128xf32>
    %c8_i32_119 = arith.constant 8 : i32
    %418 = arith.index_cast %c8_i32_119 : i32 to index
    %c5_120 = arith.constant 5 : index
    %419 = memref.load %arg2[%418, %c5_120] : memref<10x8xi32, #tpu.memory_space<smem>>
    %420 = vector.broadcast %419 : i32 to vector<1x128xi32>
    %421 = arith.cmpi eq, %0, %420 : vector<1x128xi32>
    %422 = arith.extui %421 : vector<1x128xi1> to vector<1x128xi32>
    %423 = arith.sitofp %422 : vector<1x128xi32> to vector<1x128xf32>
    %424 = arith.addf %417, %423 : vector<1x128xf32>
    %c9_i32_121 = arith.constant 9 : i32
    %425 = arith.index_cast %c9_i32_121 : i32 to index
    %c5_122 = arith.constant 5 : index
    %426 = memref.load %arg2[%425, %c5_122] : memref<10x8xi32, #tpu.memory_space<smem>>
    %427 = vector.broadcast %426 : i32 to vector<1x128xi32>
    %428 = arith.cmpi eq, %0, %427 : vector<1x128xi32>
    %429 = arith.extui %428 : vector<1x128xi1> to vector<1x128xi32>
    %430 = arith.sitofp %429 : vector<1x128xi32> to vector<1x128xf32>
    %431 = arith.addf %424, %430 : vector<1x128xf32>
    %c10_i32_123 = arith.constant 10 : i32
    %c5_124 = arith.constant 5 : index
    %c0_125 = arith.constant 0 : index
    %432 = vector.load %arg7[%c5_124, %c0_125] : memref<8x128xf32, #tpu.memory_space<vmem>>, vector<1x128xf32>
    tpu.vector_store %arg7[%c5_124, %c0_125], %431 {strides = array<i32>} : memref<8x128xf32, #tpu.memory_space<vmem>>, vector<1x128xf32>,
    %cst_126 = arith.constant 0.000000e+00 : f32
    %433 = vector.broadcast %cst_126 : f32 to vector<1x128xf32>
    %c0_i32_127 = arith.constant 0 : i32
    %434 = arith.index_cast %c0_i32_127 : i32 to index
    %c6 = arith.constant 6 : index
    %435 = memref.load %arg2[%434, %c6] : memref<10x8xi32, #tpu.memory_space<smem>>
    %436 = vector.broadcast %435 : i32 to vector<1x128xi32>
    %437 = arith.cmpi eq, %0, %436 : vector<1x128xi32>
    %438 = arith.extui %437 : vector<1x128xi1> to vector<1x128xi32>
    %439 = arith.sitofp %438 : vector<1x128xi32> to vector<1x128xf32>
    %440 = arith.addf %433, %439 : vector<1x128xf32>
    %c1_i32_128 = arith.constant 1 : i32
    %441 = arith.index_cast %c1_i32_128 : i32 to index
    %c6_129 = arith.constant 6 : index
    %442 = memref.load %arg2[%441, %c6_129] : memref<10x8xi32, #tpu.memory_space<smem>>
    %443 = vector.broadcast %442 : i32 to vector<1x128xi32>
    %444 = arith.cmpi eq, %0, %443 : vector<1x128xi32>
    %445 = arith.extui %444 : vector<1x128xi1> to vector<1x128xi32>
    %446 = arith.sitofp %445 : vector<1x128xi32> to vector<1x128xf32>
    %447 = arith.addf %440, %446 : vector<1x128xf32>
    %c2_i32_130 = arith.constant 2 : i32
    %448 = arith.index_cast %c2_i32_130 : i32 to index
    %c6_131 = arith.constant 6 : index
    %449 = memref.load %arg2[%448, %c6_131] : memref<10x8xi32, #tpu.memory_space<smem>>
    %450 = vector.broadcast %449 : i32 to vector<1x128xi32>
    %451 = arith.cmpi eq, %0, %450 : vector<1x128xi32>
    %452 = arith.extui %451 : vector<1x128xi1> to vector<1x128xi32>
    %453 = arith.sitofp %452 : vector<1x128xi32> to vector<1x128xf32>
    %454 = arith.addf %447, %453 : vector<1x128xf32>
    %c3_i32_132 = arith.constant 3 : i32
    %455 = arith.index_cast %c3_i32_132 : i32 to index
    %c6_133 = arith.constant 6 : index
    %456 = memref.load %arg2[%455, %c6_133] : memref<10x8xi32, #tpu.memory_space<smem>>
    %457 = vector.broadcast %456 : i32 to vector<1x128xi32>
    %458 = arith.cmpi eq, %0, %457 : vector<1x128xi32>
    %459 = arith.extui %458 : vector<1x128xi1> to vector<1x128xi32>
    %460 = arith.sitofp %459 : vector<1x128xi32> to vector<1x128xf32>
    %461 = arith.addf %454, %460 : vector<1x128xf32>
    %c4_i32_134 = arith.constant 4 : i32
    %462 = arith.index_cast %c4_i32_134 : i32 to index
    %c6_135 = arith.constant 6 : index
    %463 = memref.load %arg2[%462, %c6_135] : memref<10x8xi32, #tpu.memory_space<smem>>
    %464 = vector.broadcast %463 : i32 to vector<1x128xi32>
    %465 = arith.cmpi eq, %0, %464 : vector<1x128xi32>
    %466 = arith.extui %465 : vector<1x128xi1> to vector<1x128xi32>
    %467 = arith.sitofp %466 : vector<1x128xi32> to vector<1x128xf32>
    %468 = arith.addf %461, %467 : vector<1x128xf32>
    %c5_i32_136 = arith.constant 5 : i32
    %469 = arith.index_cast %c5_i32_136 : i32 to index
    %c6_137 = arith.constant 6 : index
    %470 = memref.load %arg2[%469, %c6_137] : memref<10x8xi32, #tpu.memory_space<smem>>
    %471 = vector.broadcast %470 : i32 to vector<1x128xi32>
    %472 = arith.cmpi eq, %0, %471 : vector<1x128xi32>
    %473 = arith.extui %472 : vector<1x128xi1> to vector<1x128xi32>
    %474 = arith.sitofp %473 : vector<1x128xi32> to vector<1x128xf32>
    %475 = arith.addf %468, %474 : vector<1x128xf32>
    %c6_i32_138 = arith.constant 6 : i32
    %476 = arith.index_cast %c6_i32_138 : i32 to index
    %c6_139 = arith.constant 6 : index
    %477 = memref.load %arg2[%476, %c6_139] : memref<10x8xi32, #tpu.memory_space<smem>>
    %478 = vector.broadcast %477 : i32 to vector<1x128xi32>
    %479 = arith.cmpi eq, %0, %478 : vector<1x128xi32>
    %480 = arith.extui %479 : vector<1x128xi1> to vector<1x128xi32>
    %481 = arith.sitofp %480 : vector<1x128xi32> to vector<1x128xf32>
    %482 = arith.addf %475, %481 : vector<1x128xf32>
    %c7_i32_140 = arith.constant 7 : i32
    %483 = arith.index_cast %c7_i32_140 : i32 to index
    %c6_141 = arith.constant 6 : index
    %484 = memref.load %arg2[%483, %c6_141] : memref<10x8xi32, #tpu.memory_space<smem>>
    %485 = vector.broadcast %484 : i32 to vector<1x128xi32>
    %486 = arith.cmpi eq, %0, %485 : vector<1x128xi32>
    %487 = arith.extui %486 : vector<1x128xi1> to vector<1x128xi32>
    %488 = arith.sitofp %487 : vector<1x128xi32> to vector<1x128xf32>
    %489 = arith.addf %482, %488 : vector<1x128xf32>
    %c8_i32_142 = arith.constant 8 : i32
    %490 = arith.index_cast %c8_i32_142 : i32 to index
    %c6_143 = arith.constant 6 : index
    %491 = memref.load %arg2[%490, %c6_143] : memref<10x8xi32, #tpu.memory_space<smem>>
    %492 = vector.broadcast %491 : i32 to vector<1x128xi32>
    %493 = arith.cmpi eq, %0, %492 : vector<1x128xi32>
    %494 = arith.extui %493 : vector<1x128xi1> to vector<1x128xi32>
    %495 = arith.sitofp %494 : vector<1x128xi32> to vector<1x128xf32>
    %496 = arith.addf %489, %495 : vector<1x128xf32>
    %c9_i32_144 = arith.constant 9 : i32
    %497 = arith.index_cast %c9_i32_144 : i32 to index
    %c6_145 = arith.constant 6 : index
    %498 = memref.load %arg2[%497, %c6_145] : memref<10x8xi32, #tpu.memory_space<smem>>
    %499 = vector.broadcast %498 : i32 to vector<1x128xi32>
    %500 = arith.cmpi eq, %0, %499 : vector<1x128xi32>
    %501 = arith.extui %500 : vector<1x128xi1> to vector<1x128xi32>
    %502 = arith.sitofp %501 : vector<1x128xi32> to vector<1x128xf32>
    %503 = arith.addf %496, %502 : vector<1x128xf32>
    %c10_i32_146 = arith.constant 10 : i32
    %c6_147 = arith.constant 6 : index
    %c0_148 = arith.constant 0 : index
    %504 = vector.load %arg7[%c6_147, %c0_148] : memref<8x128xf32, #tpu.memory_space<vmem>>, vector<1x128xf32>
    tpu.vector_store %arg7[%c6_147, %c0_148], %503 {strides = array<i32>} : memref<8x128xf32, #tpu.memory_space<vmem>>, vector<1x128xf32>,
    %cst_149 = arith.constant 0.000000e+00 : f32
    %505 = vector.broadcast %cst_149 : f32 to vector<1x128xf32>
    %c0_i32_150 = arith.constant 0 : i32
    %506 = arith.index_cast %c0_i32_150 : i32 to index
    %c7 = arith.constant 7 : index
    %507 = memref.load %arg2[%506, %c7] : memref<10x8xi32, #tpu.memory_space<smem>>
    %508 = vector.broadcast %507 : i32 to vector<1x128xi32>
    %509 = arith.cmpi eq, %0, %508 : vector<1x128xi32>
    %510 = arith.extui %509 : vector<1x128xi1> to vector<1x128xi32>
    %511 = arith.sitofp %510 : vector<1x128xi32> to vector<1x128xf32>
    %512 = arith.addf %505, %511 : vector<1x128xf32>
    %c1_i32_151 = arith.constant 1 : i32
    %513 = arith.index_cast %c1_i32_151 : i32 to index
    %c7_152 = arith.constant 7 : index
    %514 = memref.load %arg2[%513, %c7_152] : memref<10x8xi32, #tpu.memory_space<smem>>
    %515 = vector.broadcast %514 : i32 to vector<1x128xi32>
    %516 = arith.cmpi eq, %0, %515 : vector<1x128xi32>
    %517 = arith.extui %516 : vector<1x128xi1> to vector<1x128xi32>
    %518 = arith.sitofp %517 : vector<1x128xi32> to vector<1x128xf32>
    %519 = arith.addf %512, %518 : vector<1x128xf32>
    %c2_i32_153 = arith.constant 2 : i32
    %520 = arith.index_cast %c2_i32_153 : i32 to index
    %c7_154 = arith.constant 7 : index
    %521 = memref.load %arg2[%520, %c7_154] : memref<10x8xi32, #tpu.memory_space<smem>>
    %522 = vector.broadcast %521 : i32 to vector<1x128xi32>
    %523 = arith.cmpi eq, %0, %522 : vector<1x128xi32>
    %524 = arith.extui %523 : vector<1x128xi1> to vector<1x128xi32>
    %525 = arith.sitofp %524 : vector<1x128xi32> to vector<1x128xf32>
    %526 = arith.addf %519, %525 : vector<1x128xf32>
    %c3_i32_155 = arith.constant 3 : i32
    %527 = arith.index_cast %c3_i32_155 : i32 to index
    %c7_156 = arith.constant 7 : index
    %528 = memref.load %arg2[%527, %c7_156] : memref<10x8xi32, #tpu.memory_space<smem>>
    %529 = vector.broadcast %528 : i32 to vector<1x128xi32>
    %530 = arith.cmpi eq, %0, %529 : vector<1x128xi32>
    %531 = arith.extui %530 : vector<1x128xi1> to vector<1x128xi32>
    %532 = arith.sitofp %531 : vector<1x128xi32> to vector<1x128xf32>
    %533 = arith.addf %526, %532 : vector<1x128xf32>
    %c4_i32_157 = arith.constant 4 : i32
    %534 = arith.index_cast %c4_i32_157 : i32 to index
    %c7_158 = arith.constant 7 : index
    %535 = memref.load %arg2[%534, %c7_158] : memref<10x8xi32, #tpu.memory_space<smem>>
    %536 = vector.broadcast %535 : i32 to vector<1x128xi32>
    %537 = arith.cmpi eq, %0, %536 : vector<1x128xi32>
    %538 = arith.extui %537 : vector<1x128xi1> to vector<1x128xi32>
    %539 = arith.sitofp %538 : vector<1x128xi32> to vector<1x128xf32>
    %540 = arith.addf %533, %539 : vector<1x128xf32>
    %c5_i32_159 = arith.constant 5 : i32
    %541 = arith.index_cast %c5_i32_159 : i32 to index
    %c7_160 = arith.constant 7 : index
    %542 = memref.load %arg2[%541, %c7_160] : memref<10x8xi32, #tpu.memory_space<smem>>
    %543 = vector.broadcast %542 : i32 to vector<1x128xi32>
    %544 = arith.cmpi eq, %0, %543 : vector<1x128xi32>
    %545 = arith.extui %544 : vector<1x128xi1> to vector<1x128xi32>
    %546 = arith.sitofp %545 : vector<1x128xi32> to vector<1x128xf32>
    %547 = arith.addf %540, %546 : vector<1x128xf32>
    %c6_i32_161 = arith.constant 6 : i32
    %548 = arith.index_cast %c6_i32_161 : i32 to index
    %c7_162 = arith.constant 7 : index
    %549 = memref.load %arg2[%548, %c7_162] : memref<10x8xi32, #tpu.memory_space<smem>>
    %550 = vector.broadcast %549 : i32 to vector<1x128xi32>
    %551 = arith.cmpi eq, %0, %550 : vector<1x128xi32>
    %552 = arith.extui %551 : vector<1x128xi1> to vector<1x128xi32>
    %553 = arith.sitofp %552 : vector<1x128xi32> to vector<1x128xf32>
    %554 = arith.addf %547, %553 : vector<1x128xf32>
    %c7_i32_163 = arith.constant 7 : i32
    %555 = arith.index_cast %c7_i32_163 : i32 to index
    %c7_164 = arith.constant 7 : index
    %556 = memref.load %arg2[%555, %c7_164] : memref<10x8xi32, #tpu.memory_space<smem>>
    %557 = vector.broadcast %556 : i32 to vector<1x128xi32>
    %558 = arith.cmpi eq, %0, %557 : vector<1x128xi32>
    %559 = arith.extui %558 : vector<1x128xi1> to vector<1x128xi32>
    %560 = arith.sitofp %559 : vector<1x128xi32> to vector<1x128xf32>
    %561 = arith.addf %554, %560 : vector<1x128xf32>
    %c8_i32_165 = arith.constant 8 : i32
    %562 = arith.index_cast %c8_i32_165 : i32 to index
    %c7_166 = arith.constant 7 : index
    %563 = memref.load %arg2[%562, %c7_166] : memref<10x8xi32, #tpu.memory_space<smem>>
    %564 = vector.broadcast %563 : i32 to vector<1x128xi32>
    %565 = arith.cmpi eq, %0, %564 : vector<1x128xi32>
    %566 = arith.extui %565 : vector<1x128xi1> to vector<1x128xi32>
    %567 = arith.sitofp %566 : vector<1x128xi32> to vector<1x128xf32>
    %568 = arith.addf %561, %567 : vector<1x128xf32>
    %c9_i32_167 = arith.constant 9 : i32
    %569 = arith.index_cast %c9_i32_167 : i32 to index
    %c7_168 = arith.constant 7 : index
    %570 = memref.load %arg2[%569, %c7_168] : memref<10x8xi32, #tpu.memory_space<smem>>
    %571 = vector.broadcast %570 : i32 to vector<1x128xi32>
    %572 = arith.cmpi eq, %0, %571 : vector<1x128xi32>
    %573 = arith.extui %572 : vector<1x128xi1> to vector<1x128xi32>
    %574 = arith.sitofp %573 : vector<1x128xi32> to vector<1x128xf32>
    %575 = arith.addf %568, %574 : vector<1x128xf32>
    %c10_i32_169 = arith.constant 10 : i32
    %c7_170 = arith.constant 7 : index
    %c0_171 = arith.constant 0 : index
    %576 = vector.load %arg7[%c7_170, %c0_171] : memref<8x128xf32, #tpu.memory_space<vmem>>, vector<1x128xf32>
    tpu.vector_store %arg7[%c7_170, %c0_171], %575 {strides = array<i32>} : memref<8x128xf32, #tpu.memory_space<vmem>>, vector<1x128xf32>,
    %577 = tpu.iota {dimensions = array<i32: 1>} : vector<1x128xi32>
    %cst_172 = arith.constant 0.000000e+00 : f32
    %578 = vector.broadcast %cst_172 : f32 to vector<1x128xf32>
    %c0_i32_173 = arith.constant 0 : i32
    %579 = arith.index_cast %c0_i32_173 : i32 to index
    %c0_174 = arith.constant 0 : index
    %580 = memref.load %arg3[%579, %c0_174] : memref<12x8xi32, #tpu.memory_space<smem>>
    %581 = vector.broadcast %580 : i32 to vector<1x128xi32>
    %582 = arith.cmpi eq, %577, %581 : vector<1x128xi32>
    %583 = arith.extui %582 : vector<1x128xi1> to vector<1x128xi32>
    %584 = arith.sitofp %583 : vector<1x128xi32> to vector<1x128xf32>
    %585 = arith.addf %578, %584 : vector<1x128xf32>
    %c1_i32_175 = arith.constant 1 : i32
    %586 = arith.index_cast %c1_i32_175 : i32 to index
    %c0_176 = arith.constant 0 : index
    %587 = memref.load %arg3[%586, %c0_176] : memref<12x8xi32, #tpu.memory_space<smem>>
    %588 = vector.broadcast %587 : i32 to vector<1x128xi32>
    %589 = arith.cmpi eq, %577, %588 : vector<1x128xi32>
    %590 = arith.extui %589 : vector<1x128xi1> to vector<1x128xi32>
    %591 = arith.sitofp %590 : vector<1x128xi32> to vector<1x128xf32>
    %592 = arith.addf %585, %591 : vector<1x128xf32>
    %c2_i32_177 = arith.constant 2 : i32
    %593 = arith.index_cast %c2_i32_177 : i32 to index
    %c0_178 = arith.constant 0 : index
    %594 = memref.load %arg3[%593, %c0_178] : memref<12x8xi32, #tpu.memory_space<smem>>
    %595 = vector.broadcast %594 : i32 to vector<1x128xi32>
    %596 = arith.cmpi eq, %577, %595 : vector<1x128xi32>
    %597 = arith.extui %596 : vector<1x128xi1> to vector<1x128xi32>
    %598 = arith.sitofp %597 : vector<1x128xi32> to vector<1x128xf32>
    %599 = arith.addf %592, %598 : vector<1x128xf32>
    %c3_i32_179 = arith.constant 3 : i32
    %600 = arith.index_cast %c3_i32_179 : i32 to index
    %c0_180 = arith.constant 0 : index
    %601 = memref.load %arg3[%600, %c0_180] : memref<12x8xi32, #tpu.memory_space<smem>>
    %602 = vector.broadcast %601 : i32 to vector<1x128xi32>
    %603 = arith.cmpi eq, %577, %602 : vector<1x128xi32>
    %604 = arith.extui %603 : vector<1x128xi1> to vector<1x128xi32>
    %605 = arith.sitofp %604 : vector<1x128xi32> to vector<1x128xf32>
    %606 = arith.addf %599, %605 : vector<1x128xf32>
    %c4_i32_181 = arith.constant 4 : i32
    %607 = arith.index_cast %c4_i32_181 : i32 to index
    %c0_182 = arith.constant 0 : index
    %608 = memref.load %arg3[%607, %c0_182] : memref<12x8xi32, #tpu.memory_space<smem>>
    %609 = vector.broadcast %608 : i32 to vector<1x128xi32>
    %610 = arith.cmpi eq, %577, %609 : vector<1x128xi32>
    %611 = arith.extui %610 : vector<1x128xi1> to vector<1x128xi32>
    %612 = arith.sitofp %611 : vector<1x128xi32> to vector<1x128xf32>
    %613 = arith.addf %606, %612 : vector<1x128xf32>
    %c5_i32_183 = arith.constant 5 : i32
    %614 = arith.index_cast %c5_i32_183 : i32 to index
    %c0_184 = arith.constant 0 : index
    %615 = memref.load %arg3[%614, %c0_184] : memref<12x8xi32, #tpu.memory_space<smem>>
    %616 = vector.broadcast %615 : i32 to vector<1x128xi32>
    %617 = arith.cmpi eq, %577, %616 : vector<1x128xi32>
    %618 = arith.extui %617 : vector<1x128xi1> to vector<1x128xi32>
    %619 = arith.sitofp %618 : vector<1x128xi32> to vector<1x128xf32>
    %620 = arith.addf %613, %619 : vector<1x128xf32>
    %c6_i32_185 = arith.constant 6 : i32
    %621 = arith.index_cast %c6_i32_185 : i32 to index
    %c0_186 = arith.constant 0 : index
    %622 = memref.load %arg3[%621, %c0_186] : memref<12x8xi32, #tpu.memory_space<smem>>
    %623 = vector.broadcast %622 : i32 to vector<1x128xi32>
    %624 = arith.cmpi eq, %577, %623 : vector<1x128xi32>
    %625 = arith.extui %624 : vector<1x128xi1> to vector<1x128xi32>
    %626 = arith.sitofp %625 : vector<1x128xi32> to vector<1x128xf32>
    %627 = arith.addf %620, %626 : vector<1x128xf32>
    %c7_i32_187 = arith.constant 7 : i32
    %628 = arith.index_cast %c7_i32_187 : i32 to index
    %c0_188 = arith.constant 0 : index
    %629 = memref.load %arg3[%628, %c0_188] : memref<12x8xi32, #tpu.memory_space<smem>>
    %630 = vector.broadcast %629 : i32 to vector<1x128xi32>
    %631 = arith.cmpi eq, %577, %630 : vector<1x128xi32>
    %632 = arith.extui %631 : vector<1x128xi1> to vector<1x128xi32>
    %633 = arith.sitofp %632 : vector<1x128xi32> to vector<1x128xf32>
    %634 = arith.addf %627, %633 : vector<1x128xf32>
    %c8_i32_189 = arith.constant 8 : i32
    %635 = arith.index_cast %c8_i32_189 : i32 to index
    %c0_190 = arith.constant 0 : index
    %636 = memref.load %arg3[%635, %c0_190] : memref<12x8xi32, #tpu.memory_space<smem>>
    %637 = vector.broadcast %636 : i32 to vector<1x128xi32>
    %638 = arith.cmpi eq, %577, %637 : vector<1x128xi32>
    %639 = arith.extui %638 : vector<1x128xi1> to vector<1x128xi32>
    %640 = arith.sitofp %639 : vector<1x128xi32> to vector<1x128xf32>
    %641 = arith.addf %634, %640 : vector<1x128xf32>
    %c9_i32_191 = arith.constant 9 : i32
    %642 = arith.index_cast %c9_i32_191 : i32 to index
    %c0_192 = arith.constant 0 : index
    %643 = memref.load %arg3[%642, %c0_192] : memref<12x8xi32, #tpu.memory_space<smem>>
    %644 = vector.broadcast %643 : i32 to vector<1x128xi32>
    %645 = arith.cmpi eq, %577, %644 : vector<1x128xi32>
    %646 = arith.extui %645 : vector<1x128xi1> to vector<1x128xi32>
    %647 = arith.sitofp %646 : vector<1x128xi32> to vector<1x128xf32>
    %648 = arith.addf %641, %647 : vector<1x128xf32>
    %c10_i32_193 = arith.constant 10 : i32
    %649 = arith.index_cast %c10_i32_193 : i32 to index
    %c0_194 = arith.constant 0 : index
    %650 = memref.load %arg3[%649, %c0_194] : memref<12x8xi32, #tpu.memory_space<smem>>
    %651 = vector.broadcast %650 : i32 to vector<1x128xi32>
    %652 = arith.cmpi eq, %577, %651 : vector<1x128xi32>
    %653 = arith.extui %652 : vector<1x128xi1> to vector<1x128xi32>
    %654 = arith.sitofp %653 : vector<1x128xi32> to vector<1x128xf32>
    %655 = arith.addf %648, %654 : vector<1x128xf32>
    %c11_i32 = arith.constant 11 : i32
    %656 = arith.index_cast %c11_i32 : i32 to index
    %c0_195 = arith.constant 0 : index
    %657 = memref.load %arg3[%656, %c0_195] : memref<12x8xi32, #tpu.memory_space<smem>>
    %658 = vector.broadcast %657 : i32 to vector<1x128xi32>
    %659 = arith.cmpi eq, %577, %658 : vector<1x128xi32>
    %660 = arith.extui %659 : vector<1x128xi1> to vector<1x128xi32>
    %661 = arith.sitofp %660 : vector<1x128xi32> to vector<1x128xf32>
    %662 = arith.addf %655, %661 : vector<1x128xf32>
    %c12_i32 = arith.constant 12 : i32
    %c0_196 = arith.constant 0 : index
    %c0_197 = arith.constant 0 : index
    %663 = vector.load %arg8[%c0_196, %c0_197] : memref<8x128xf32, #tpu.memory_space<vmem>>, vector<1x128xf32>
    tpu.vector_store %arg8[%c0_196, %c0_197], %662 {strides = array<i32>} : memref<8x128xf32, #tpu.memory_space<vmem>>, vector<1x128xf32>,
    %cst_198 = arith.constant 0.000000e+00 : f32
    %664 = vector.broadcast %cst_198 : f32 to vector<1x128xf32>
    %c0_i32_199 = arith.constant 0 : i32
    %665 = arith.index_cast %c0_i32_199 : i32 to index
    %c1_200 = arith.constant 1 : index
    %666 = memref.load %arg3[%665, %c1_200] : memref<12x8xi32, #tpu.memory_space<smem>>
    %667 = vector.broadcast %666 : i32 to vector<1x128xi32>
    %668 = arith.cmpi eq, %577, %667 : vector<1x128xi32>
    %669 = arith.extui %668 : vector<1x128xi1> to vector<1x128xi32>
    %670 = arith.sitofp %669 : vector<1x128xi32> to vector<1x128xf32>
    %671 = arith.addf %664, %670 : vector<1x128xf32>
    %c1_i32_201 = arith.constant 1 : i32
    %672 = arith.index_cast %c1_i32_201 : i32 to index
    %c1_202 = arith.constant 1 : index
    %673 = memref.load %arg3[%672, %c1_202] : memref<12x8xi32, #tpu.memory_space<smem>>
    %674 = vector.broadcast %673 : i32 to vector<1x128xi32>
    %675 = arith.cmpi eq, %577, %674 : vector<1x128xi32>
    %676 = arith.extui %675 : vector<1x128xi1> to vector<1x128xi32>
    %677 = arith.sitofp %676 : vector<1x128xi32> to vector<1x128xf32>
    %678 = arith.addf %671, %677 : vector<1x128xf32>
    %c2_i32_203 = arith.constant 2 : i32
    %679 = arith.index_cast %c2_i32_203 : i32 to index
    %c1_204 = arith.constant 1 : index
    %680 = memref.load %arg3[%679, %c1_204] : memref<12x8xi32, #tpu.memory_space<smem>>
    %681 = vector.broadcast %680 : i32 to vector<1x128xi32>
    %682 = arith.cmpi eq, %577, %681 : vector<1x128xi32>
    %683 = arith.extui %682 : vector<1x128xi1> to vector<1x128xi32>
    %684 = arith.sitofp %683 : vector<1x128xi32> to vector<1x128xf32>
    %685 = arith.addf %678, %684 : vector<1x128xf32>
    %c3_i32_205 = arith.constant 3 : i32
    %686 = arith.index_cast %c3_i32_205 : i32 to index
    %c1_206 = arith.constant 1 : index
    %687 = memref.load %arg3[%686, %c1_206] : memref<12x8xi32, #tpu.memory_space<smem>>
    %688 = vector.broadcast %687 : i32 to vector<1x128xi32>
    %689 = arith.cmpi eq, %577, %688 : vector<1x128xi32>
    %690 = arith.extui %689 : vector<1x128xi1> to vector<1x128xi32>
    %691 = arith.sitofp %690 : vector<1x128xi32> to vector<1x128xf32>
    %692 = arith.addf %685, %691 : vector<1x128xf32>
    %c4_i32_207 = arith.constant 4 : i32
    %693 = arith.index_cast %c4_i32_207 : i32 to index
    %c1_208 = arith.constant 1 : index
    %694 = memref.load %arg3[%693, %c1_208] : memref<12x8xi32, #tpu.memory_space<smem>>
    %695 = vector.broadcast %694 : i32 to vector<1x128xi32>
    %696 = arith.cmpi eq, %577, %695 : vector<1x128xi32>
    %697 = arith.extui %696 : vector<1x128xi1> to vector<1x128xi32>
    %698 = arith.sitofp %697 : vector<1x128xi32> to vector<1x128xf32>
    %699 = arith.addf %692, %698 : vector<1x128xf32>
    %c5_i32_209 = arith.constant 5 : i32
    %700 = arith.index_cast %c5_i32_209 : i32 to index
    %c1_210 = arith.constant 1 : index
    %701 = memref.load %arg3[%700, %c1_210] : memref<12x8xi32, #tpu.memory_space<smem>>
    %702 = vector.broadcast %701 : i32 to vector<1x128xi32>
    %703 = arith.cmpi eq, %577, %702 : vector<1x128xi32>
    %704 = arith.extui %703 : vector<1x128xi1> to vector<1x128xi32>
    %705 = arith.sitofp %704 : vector<1x128xi32> to vector<1x128xf32>
    %706 = arith.addf %699, %705 : vector<1x128xf32>
    %c6_i32_211 = arith.constant 6 : i32
    %707 = arith.index_cast %c6_i32_211 : i32 to index
    %c1_212 = arith.constant 1 : index
    %708 = memref.load %arg3[%707, %c1_212] : memref<12x8xi32, #tpu.memory_space<smem>>
    %709 = vector.broadcast %708 : i32 to vector<1x128xi32>
    %710 = arith.cmpi eq, %577, %709 : vector<1x128xi32>
    %711 = arith.extui %710 : vector<1x128xi1> to vector<1x128xi32>
    %712 = arith.sitofp %711 : vector<1x128xi32> to vector<1x128xf32>
    %713 = arith.addf %706, %712 : vector<1x128xf32>
    %c7_i32_213 = arith.constant 7 : i32
    %714 = arith.index_cast %c7_i32_213 : i32 to index
    %c1_214 = arith.constant 1 : index
    %715 = memref.load %arg3[%714, %c1_214] : memref<12x8xi32, #tpu.memory_space<smem>>
    %716 = vector.broadcast %715 : i32 to vector<1x128xi32>
    %717 = arith.cmpi eq, %577, %716 : vector<1x128xi32>
    %718 = arith.extui %717 : vector<1x128xi1> to vector<1x128xi32>
    %719 = arith.sitofp %718 : vector<1x128xi32> to vector<1x128xf32>
    %720 = arith.addf %713, %719 : vector<1x128xf32>
    %c8_i32_215 = arith.constant 8 : i32
    %721 = arith.index_cast %c8_i32_215 : i32 to index
    %c1_216 = arith.constant 1 : index
    %722 = memref.load %arg3[%721, %c1_216] : memref<12x8xi32, #tpu.memory_space<smem>>
    %723 = vector.broadcast %722 : i32 to vector<1x128xi32>
    %724 = arith.cmpi eq, %577, %723 : vector<1x128xi32>
    %725 = arith.extui %724 : vector<1x128xi1> to vector<1x128xi32>
    %726 = arith.sitofp %725 : vector<1x128xi32> to vector<1x128xf32>
    %727 = arith.addf %720, %726 : vector<1x128xf32>
    %c9_i32_217 = arith.constant 9 : i32
    %728 = arith.index_cast %c9_i32_217 : i32 to index
    %c1_218 = arith.constant 1 : index
    %729 = memref.load %arg3[%728, %c1_218] : memref<12x8xi32, #tpu.memory_space<smem>>
    %730 = vector.broadcast %729 : i32 to vector<1x128xi32>
    %731 = arith.cmpi eq, %577, %730 : vector<1x128xi32>
    %732 = arith.extui %731 : vector<1x128xi1> to vector<1x128xi32>
    %733 = arith.sitofp %732 : vector<1x128xi32> to vector<1x128xf32>
    %734 = arith.addf %727, %733 : vector<1x128xf32>
    %c10_i32_219 = arith.constant 10 : i32
    %735 = arith.index_cast %c10_i32_219 : i32 to index
    %c1_220 = arith.constant 1 : index
    %736 = memref.load %arg3[%735, %c1_220] : memref<12x8xi32, #tpu.memory_space<smem>>
    %737 = vector.broadcast %736 : i32 to vector<1x128xi32>
    %738 = arith.cmpi eq, %577, %737 : vector<1x128xi32>
    %739 = arith.extui %738 : vector<1x128xi1> to vector<1x128xi32>
    %740 = arith.sitofp %739 : vector<1x128xi32> to vector<1x128xf32>
    %741 = arith.addf %734, %740 : vector<1x128xf32>
    %c11_i32_221 = arith.constant 11 : i32
    %742 = arith.index_cast %c11_i32_221 : i32 to index
    %c1_222 = arith.constant 1 : index
    %743 = memref.load %arg3[%742, %c1_222] : memref<12x8xi32, #tpu.memory_space<smem>>
    %744 = vector.broadcast %743 : i32 to vector<1x128xi32>
    %745 = arith.cmpi eq, %577, %744 : vector<1x128xi32>
    %746 = arith.extui %745 : vector<1x128xi1> to vector<1x128xi32>
    %747 = arith.sitofp %746 : vector<1x128xi32> to vector<1x128xf32>
    %748 = arith.addf %741, %747 : vector<1x128xf32>
    %c12_i32_223 = arith.constant 12 : i32
    %c1_224 = arith.constant 1 : index
    %c0_225 = arith.constant 0 : index
    %749 = vector.load %arg8[%c1_224, %c0_225] : memref<8x128xf32, #tpu.memory_space<vmem>>, vector<1x128xf32>
    tpu.vector_store %arg8[%c1_224, %c0_225], %748 {strides = array<i32>} : memref<8x128xf32, #tpu.memory_space<vmem>>, vector<1x128xf32>,
    %cst_226 = arith.constant 0.000000e+00 : f32
    %750 = vector.broadcast %cst_226 : f32 to vector<1x128xf32>
    %c0_i32_227 = arith.constant 0 : i32
    %751 = arith.index_cast %c0_i32_227 : i32 to index
    %c2_228 = arith.constant 2 : index
    %752 = memref.load %arg3[%751, %c2_228] : memref<12x8xi32, #tpu.memory_space<smem>>
    %753 = vector.broadcast %752 : i32 to vector<1x128xi32>
    %754 = arith.cmpi eq, %577, %753 : vector<1x128xi32>
    %755 = arith.extui %754 : vector<1x128xi1> to vector<1x128xi32>
    %756 = arith.sitofp %755 : vector<1x128xi32> to vector<1x128xf32>
    %757 = arith.addf %750, %756 : vector<1x128xf32>
    %c1_i32_229 = arith.constant 1 : i32
    %758 = arith.index_cast %c1_i32_229 : i32 to index
    %c2_230 = arith.constant 2 : index
    %759 = memref.load %arg3[%758, %c2_230] : memref<12x8xi32, #tpu.memory_space<smem>>
    %760 = vector.broadcast %759 : i32 to vector<1x128xi32>
    %761 = arith.cmpi eq, %577, %760 : vector<1x128xi32>
    %762 = arith.extui %761 : vector<1x128xi1> to vector<1x128xi32>
    %763 = arith.sitofp %762 : vector<1x128xi32> to vector<1x128xf32>
    %764 = arith.addf %757, %763 : vector<1x128xf32>
    %c2_i32_231 = arith.constant 2 : i32
    %765 = arith.index_cast %c2_i32_231 : i32 to index
    %c2_232 = arith.constant 2 : index
    %766 = memref.load %arg3[%765, %c2_232] : memref<12x8xi32, #tpu.memory_space<smem>>
    %767 = vector.broadcast %766 : i32 to vector<1x128xi32>
    %768 = arith.cmpi eq, %577, %767 : vector<1x128xi32>
    %769 = arith.extui %768 : vector<1x128xi1> to vector<1x128xi32>
    %770 = arith.sitofp %769 : vector<1x128xi32> to vector<1x128xf32>
    %771 = arith.addf %764, %770 : vector<1x128xf32>
    %c3_i32_233 = arith.constant 3 : i32
    %772 = arith.index_cast %c3_i32_233 : i32 to index
    %c2_234 = arith.constant 2 : index
    %773 = memref.load %arg3[%772, %c2_234] : memref<12x8xi32, #tpu.memory_space<smem>>
    %774 = vector.broadcast %773 : i32 to vector<1x128xi32>
    %775 = arith.cmpi eq, %577, %774 : vector<1x128xi32>
    %776 = arith.extui %775 : vector<1x128xi1> to vector<1x128xi32>
    %777 = arith.sitofp %776 : vector<1x128xi32> to vector<1x128xf32>
    %778 = arith.addf %771, %777 : vector<1x128xf32>
    %c4_i32_235 = arith.constant 4 : i32
    %779 = arith.index_cast %c4_i32_235 : i32 to index
    %c2_236 = arith.constant 2 : index
    %780 = memref.load %arg3[%779, %c2_236] : memref<12x8xi32, #tpu.memory_space<smem>>
    %781 = vector.broadcast %780 : i32 to vector<1x128xi32>
    %782 = arith.cmpi eq, %577, %781 : vector<1x128xi32>
    %783 = arith.extui %782 : vector<1x128xi1> to vector<1x128xi32>
    %784 = arith.sitofp %783 : vector<1x128xi32> to vector<1x128xf32>
    %785 = arith.addf %778, %784 : vector<1x128xf32>
    %c5_i32_237 = arith.constant 5 : i32
    %786 = arith.index_cast %c5_i32_237 : i32 to index
    %c2_238 = arith.constant 2 : index
    %787 = memref.load %arg3[%786, %c2_238] : memref<12x8xi32, #tpu.memory_space<smem>>
    %788 = vector.broadcast %787 : i32 to vector<1x128xi32>
    %789 = arith.cmpi eq, %577, %788 : vector<1x128xi32>
    %790 = arith.extui %789 : vector<1x128xi1> to vector<1x128xi32>
    %791 = arith.sitofp %790 : vector<1x128xi32> to vector<1x128xf32>
    %792 = arith.addf %785, %791 : vector<1x128xf32>
    %c6_i32_239 = arith.constant 6 : i32
    %793 = arith.index_cast %c6_i32_239 : i32 to index
    %c2_240 = arith.constant 2 : index
    %794 = memref.load %arg3[%793, %c2_240] : memref<12x8xi32, #tpu.memory_space<smem>>
    %795 = vector.broadcast %794 : i32 to vector<1x128xi32>
    %796 = arith.cmpi eq, %577, %795 : vector<1x128xi32>
    %797 = arith.extui %796 : vector<1x128xi1> to vector<1x128xi32>
    %798 = arith.sitofp %797 : vector<1x128xi32> to vector<1x128xf32>
    %799 = arith.addf %792, %798 : vector<1x128xf32>
    %c7_i32_241 = arith.constant 7 : i32
    %800 = arith.index_cast %c7_i32_241 : i32 to index
    %c2_242 = arith.constant 2 : index
    %801 = memref.load %arg3[%800, %c2_242] : memref<12x8xi32, #tpu.memory_space<smem>>
    %802 = vector.broadcast %801 : i32 to vector<1x128xi32>
    %803 = arith.cmpi eq, %577, %802 : vector<1x128xi32>
    %804 = arith.extui %803 : vector<1x128xi1> to vector<1x128xi32>
    %805 = arith.sitofp %804 : vector<1x128xi32> to vector<1x128xf32>
    %806 = arith.addf %799, %805 : vector<1x128xf32>
    %c8_i32_243 = arith.constant 8 : i32
    %807 = arith.index_cast %c8_i32_243 : i32 to index
    %c2_244 = arith.constant 2 : index
    %808 = memref.load %arg3[%807, %c2_244] : memref<12x8xi32, #tpu.memory_space<smem>>
    %809 = vector.broadcast %808 : i32 to vector<1x128xi32>
    %810 = arith.cmpi eq, %577, %809 : vector<1x128xi32>
    %811 = arith.extui %810 : vector<1x128xi1> to vector<1x128xi32>
    %812 = arith.sitofp %811 : vector<1x128xi32> to vector<1x128xf32>
    %813 = arith.addf %806, %812 : vector<1x128xf32>
    %c9_i32_245 = arith.constant 9 : i32
    %814 = arith.index_cast %c9_i32_245 : i32 to index
    %c2_246 = arith.constant 2 : index
    %815 = memref.load %arg3[%814, %c2_246] : memref<12x8xi32, #tpu.memory_space<smem>>
    %816 = vector.broadcast %815 : i32 to vector<1x128xi32>
    %817 = arith.cmpi eq, %577, %816 : vector<1x128xi32>
    %818 = arith.extui %817 : vector<1x128xi1> to vector<1x128xi32>
    %819 = arith.sitofp %818 : vector<1x128xi32> to vector<1x128xf32>
    %820 = arith.addf %813, %819 : vector<1x128xf32>
    %c10_i32_247 = arith.constant 10 : i32
    %821 = arith.index_cast %c10_i32_247 : i32 to index
    %c2_248 = arith.constant 2 : index
    %822 = memref.load %arg3[%821, %c2_248] : memref<12x8xi32, #tpu.memory_space<smem>>
    %823 = vector.broadcast %822 : i32 to vector<1x128xi32>
    %824 = arith.cmpi eq, %577, %823 : vector<1x128xi32>
    %825 = arith.extui %824 : vector<1x128xi1> to vector<1x128xi32>
    %826 = arith.sitofp %825 : vector<1x128xi32> to vector<1x128xf32>
    %827 = arith.addf %820, %826 : vector<1x128xf32>
    %c11_i32_249 = arith.constant 11 : i32
    %828 = arith.index_cast %c11_i32_249 : i32 to index
    %c2_250 = arith.constant 2 : index
    %829 = memref.load %arg3[%828, %c2_250] : memref<12x8xi32, #tpu.memory_space<smem>>
    %830 = vector.broadcast %829 : i32 to vector<1x128xi32>
    %831 = arith.cmpi eq, %577, %830 : vector<1x128xi32>
    %832 = arith.extui %831 : vector<1x128xi1> to vector<1x128xi32>
    %833 = arith.sitofp %832 : vector<1x128xi32> to vector<1x128xf32>
    %834 = arith.addf %827, %833 : vector<1x128xf32>
    %c12_i32_251 = arith.constant 12 : i32
    %c2_252 = arith.constant 2 : index
    %c0_253 = arith.constant 0 : index
    %835 = vector.load %arg8[%c2_252, %c0_253] : memref<8x128xf32, #tpu.memory_space<vmem>>, vector<1x128xf32>
    tpu.vector_store %arg8[%c2_252, %c0_253], %834 {strides = array<i32>} : memref<8x128xf32, #tpu.memory_space<vmem>>, vector<1x128xf32>,
    %cst_254 = arith.constant 0.000000e+00 : f32
    %836 = vector.broadcast %cst_254 : f32 to vector<1x128xf32>
    %c0_i32_255 = arith.constant 0 : i32
    %837 = arith.index_cast %c0_i32_255 : i32 to index
    %c3_256 = arith.constant 3 : index
    %838 = memref.load %arg3[%837, %c3_256] : memref<12x8xi32, #tpu.memory_space<smem>>
    %839 = vector.broadcast %838 : i32 to vector<1x128xi32>
    %840 = arith.cmpi eq, %577, %839 : vector<1x128xi32>
    %841 = arith.extui %840 : vector<1x128xi1> to vector<1x128xi32>
    %842 = arith.sitofp %841 : vector<1x128xi32> to vector<1x128xf32>
    %843 = arith.addf %836, %842 : vector<1x128xf32>
    %c1_i32_257 = arith.constant 1 : i32
    %844 = arith.index_cast %c1_i32_257 : i32 to index
    %c3_258 = arith.constant 3 : index
    %845 = memref.load %arg3[%844, %c3_258] : memref<12x8xi32, #tpu.memory_space<smem>>
    %846 = vector.broadcast %845 : i32 to vector<1x128xi32>
    %847 = arith.cmpi eq, %577, %846 : vector<1x128xi32>
    %848 = arith.extui %847 : vector<1x128xi1> to vector<1x128xi32>
    %849 = arith.sitofp %848 : vector<1x128xi32> to vector<1x128xf32>
    %850 = arith.addf %843, %849 : vector<1x128xf32>
    %c2_i32_259 = arith.constant 2 : i32
    %851 = arith.index_cast %c2_i32_259 : i32 to index
    %c3_260 = arith.constant 3 : index
    %852 = memref.load %arg3[%851, %c3_260] : memref<12x8xi32, #tpu.memory_space<smem>>
    %853 = vector.broadcast %852 : i32 to vector<1x128xi32>
    %854 = arith.cmpi eq, %577, %853 : vector<1x128xi32>
    %855 = arith.extui %854 : vector<1x128xi1> to vector<1x128xi32>
    %856 = arith.sitofp %855 : vector<1x128xi32> to vector<1x128xf32>
    %857 = arith.addf %850, %856 : vector<1x128xf32>
    %c3_i32_261 = arith.constant 3 : i32
    %858 = arith.index_cast %c3_i32_261 : i32 to index
    %c3_262 = arith.constant 3 : index
    %859 = memref.load %arg3[%858, %c3_262] : memref<12x8xi32, #tpu.memory_space<smem>>
    %860 = vector.broadcast %859 : i32 to vector<1x128xi32>
    %861 = arith.cmpi eq, %577, %860 : vector<1x128xi32>
    %862 = arith.extui %861 : vector<1x128xi1> to vector<1x128xi32>
    %863 = arith.sitofp %862 : vector<1x128xi32> to vector<1x128xf32>
    %864 = arith.addf %857, %863 : vector<1x128xf32>
    %c4_i32_263 = arith.constant 4 : i32
    %865 = arith.index_cast %c4_i32_263 : i32 to index
    %c3_264 = arith.constant 3 : index
    %866 = memref.load %arg3[%865, %c3_264] : memref<12x8xi32, #tpu.memory_space<smem>>
    %867 = vector.broadcast %866 : i32 to vector<1x128xi32>
    %868 = arith.cmpi eq, %577, %867 : vector<1x128xi32>
    %869 = arith.extui %868 : vector<1x128xi1> to vector<1x128xi32>
    %870 = arith.sitofp %869 : vector<1x128xi32> to vector<1x128xf32>
    %871 = arith.addf %864, %870 : vector<1x128xf32>
    %c5_i32_265 = arith.constant 5 : i32
    %872 = arith.index_cast %c5_i32_265 : i32 to index
    %c3_266 = arith.constant 3 : index
    %873 = memref.load %arg3[%872, %c3_266] : memref<12x8xi32, #tpu.memory_space<smem>>
    %874 = vector.broadcast %873 : i32 to vector<1x128xi32>
    %875 = arith.cmpi eq, %577, %874 : vector<1x128xi32>
    %876 = arith.extui %875 : vector<1x128xi1> to vector<1x128xi32>
    %877 = arith.sitofp %876 : vector<1x128xi32> to vector<1x128xf32>
    %878 = arith.addf %871, %877 : vector<1x128xf32>
    %c6_i32_267 = arith.constant 6 : i32
    %879 = arith.index_cast %c6_i32_267 : i32 to index
    %c3_268 = arith.constant 3 : index
    %880 = memref.load %arg3[%879, %c3_268] : memref<12x8xi32, #tpu.memory_space<smem>>
    %881 = vector.broadcast %880 : i32 to vector<1x128xi32>
    %882 = arith.cmpi eq, %577, %881 : vector<1x128xi32>
    %883 = arith.extui %882 : vector<1x128xi1> to vector<1x128xi32>
    %884 = arith.sitofp %883 : vector<1x128xi32> to vector<1x128xf32>
    %885 = arith.addf %878, %884 : vector<1x128xf32>
    %c7_i32_269 = arith.constant 7 : i32
    %886 = arith.index_cast %c7_i32_269 : i32 to index
    %c3_270 = arith.constant 3 : index
    %887 = memref.load %arg3[%886, %c3_270] : memref<12x8xi32, #tpu.memory_space<smem>>
    %888 = vector.broadcast %887 : i32 to vector<1x128xi32>
    %889 = arith.cmpi eq, %577, %888 : vector<1x128xi32>
    %890 = arith.extui %889 : vector<1x128xi1> to vector<1x128xi32>
    %891 = arith.sitofp %890 : vector<1x128xi32> to vector<1x128xf32>
    %892 = arith.addf %885, %891 : vector<1x128xf32>
    %c8_i32_271 = arith.constant 8 : i32
    %893 = arith.index_cast %c8_i32_271 : i32 to index
    %c3_272 = arith.constant 3 : index
    %894 = memref.load %arg3[%893, %c3_272] : memref<12x8xi32, #tpu.memory_space<smem>>
    %895 = vector.broadcast %894 : i32 to vector<1x128xi32>
    %896 = arith.cmpi eq, %577, %895 : vector<1x128xi32>
    %897 = arith.extui %896 : vector<1x128xi1> to vector<1x128xi32>
    %898 = arith.sitofp %897 : vector<1x128xi32> to vector<1x128xf32>
    %899 = arith.addf %892, %898 : vector<1x128xf32>
    %c9_i32_273 = arith.constant 9 : i32
    %900 = arith.index_cast %c9_i32_273 : i32 to index
    %c3_274 = arith.constant 3 : index
    %901 = memref.load %arg3[%900, %c3_274] : memref<12x8xi32, #tpu.memory_space<smem>>
    %902 = vector.broadcast %901 : i32 to vector<1x128xi32>
    %903 = arith.cmpi eq, %577, %902 : vector<1x128xi32>
    %904 = arith.extui %903 : vector<1x128xi1> to vector<1x128xi32>
    %905 = arith.sitofp %904 : vector<1x128xi32> to vector<1x128xf32>
    %906 = arith.addf %899, %905 : vector<1x128xf32>
    %c10_i32_275 = arith.constant 10 : i32
    %907 = arith.index_cast %c10_i32_275 : i32 to index
    %c3_276 = arith.constant 3 : index
    %908 = memref.load %arg3[%907, %c3_276] : memref<12x8xi32, #tpu.memory_space<smem>>
    %909 = vector.broadcast %908 : i32 to vector<1x128xi32>
    %910 = arith.cmpi eq, %577, %909 : vector<1x128xi32>
    %911 = arith.extui %910 : vector<1x128xi1> to vector<1x128xi32>
    %912 = arith.sitofp %911 : vector<1x128xi32> to vector<1x128xf32>
    %913 = arith.addf %906, %912 : vector<1x128xf32>
    %c11_i32_277 = arith.constant 11 : i32
    %914 = arith.index_cast %c11_i32_277 : i32 to index
    %c3_278 = arith.constant 3 : index
    %915 = memref.load %arg3[%914, %c3_278] : memref<12x8xi32, #tpu.memory_space<smem>>
    %916 = vector.broadcast %915 : i32 to vector<1x128xi32>
    %917 = arith.cmpi eq, %577, %916 : vector<1x128xi32>
    %918 = arith.extui %917 : vector<1x128xi1> to vector<1x128xi32>
    %919 = arith.sitofp %918 : vector<1x128xi32> to vector<1x128xf32>
    %920 = arith.addf %913, %919 : vector<1x128xf32>
    %c12_i32_279 = arith.constant 12 : i32
    %c3_280 = arith.constant 3 : index
    %c0_281 = arith.constant 0 : index
    %921 = vector.load %arg8[%c3_280, %c0_281] : memref<8x128xf32, #tpu.memory_space<vmem>>, vector<1x128xf32>
    tpu.vector_store %arg8[%c3_280, %c0_281], %920 {strides = array<i32>} : memref<8x128xf32, #tpu.memory_space<vmem>>, vector<1x128xf32>,
    %cst_282 = arith.constant 0.000000e+00 : f32
    %922 = vector.broadcast %cst_282 : f32 to vector<1x128xf32>
    %c0_i32_283 = arith.constant 0 : i32
    %923 = arith.index_cast %c0_i32_283 : i32 to index
    %c4_284 = arith.constant 4 : index
    %924 = memref.load %arg3[%923, %c4_284] : memref<12x8xi32, #tpu.memory_space<smem>>
    %925 = vector.broadcast %924 : i32 to vector<1x128xi32>
    %926 = arith.cmpi eq, %577, %925 : vector<1x128xi32>
    %927 = arith.extui %926 : vector<1x128xi1> to vector<1x128xi32>
    %928 = arith.sitofp %927 : vector<1x128xi32> to vector<1x128xf32>
    %929 = arith.addf %922, %928 : vector<1x128xf32>
    %c1_i32_285 = arith.constant 1 : i32
    %930 = arith.index_cast %c1_i32_285 : i32 to index
    %c4_286 = arith.constant 4 : index
    %931 = memref.load %arg3[%930, %c4_286] : memref<12x8xi32, #tpu.memory_space<smem>>
    %932 = vector.broadcast %931 : i32 to vector<1x128xi32>
    %933 = arith.cmpi eq, %577, %932 : vector<1x128xi32>
    %934 = arith.extui %933 : vector<1x128xi1> to vector<1x128xi32>
    %935 = arith.sitofp %934 : vector<1x128xi32> to vector<1x128xf32>
    %936 = arith.addf %929, %935 : vector<1x128xf32>
    %c2_i32_287 = arith.constant 2 : i32
    %937 = arith.index_cast %c2_i32_287 : i32 to index
    %c4_288 = arith.constant 4 : index
    %938 = memref.load %arg3[%937, %c4_288] : memref<12x8xi32, #tpu.memory_space<smem>>
    %939 = vector.broadcast %938 : i32 to vector<1x128xi32>
    %940 = arith.cmpi eq, %577, %939 : vector<1x128xi32>
    %941 = arith.extui %940 : vector<1x128xi1> to vector<1x128xi32>
    %942 = arith.sitofp %941 : vector<1x128xi32> to vector<1x128xf32>
    %943 = arith.addf %936, %942 : vector<1x128xf32>
    %c3_i32_289 = arith.constant 3 : i32
    %944 = arith.index_cast %c3_i32_289 : i32 to index
    %c4_290 = arith.constant 4 : index
    %945 = memref.load %arg3[%944, %c4_290] : memref<12x8xi32, #tpu.memory_space<smem>>
    %946 = vector.broadcast %945 : i32 to vector<1x128xi32>
    %947 = arith.cmpi eq, %577, %946 : vector<1x128xi32>
    %948 = arith.extui %947 : vector<1x128xi1> to vector<1x128xi32>
    %949 = arith.sitofp %948 : vector<1x128xi32> to vector<1x128xf32>
    %950 = arith.addf %943, %949 : vector<1x128xf32>
    %c4_i32_291 = arith.constant 4 : i32
    %951 = arith.index_cast %c4_i32_291 : i32 to index
    %c4_292 = arith.constant 4 : index
    %952 = memref.load %arg3[%951, %c4_292] : memref<12x8xi32, #tpu.memory_space<smem>>
    %953 = vector.broadcast %952 : i32 to vector<1x128xi32>
    %954 = arith.cmpi eq, %577, %953 : vector<1x128xi32>
    %955 = arith.extui %954 : vector<1x128xi1> to vector<1x128xi32>
    %956 = arith.sitofp %955 : vector<1x128xi32> to vector<1x128xf32>
    %957 = arith.addf %950, %956 : vector<1x128xf32>
    %c5_i32_293 = arith.constant 5 : i32
    %958 = arith.index_cast %c5_i32_293 : i32 to index
    %c4_294 = arith.constant 4 : index
    %959 = memref.load %arg3[%958, %c4_294] : memref<12x8xi32, #tpu.memory_space<smem>>
    %960 = vector.broadcast %959 : i32 to vector<1x128xi32>
    %961 = arith.cmpi eq, %577, %960 : vector<1x128xi32>
    %962 = arith.extui %961 : vector<1x128xi1> to vector<1x128xi32>
    %963 = arith.sitofp %962 : vector<1x128xi32> to vector<1x128xf32>
    %964 = arith.addf %957, %963 : vector<1x128xf32>
    %c6_i32_295 = arith.constant 6 : i32
    %965 = arith.index_cast %c6_i32_295 : i32 to index
    %c4_296 = arith.constant 4 : index
    %966 = memref.load %arg3[%965, %c4_296] : memref<12x8xi32, #tpu.memory_space<smem>>
    %967 = vector.broadcast %966 : i32 to vector<1x128xi32>
    %968 = arith.cmpi eq, %577, %967 : vector<1x128xi32>
    %969 = arith.extui %968 : vector<1x128xi1> to vector<1x128xi32>
    %970 = arith.sitofp %969 : vector<1x128xi32> to vector<1x128xf32>
    %971 = arith.addf %964, %970 : vector<1x128xf32>
    %c7_i32_297 = arith.constant 7 : i32
    %972 = arith.index_cast %c7_i32_297 : i32 to index
    %c4_298 = arith.constant 4 : index
    %973 = memref.load %arg3[%972, %c4_298] : memref<12x8xi32, #tpu.memory_space<smem>>
    %974 = vector.broadcast %973 : i32 to vector<1x128xi32>
    %975 = arith.cmpi eq, %577, %974 : vector<1x128xi32>
    %976 = arith.extui %975 : vector<1x128xi1> to vector<1x128xi32>
    %977 = arith.sitofp %976 : vector<1x128xi32> to vector<1x128xf32>
    %978 = arith.addf %971, %977 : vector<1x128xf32>
    %c8_i32_299 = arith.constant 8 : i32
    %979 = arith.index_cast %c8_i32_299 : i32 to index
    %c4_300 = arith.constant 4 : index
    %980 = memref.load %arg3[%979, %c4_300] : memref<12x8xi32, #tpu.memory_space<smem>>
    %981 = vector.broadcast %980 : i32 to vector<1x128xi32>
    %982 = arith.cmpi eq, %577, %981 : vector<1x128xi32>
    %983 = arith.extui %982 : vector<1x128xi1> to vector<1x128xi32>
    %984 = arith.sitofp %983 : vector<1x128xi32> to vector<1x128xf32>
    %985 = arith.addf %978, %984 : vector<1x128xf32>
    %c9_i32_301 = arith.constant 9 : i32
    %986 = arith.index_cast %c9_i32_301 : i32 to index
    %c4_302 = arith.constant 4 : index
    %987 = memref.load %arg3[%986, %c4_302] : memref<12x8xi32, #tpu.memory_space<smem>>
    %988 = vector.broadcast %987 : i32 to vector<1x128xi32>
    %989 = arith.cmpi eq, %577, %988 : vector<1x128xi32>
    %990 = arith.extui %989 : vector<1x128xi1> to vector<1x128xi32>
    %991 = arith.sitofp %990 : vector<1x128xi32> to vector<1x128xf32>
    %992 = arith.addf %985, %991 : vector<1x128xf32>
    %c10_i32_303 = arith.constant 10 : i32
    %993 = arith.index_cast %c10_i32_303 : i32 to index
    %c4_304 = arith.constant 4 : index
    %994 = memref.load %arg3[%993, %c4_304] : memref<12x8xi32, #tpu.memory_space<smem>>
    %995 = vector.broadcast %994 : i32 to vector<1x128xi32>
    %996 = arith.cmpi eq, %577, %995 : vector<1x128xi32>
    %997 = arith.extui %996 : vector<1x128xi1> to vector<1x128xi32>
    %998 = arith.sitofp %997 : vector<1x128xi32> to vector<1x128xf32>
    %999 = arith.addf %992, %998 : vector<1x128xf32>
    %c11_i32_305 = arith.constant 11 : i32
    %1000 = arith.index_cast %c11_i32_305 : i32 to index
    %c4_306 = arith.constant 4 : index
    %1001 = memref.load %arg3[%1000, %c4_306] : memref<12x8xi32, #tpu.memory_space<smem>>
    %1002 = vector.broadcast %1001 : i32 to vector<1x128xi32>
    %1003 = arith.cmpi eq, %577, %1002 : vector<1x128xi32>
    %1004 = arith.extui %1003 : vector<1x128xi1> to vector<1x128xi32>
    %1005 = arith.sitofp %1004 : vector<1x128xi32> to vector<1x128xf32>
    %1006 = arith.addf %999, %1005 : vector<1x128xf32>
    %c12_i32_307 = arith.constant 12 : i32
    %c4_308 = arith.constant 4 : index
    %c0_309 = arith.constant 0 : index
    %1007 = vector.load %arg8[%c4_308, %c0_309] : memref<8x128xf32, #tpu.memory_space<vmem>>, vector<1x128xf32>
    tpu.vector_store %arg8[%c4_308, %c0_309], %1006 {strides = array<i32>} : memref<8x128xf32, #tpu.memory_space<vmem>>, vector<1x128xf32>,
    %cst_310 = arith.constant 0.000000e+00 : f32
    %1008 = vector.broadcast %cst_310 : f32 to vector<1x128xf32>
    %c0_i32_311 = arith.constant 0 : i32
    %1009 = arith.index_cast %c0_i32_311 : i32 to index
    %c5_312 = arith.constant 5 : index
    %1010 = memref.load %arg3[%1009, %c5_312] : memref<12x8xi32, #tpu.memory_space<smem>>
    %1011 = vector.broadcast %1010 : i32 to vector<1x128xi32>
    %1012 = arith.cmpi eq, %577, %1011 : vector<1x128xi32>
    %1013 = arith.extui %1012 : vector<1x128xi1> to vector<1x128xi32>
    %1014 = arith.sitofp %1013 : vector<1x128xi32> to vector<1x128xf32>
    %1015 = arith.addf %1008, %1014 : vector<1x128xf32>
    %c1_i32_313 = arith.constant 1 : i32
    %1016 = arith.index_cast %c1_i32_313 : i32 to index
    %c5_314 = arith.constant 5 : index
    %1017 = memref.load %arg3[%1016, %c5_314] : memref<12x8xi32, #tpu.memory_space<smem>>
    %1018 = vector.broadcast %1017 : i32 to vector<1x128xi32>
    %1019 = arith.cmpi eq, %577, %1018 : vector<1x128xi32>
    %1020 = arith.extui %1019 : vector<1x128xi1> to vector<1x128xi32>
    %1021 = arith.sitofp %1020 : vector<1x128xi32> to vector<1x128xf32>
    %1022 = arith.addf %1015, %1021 : vector<1x128xf32>
    %c2_i32_315 = arith.constant 2 : i32
    %1023 = arith.index_cast %c2_i32_315 : i32 to index
    %c5_316 = arith.constant 5 : index
    %1024 = memref.load %arg3[%1023, %c5_316] : memref<12x8xi32, #tpu.memory_space<smem>>
    %1025 = vector.broadcast %1024 : i32 to vector<1x128xi32>
    %1026 = arith.cmpi eq, %577, %1025 : vector<1x128xi32>
    %1027 = arith.extui %1026 : vector<1x128xi1> to vector<1x128xi32>
    %1028 = arith.sitofp %1027 : vector<1x128xi32> to vector<1x128xf32>
    %1029 = arith.addf %1022, %1028 : vector<1x128xf32>
    %c3_i32_317 = arith.constant 3 : i32
    %1030 = arith.index_cast %c3_i32_317 : i32 to index
    %c5_318 = arith.constant 5 : index
    %1031 = memref.load %arg3[%1030, %c5_318] : memref<12x8xi32, #tpu.memory_space<smem>>
    %1032 = vector.broadcast %1031 : i32 to vector<1x128xi32>
    %1033 = arith.cmpi eq, %577, %1032 : vector<1x128xi32>
    %1034 = arith.extui %1033 : vector<1x128xi1> to vector<1x128xi32>
    %1035 = arith.sitofp %1034 : vector<1x128xi32> to vector<1x128xf32>
    %1036 = arith.addf %1029, %1035 : vector<1x128xf32>
    %c4_i32_319 = arith.constant 4 : i32
    %1037 = arith.index_cast %c4_i32_319 : i32 to index
    %c5_320 = arith.constant 5 : index
    %1038 = memref.load %arg3[%1037, %c5_320] : memref<12x8xi32, #tpu.memory_space<smem>>
    %1039 = vector.broadcast %1038 : i32 to vector<1x128xi32>
    %1040 = arith.cmpi eq, %577, %1039 : vector<1x128xi32>
    %1041 = arith.extui %1040 : vector<1x128xi1> to vector<1x128xi32>
    %1042 = arith.sitofp %1041 : vector<1x128xi32> to vector<1x128xf32>
    %1043 = arith.addf %1036, %1042 : vector<1x128xf32>
    %c5_i32_321 = arith.constant 5 : i32
    %1044 = arith.index_cast %c5_i32_321 : i32 to index
    %c5_322 = arith.constant 5 : index
    %1045 = memref.load %arg3[%1044, %c5_322] : memref<12x8xi32, #tpu.memory_space<smem>>
    %1046 = vector.broadcast %1045 : i32 to vector<1x128xi32>
    %1047 = arith.cmpi eq, %577, %1046 : vector<1x128xi32>
    %1048 = arith.extui %1047 : vector<1x128xi1> to vector<1x128xi32>
    %1049 = arith.sitofp %1048 : vector<1x128xi32> to vector<1x128xf32>
    %1050 = arith.addf %1043, %1049 : vector<1x128xf32>
    %c6_i32_323 = arith.constant 6 : i32
    %1051 = arith.index_cast %c6_i32_323 : i32 to index
    %c5_324 = arith.constant 5 : index
    %1052 = memref.load %arg3[%1051, %c5_324] : memref<12x8xi32, #tpu.memory_space<smem>>
    %1053 = vector.broadcast %1052 : i32 to vector<1x128xi32>
    %1054 = arith.cmpi eq, %577, %1053 : vector<1x128xi32>
    %1055 = arith.extui %1054 : vector<1x128xi1> to vector<1x128xi32>
    %1056 = arith.sitofp %1055 : vector<1x128xi32> to vector<1x128xf32>
    %1057 = arith.addf %1050, %1056 : vector<1x128xf32>
    %c7_i32_325 = arith.constant 7 : i32
    %1058 = arith.index_cast %c7_i32_325 : i32 to index
    %c5_326 = arith.constant 5 : index
    %1059 = memref.load %arg3[%1058, %c5_326] : memref<12x8xi32, #tpu.memory_space<smem>>
    %1060 = vector.broadcast %1059 : i32 to vector<1x128xi32>
    %1061 = arith.cmpi eq, %577, %1060 : vector<1x128xi32>
    %1062 = arith.extui %1061 : vector<1x128xi1> to vector<1x128xi32>
    %1063 = arith.sitofp %1062 : vector<1x128xi32> to vector<1x128xf32>
    %1064 = arith.addf %1057, %1063 : vector<1x128xf32>
    %c8_i32_327 = arith.constant 8 : i32
    %1065 = arith.index_cast %c8_i32_327 : i32 to index
    %c5_328 = arith.constant 5 : index
    %1066 = memref.load %arg3[%1065, %c5_328] : memref<12x8xi32, #tpu.memory_space<smem>>
    %1067 = vector.broadcast %1066 : i32 to vector<1x128xi32>
    %1068 = arith.cmpi eq, %577, %1067 : vector<1x128xi32>
    %1069 = arith.extui %1068 : vector<1x128xi1> to vector<1x128xi32>
    %1070 = arith.sitofp %1069 : vector<1x128xi32> to vector<1x128xf32>
    %1071 = arith.addf %1064, %1070 : vector<1x128xf32>
    %c9_i32_329 = arith.constant 9 : i32
    %1072 = arith.index_cast %c9_i32_329 : i32 to index
    %c5_330 = arith.constant 5 : index
    %1073 = memref.load %arg3[%1072, %c5_330] : memref<12x8xi32, #tpu.memory_space<smem>>
    %1074 = vector.broadcast %1073 : i32 to vector<1x128xi32>
    %1075 = arith.cmpi eq, %577, %1074 : vector<1x128xi32>
    %1076 = arith.extui %1075 : vector<1x128xi1> to vector<1x128xi32>
    %1077 = arith.sitofp %1076 : vector<1x128xi32> to vector<1x128xf32>
    %1078 = arith.addf %1071, %1077 : vector<1x128xf32>
    %c10_i32_331 = arith.constant 10 : i32
    %1079 = arith.index_cast %c10_i32_331 : i32 to index
    %c5_332 = arith.constant 5 : index
    %1080 = memref.load %arg3[%1079, %c5_332] : memref<12x8xi32, #tpu.memory_space<smem>>
    %1081 = vector.broadcast %1080 : i32 to vector<1x128xi32>
    %1082 = arith.cmpi eq, %577, %1081 : vector<1x128xi32>
    %1083 = arith.extui %1082 : vector<1x128xi1> to vector<1x128xi32>
    %1084 = arith.sitofp %1083 : vector<1x128xi32> to vector<1x128xf32>
    %1085 = arith.addf %1078, %1084 : vector<1x128xf32>
    %c11_i32_333 = arith.constant 11 : i32
    %1086 = arith.index_cast %c11_i32_333 : i32 to index
    %c5_334 = arith.constant 5 : index
    %1087 = memref.load %arg3[%1086, %c5_334] : memref<12x8xi32, #tpu.memory_space<smem>>
    %1088 = vector.broadcast %1087 : i32 to vector<1x128xi32>
    %1089 = arith.cmpi eq, %577, %1088 : vector<1x128xi32>
    %1090 = arith.extui %1089 : vector<1x128xi1> to vector<1x128xi32>
    %1091 = arith.sitofp %1090 : vector<1x128xi32> to vector<1x128xf32>
    %1092 = arith.addf %1085, %1091 : vector<1x128xf32>
    %c12_i32_335 = arith.constant 12 : i32
    %c5_336 = arith.constant 5 : index
    %c0_337 = arith.constant 0 : index
    %1093 = vector.load %arg8[%c5_336, %c0_337] : memref<8x128xf32, #tpu.memory_space<vmem>>, vector<1x128xf32>
    tpu.vector_store %arg8[%c5_336, %c0_337], %1092 {strides = array<i32>} : memref<8x128xf32, #tpu.memory_space<vmem>>, vector<1x128xf32>,
    %cst_338 = arith.constant 0.000000e+00 : f32
    %1094 = vector.broadcast %cst_338 : f32 to vector<1x128xf32>
    %c0_i32_339 = arith.constant 0 : i32
    %1095 = arith.index_cast %c0_i32_339 : i32 to index
    %c6_340 = arith.constant 6 : index
    %1096 = memref.load %arg3[%1095, %c6_340] : memref<12x8xi32, #tpu.memory_space<smem>>
    %1097 = vector.broadcast %1096 : i32 to vector<1x128xi32>
    %1098 = arith.cmpi eq, %577, %1097 : vector<1x128xi32>
    %1099 = arith.extui %1098 : vector<1x128xi1> to vector<1x128xi32>
    %1100 = arith.sitofp %1099 : vector<1x128xi32> to vector<1x128xf32>
    %1101 = arith.addf %1094, %1100 : vector<1x128xf32>
    %c1_i32_341 = arith.constant 1 : i32
    %1102 = arith.index_cast %c1_i32_341 : i32 to index
    %c6_342 = arith.constant 6 : index
    %1103 = memref.load %arg3[%1102, %c6_342] : memref<12x8xi32, #tpu.memory_space<smem>>
    %1104 = vector.broadcast %1103 : i32 to vector<1x128xi32>
    %1105 = arith.cmpi eq, %577, %1104 : vector<1x128xi32>
    %1106 = arith.extui %1105 : vector<1x128xi1> to vector<1x128xi32>
    %1107 = arith.sitofp %1106 : vector<1x128xi32> to vector<1x128xf32>
    %1108 = arith.addf %1101, %1107 : vector<1x128xf32>
    %c2_i32_343 = arith.constant 2 : i32
    %1109 = arith.index_cast %c2_i32_343 : i32 to index
    %c6_344 = arith.constant 6 : index
    %1110 = memref.load %arg3[%1109, %c6_344] : memref<12x8xi32, #tpu.memory_space<smem>>
    %1111 = vector.broadcast %1110 : i32 to vector<1x128xi32>
    %1112 = arith.cmpi eq, %577, %1111 : vector<1x128xi32>
    %1113 = arith.extui %1112 : vector<1x128xi1> to vector<1x128xi32>
    %1114 = arith.sitofp %1113 : vector<1x128xi32> to vector<1x128xf32>
    %1115 = arith.addf %1108, %1114 : vector<1x128xf32>
    %c3_i32_345 = arith.constant 3 : i32
    %1116 = arith.index_cast %c3_i32_345 : i32 to index
    %c6_346 = arith.constant 6 : index
    %1117 = memref.load %arg3[%1116, %c6_346] : memref<12x8xi32, #tpu.memory_space<smem>>
    %1118 = vector.broadcast %1117 : i32 to vector<1x128xi32>
    %1119 = arith.cmpi eq, %577, %1118 : vector<1x128xi32>
    %1120 = arith.extui %1119 : vector<1x128xi1> to vector<1x128xi32>
    %1121 = arith.sitofp %1120 : vector<1x128xi32> to vector<1x128xf32>
    %1122 = arith.addf %1115, %1121 : vector<1x128xf32>
    %c4_i32_347 = arith.constant 4 : i32
    %1123 = arith.index_cast %c4_i32_347 : i32 to index
    %c6_348 = arith.constant 6 : index
    %1124 = memref.load %arg3[%1123, %c6_348] : memref<12x8xi32, #tpu.memory_space<smem>>
    %1125 = vector.broadcast %1124 : i32 to vector<1x128xi32>
    %1126 = arith.cmpi eq, %577, %1125 : vector<1x128xi32>
    %1127 = arith.extui %1126 : vector<1x128xi1> to vector<1x128xi32>
    %1128 = arith.sitofp %1127 : vector<1x128xi32> to vector<1x128xf32>
    %1129 = arith.addf %1122, %1128 : vector<1x128xf32>
    %c5_i32_349 = arith.constant 5 : i32
    %1130 = arith.index_cast %c5_i32_349 : i32 to index
    %c6_350 = arith.constant 6 : index
    %1131 = memref.load %arg3[%1130, %c6_350] : memref<12x8xi32, #tpu.memory_space<smem>>
    %1132 = vector.broadcast %1131 : i32 to vector<1x128xi32>
    %1133 = arith.cmpi eq, %577, %1132 : vector<1x128xi32>
    %1134 = arith.extui %1133 : vector<1x128xi1> to vector<1x128xi32>
    %1135 = arith.sitofp %1134 : vector<1x128xi32> to vector<1x128xf32>
    %1136 = arith.addf %1129, %1135 : vector<1x128xf32>
    %c6_i32_351 = arith.constant 6 : i32
    %1137 = arith.index_cast %c6_i32_351 : i32 to index
    %c6_352 = arith.constant 6 : index
    %1138 = memref.load %arg3[%1137, %c6_352] : memref<12x8xi32, #tpu.memory_space<smem>>
    %1139 = vector.broadcast %1138 : i32 to vector<1x128xi32>
    %1140 = arith.cmpi eq, %577, %1139 : vector<1x128xi32>
    %1141 = arith.extui %1140 : vector<1x128xi1> to vector<1x128xi32>
    %1142 = arith.sitofp %1141 : vector<1x128xi32> to vector<1x128xf32>
    %1143 = arith.addf %1136, %1142 : vector<1x128xf32>
    %c7_i32_353 = arith.constant 7 : i32
    %1144 = arith.index_cast %c7_i32_353 : i32 to index
    %c6_354 = arith.constant 6 : index
    %1145 = memref.load %arg3[%1144, %c6_354] : memref<12x8xi32, #tpu.memory_space<smem>>
    %1146 = vector.broadcast %1145 : i32 to vector<1x128xi32>
    %1147 = arith.cmpi eq, %577, %1146 : vector<1x128xi32>
    %1148 = arith.extui %1147 : vector<1x128xi1> to vector<1x128xi32>
    %1149 = arith.sitofp %1148 : vector<1x128xi32> to vector<1x128xf32>
    %1150 = arith.addf %1143, %1149 : vector<1x128xf32>
    %c8_i32_355 = arith.constant 8 : i32
    %1151 = arith.index_cast %c8_i32_355 : i32 to index
    %c6_356 = arith.constant 6 : index
    %1152 = memref.load %arg3[%1151, %c6_356] : memref<12x8xi32, #tpu.memory_space<smem>>
    %1153 = vector.broadcast %1152 : i32 to vector<1x128xi32>
    %1154 = arith.cmpi eq, %577, %1153 : vector<1x128xi32>
    %1155 = arith.extui %1154 : vector<1x128xi1> to vector<1x128xi32>
    %1156 = arith.sitofp %1155 : vector<1x128xi32> to vector<1x128xf32>
    %1157 = arith.addf %1150, %1156 : vector<1x128xf32>
    %c9_i32_357 = arith.constant 9 : i32
    %1158 = arith.index_cast %c9_i32_357 : i32 to index
    %c6_358 = arith.constant 6 : index
    %1159 = memref.load %arg3[%1158, %c6_358] : memref<12x8xi32, #tpu.memory_space<smem>>
    %1160 = vector.broadcast %1159 : i32 to vector<1x128xi32>
    %1161 = arith.cmpi eq, %577, %1160 : vector<1x128xi32>
    %1162 = arith.extui %1161 : vector<1x128xi1> to vector<1x128xi32>
    %1163 = arith.sitofp %1162 : vector<1x128xi32> to vector<1x128xf32>
    %1164 = arith.addf %1157, %1163 : vector<1x128xf32>
    %c10_i32_359 = arith.constant 10 : i32
    %1165 = arith.index_cast %c10_i32_359 : i32 to index
    %c6_360 = arith.constant 6 : index
    %1166 = memref.load %arg3[%1165, %c6_360] : memref<12x8xi32, #tpu.memory_space<smem>>
    %1167 = vector.broadcast %1166 : i32 to vector<1x128xi32>
    %1168 = arith.cmpi eq, %577, %1167 : vector<1x128xi32>
    %1169 = arith.extui %1168 : vector<1x128xi1> to vector<1x128xi32>
    %1170 = arith.sitofp %1169 : vector<1x128xi32> to vector<1x128xf32>
    %1171 = arith.addf %1164, %1170 : vector<1x128xf32>
    %c11_i32_361 = arith.constant 11 : i32
    %1172 = arith.index_cast %c11_i32_361 : i32 to index
    %c6_362 = arith.constant 6 : index
    %1173 = memref.load %arg3[%1172, %c6_362] : memref<12x8xi32, #tpu.memory_space<smem>>
    %1174 = vector.broadcast %1173 : i32 to vector<1x128xi32>
    %1175 = arith.cmpi eq, %577, %1174 : vector<1x128xi32>
    %1176 = arith.extui %1175 : vector<1x128xi1> to vector<1x128xi32>
    %1177 = arith.sitofp %1176 : vector<1x128xi32> to vector<1x128xf32>
    %1178 = arith.addf %1171, %1177 : vector<1x128xf32>
    %c12_i32_363 = arith.constant 12 : i32
    %c6_364 = arith.constant 6 : index
    %c0_365 = arith.constant 0 : index
    %1179 = vector.load %arg8[%c6_364, %c0_365] : memref<8x128xf32, #tpu.memory_space<vmem>>, vector<1x128xf32>
    tpu.vector_store %arg8[%c6_364, %c0_365], %1178 {strides = array<i32>} : memref<8x128xf32, #tpu.memory_space<vmem>>, vector<1x128xf32>,
    %cst_366 = arith.constant 0.000000e+00 : f32
    %1180 = vector.broadcast %cst_366 : f32 to vector<1x128xf32>
    %c0_i32_367 = arith.constant 0 : i32
    %1181 = arith.index_cast %c0_i32_367 : i32 to index
    %c7_368 = arith.constant 7 : index
    %1182 = memref.load %arg3[%1181, %c7_368] : memref<12x8xi32, #tpu.memory_space<smem>>
    %1183 = vector.broadcast %1182 : i32 to vector<1x128xi32>
    %1184 = arith.cmpi eq, %577, %1183 : vector<1x128xi32>
    %1185 = arith.extui %1184 : vector<1x128xi1> to vector<1x128xi32>
    %1186 = arith.sitofp %1185 : vector<1x128xi32> to vector<1x128xf32>
    %1187 = arith.addf %1180, %1186 : vector<1x128xf32>
    %c1_i32_369 = arith.constant 1 : i32
    %1188 = arith.index_cast %c1_i32_369 : i32 to index
    %c7_370 = arith.constant 7 : index
    %1189 = memref.load %arg3[%1188, %c7_370] : memref<12x8xi32, #tpu.memory_space<smem>>
    %1190 = vector.broadcast %1189 : i32 to vector<1x128xi32>
    %1191 = arith.cmpi eq, %577, %1190 : vector<1x128xi32>
    %1192 = arith.extui %1191 : vector<1x128xi1> to vector<1x128xi32>
    %1193 = arith.sitofp %1192 : vector<1x128xi32> to vector<1x128xf32>
    %1194 = arith.addf %1187, %1193 : vector<1x128xf32>
    %c2_i32_371 = arith.constant 2 : i32
    %1195 = arith.index_cast %c2_i32_371 : i32 to index
    %c7_372 = arith.constant 7 : index
    %1196 = memref.load %arg3[%1195, %c7_372] : memref<12x8xi32, #tpu.memory_space<smem>>
    %1197 = vector.broadcast %1196 : i32 to vector<1x128xi32>
    %1198 = arith.cmpi eq, %577, %1197 : vector<1x128xi32>
    %1199 = arith.extui %1198 : vector<1x128xi1> to vector<1x128xi32>
    %1200 = arith.sitofp %1199 : vector<1x128xi32> to vector<1x128xf32>
    %1201 = arith.addf %1194, %1200 : vector<1x128xf32>
    %c3_i32_373 = arith.constant 3 : i32
    %1202 = arith.index_cast %c3_i32_373 : i32 to index
    %c7_374 = arith.constant 7 : index
    %1203 = memref.load %arg3[%1202, %c7_374] : memref<12x8xi32, #tpu.memory_space<smem>>
    %1204 = vector.broadcast %1203 : i32 to vector<1x128xi32>
    %1205 = arith.cmpi eq, %577, %1204 : vector<1x128xi32>
    %1206 = arith.extui %1205 : vector<1x128xi1> to vector<1x128xi32>
    %1207 = arith.sitofp %1206 : vector<1x128xi32> to vector<1x128xf32>
    %1208 = arith.addf %1201, %1207 : vector<1x128xf32>
    %c4_i32_375 = arith.constant 4 : i32
    %1209 = arith.index_cast %c4_i32_375 : i32 to index
    %c7_376 = arith.constant 7 : index
    %1210 = memref.load %arg3[%1209, %c7_376] : memref<12x8xi32, #tpu.memory_space<smem>>
    %1211 = vector.broadcast %1210 : i32 to vector<1x128xi32>
    %1212 = arith.cmpi eq, %577, %1211 : vector<1x128xi32>
    %1213 = arith.extui %1212 : vector<1x128xi1> to vector<1x128xi32>
    %1214 = arith.sitofp %1213 : vector<1x128xi32> to vector<1x128xf32>
    %1215 = arith.addf %1208, %1214 : vector<1x128xf32>
    %c5_i32_377 = arith.constant 5 : i32
    %1216 = arith.index_cast %c5_i32_377 : i32 to index
    %c7_378 = arith.constant 7 : index
    %1217 = memref.load %arg3[%1216, %c7_378] : memref<12x8xi32, #tpu.memory_space<smem>>
    %1218 = vector.broadcast %1217 : i32 to vector<1x128xi32>
    %1219 = arith.cmpi eq, %577, %1218 : vector<1x128xi32>
    %1220 = arith.extui %1219 : vector<1x128xi1> to vector<1x128xi32>
    %1221 = arith.sitofp %1220 : vector<1x128xi32> to vector<1x128xf32>
    %1222 = arith.addf %1215, %1221 : vector<1x128xf32>
    %c6_i32_379 = arith.constant 6 : i32
    %1223 = arith.index_cast %c6_i32_379 : i32 to index
    %c7_380 = arith.constant 7 : index
    %1224 = memref.load %arg3[%1223, %c7_380] : memref<12x8xi32, #tpu.memory_space<smem>>
    %1225 = vector.broadcast %1224 : i32 to vector<1x128xi32>
    %1226 = arith.cmpi eq, %577, %1225 : vector<1x128xi32>
    %1227 = arith.extui %1226 : vector<1x128xi1> to vector<1x128xi32>
    %1228 = arith.sitofp %1227 : vector<1x128xi32> to vector<1x128xf32>
    %1229 = arith.addf %1222, %1228 : vector<1x128xf32>
    %c7_i32_381 = arith.constant 7 : i32
    %1230 = arith.index_cast %c7_i32_381 : i32 to index
    %c7_382 = arith.constant 7 : index
    %1231 = memref.load %arg3[%1230, %c7_382] : memref<12x8xi32, #tpu.memory_space<smem>>
    %1232 = vector.broadcast %1231 : i32 to vector<1x128xi32>
    %1233 = arith.cmpi eq, %577, %1232 : vector<1x128xi32>
    %1234 = arith.extui %1233 : vector<1x128xi1> to vector<1x128xi32>
    %1235 = arith.sitofp %1234 : vector<1x128xi32> to vector<1x128xf32>
    %1236 = arith.addf %1229, %1235 : vector<1x128xf32>
    %c8_i32_383 = arith.constant 8 : i32
    %1237 = arith.index_cast %c8_i32_383 : i32 to index
    %c7_384 = arith.constant 7 : index
    %1238 = memref.load %arg3[%1237, %c7_384] : memref<12x8xi32, #tpu.memory_space<smem>>
    %1239 = vector.broadcast %1238 : i32 to vector<1x128xi32>
    %1240 = arith.cmpi eq, %577, %1239 : vector<1x128xi32>
    %1241 = arith.extui %1240 : vector<1x128xi1> to vector<1x128xi32>
    %1242 = arith.sitofp %1241 : vector<1x128xi32> to vector<1x128xf32>
    %1243 = arith.addf %1236, %1242 : vector<1x128xf32>
    %c9_i32_385 = arith.constant 9 : i32
    %1244 = arith.index_cast %c9_i32_385 : i32 to index
    %c7_386 = arith.constant 7 : index
    %1245 = memref.load %arg3[%1244, %c7_386] : memref<12x8xi32, #tpu.memory_space<smem>>
    %1246 = vector.broadcast %1245 : i32 to vector<1x128xi32>
    %1247 = arith.cmpi eq, %577, %1246 : vector<1x128xi32>
    %1248 = arith.extui %1247 : vector<1x128xi1> to vector<1x128xi32>
    %1249 = arith.sitofp %1248 : vector<1x128xi32> to vector<1x128xf32>
    %1250 = arith.addf %1243, %1249 : vector<1x128xf32>
    %c10_i32_387 = arith.constant 10 : i32
    %1251 = arith.index_cast %c10_i32_387 : i32 to index
    %c7_388 = arith.constant 7 : index
    %1252 = memref.load %arg3[%1251, %c7_388] : memref<12x8xi32, #tpu.memory_space<smem>>
    %1253 = vector.broadcast %1252 : i32 to vector<1x128xi32>
    %1254 = arith.cmpi eq, %577, %1253 : vector<1x128xi32>
    %1255 = arith.extui %1254 : vector<1x128xi1> to vector<1x128xi32>
    %1256 = arith.sitofp %1255 : vector<1x128xi32> to vector<1x128xf32>
    %1257 = arith.addf %1250, %1256 : vector<1x128xf32>
    %c11_i32_389 = arith.constant 11 : i32
    %1258 = arith.index_cast %c11_i32_389 : i32 to index
    %c7_390 = arith.constant 7 : index
    %1259 = memref.load %arg3[%1258, %c7_390] : memref<12x8xi32, #tpu.memory_space<smem>>
    %1260 = vector.broadcast %1259 : i32 to vector<1x128xi32>
    %1261 = arith.cmpi eq, %577, %1260 : vector<1x128xi32>
    %1262 = arith.extui %1261 : vector<1x128xi1> to vector<1x128xi32>
    %1263 = arith.sitofp %1262 : vector<1x128xi32> to vector<1x128xf32>
    %1264 = arith.addf %1257, %1263 : vector<1x128xf32>
    %c12_i32_391 = arith.constant 12 : i32
    %c7_392 = arith.constant 7 : index
    %c0_393 = arith.constant 0 : index
    %1265 = vector.load %arg8[%c7_392, %c0_393] : memref<8x128xf32, #tpu.memory_space<vmem>>, vector<1x128xf32>
    tpu.vector_store %arg8[%c7_392, %c0_393], %1264 {strides = array<i32>} : memref<8x128xf32, #tpu.memory_space<vmem>>, vector<1x128xf32>,
    %c0_394 = arith.constant 0 : index
    %c0_395 = arith.constant 0 : index
    %1266 = vector.load %arg7[%c0_394, %c0_395] : memref<8x128xf32, #tpu.memory_space<vmem>>, vector<8x128xf32>
    %c0_396 = arith.constant 0 : index
    %c0_397 = arith.constant 0 : index
    %1267 = vector.load %arg4[%c0_396, %c0_397] : memref<128x384xf32, #tpu.memory_space<vmem>>, vector<128x384xf32>
    %cst_398 = arith.constant dense<0.000000e+00> : vector<8x384xf32>
    %1268 = tpu.matmul %1266, %1267, %cst_398 {dimension_numbers = #tpu.dot_dimension_numbers<[1], [0], [0], [1], [0, 0, 1, 1], [], []>, precision = #tpu.contract_precision<fp32>} : vector<8x128xf32>, vector<128x384xf32>, vector<8x384xf32> -> vector<8x384xf32>
    %c0_399 = arith.constant 0 : index
    %c0_400 = arith.constant 0 : index
    %1269 = vector.load %arg8[%c0_399, %c0_400] : memref<8x128xf32, #tpu.memory_space<vmem>>, vector<8x128xf32>
    %c0_401 = arith.constant 0 : index
    %c0_402 = arith.constant 0 : index
    %1270 = vector.load %arg5[%c0_401, %c0_402] : memref<128x384xf32, #tpu.memory_space<vmem>>, vector<128x384xf32>
    %cst_403 = arith.constant dense<0.000000e+00> : vector<8x384xf32>
    %1271 = tpu.matmul %1269, %1270, %cst_403 {dimension_numbers = #tpu.dot_dimension_numbers<[1], [0], [0], [1], [0, 0, 1, 1], [], []>, precision = #tpu.contract_precision<fp32>} : vector<8x128xf32>, vector<128x384xf32>, vector<8x384xf32> -> vector<8x384xf32>
    %1272 = arith.mulf %1268, %1271 : vector<8x384xf32>
    %cst_404 = arith.constant dense<0.000000e+00> : vector<8xf32>
    %1273 = vector.multi_reduction <add>, %1272, %cst_404 [1] : vector<8x384xf32> to vector<8xf32>
    %1274 = vector.shape_cast %1273 : vector<8xf32> to vector<8x1xf32>
    %1275 = arith.mulf %1268, %1268 : vector<8x384xf32>
    %cst_405 = arith.constant dense<0.000000e+00> : vector<8xf32>
    %1276 = vector.multi_reduction <add>, %1275, %cst_405 [1] : vector<8x384xf32> to vector<8xf32>
    %1277 = vector.shape_cast %1276 : vector<8xf32> to vector<8x1xf32>
    %1278 = arith.mulf %1271, %1271 : vector<8x384xf32>
    %cst_406 = arith.constant dense<0.000000e+00> : vector<8xf32>
    %1279 = vector.multi_reduction <add>, %1278, %cst_406 [1] : vector<8x384xf32> to vector<8xf32>
    %1280 = vector.shape_cast %1279 : vector<8xf32> to vector<8x1xf32>
    %cst_407 = arith.constant 1.000000e-16 : f32
    %1281 = vector.broadcast %cst_407 : f32 to vector<8x1xf32>
    %1282 = arith.maximumf %1277, %1281 : vector<8x1xf32>
    %1283 = math.rsqrt %1282 : vector<8x1xf32>
    %1284 = arith.mulf %1274, %1283 : vector<8x1xf32>
    %cst_408 = arith.constant 1.000000e-16 : f32
    %1285 = vector.broadcast %cst_408 : f32 to vector<8x1xf32>
    %1286 = arith.maximumf %1280, %1285 : vector<8x1xf32>
    %1287 = math.rsqrt %1286 : vector<8x1xf32>
    %1288 = arith.mulf %1284, %1287 : vector<8x1xf32>
    %c0_409 = arith.constant 0 : index
    %1289 = memref.load %arg0[%c0_409] : memref<1xf32, #tpu.memory_space<smem>>
    %1290 = vector.broadcast %1289 : f32 to vector<8x1xf32>
    %1291 = arith.mulf %1288, %1290 : vector<8x1xf32>
    %c0_410 = arith.constant 0 : index
    %1292 = memref.load %arg1[%c0_410] : memref<1xf32, #tpu.memory_space<smem>>
    %1293 = vector.broadcast %1292 : f32 to vector<8x1xf32>
    %1294 = arith.addf %1291, %1293 : vector<8x1xf32>
    %1295 = arith.negf %1294 : vector<8x1xf32>
    %1296 = math.exp %1295 : vector<8x1xf32>
    %cst_411 = arith.constant 1.000000e+00 : f32
    %1297 = vector.broadcast %cst_411 : f32 to vector<8x1xf32>
    %1298 = arith.addf %1297, %1296 : vector<8x1xf32>
    %1299 = arith.divf %1297, %1298 : vector<8x1xf32>
    %c0_412 = arith.constant 0 : index
    %c0_413 = arith.constant 0 : index
    %1300 = vector.load %arg6[%c0_412, %c0_413] : memref<8x1xf32, #tpu.memory_space<vmem>>, vector<8x1xf32>
    tpu.vector_store %arg6[%c0_412, %c0_413], %1299 {strides = array<i32>} : memref<8x1xf32, #tpu.memory_space<vmem>>, vector<8x1xf32>,
    return
  }
}

</mosaic_0001>

<bundles_post_ra>
// kernel: tpu_custom_call.1
= control target key start
LH: loop header
LB: loop body
LE: loop exit
PB: predicated region body
PF: predicated region fallthrough
CT: control target
= control target key end

     0   :  { %13 = vsyncpa [#allocation8], 0  ;;  %s8905_s0 = inlined_call_operand.<no memory space> [shape: f32[1], index: 0, kind: input, shape index: {}]   ;;  %s8906_s1 = inlined_call_operand.<no memory space> [shape: f32[1], index: 1, kind: input, shape index: {}]   ;;  %s8907_s2 = inlined_call_operand.vmem [shape: s32[10,8], index: 2, kind: input, shape index: {}]   ;;  %s8908_s3 = inlined_call_operand.vmem [shape: s32[12,8], index: 3, kind: input, shape index: {}]   ;;  %s8909_s4 = inlined_call_operand.hbm [shape: f32[128,384], index: 4, kind: input, shape index: {}]   ;;  %s8910_s5 = inlined_call_operand.hbm [shape: f32[128,384], index: 5, kind: input, shape index: {}]   ;;  %s8911_s6 = inlined_call_operand.vmem [shape: f32[8,1], index: 6, kind: output, shape index: {}]  }
   0x1   :  { %14 = vsyncpa [#allocation10], 0 }
   0x2   :  { %15 = vsyncpa [#allocation7], 0  ;;  %s26_s23 = sshll.u32 %s8907_s2, 4  ;;  %s27_s23 = int_to_ptr.vmem [resolvable:$true] %s26_s23 }
   0x3   :  { %16 = vsyncpa [#allocation13], 0  ;;  %s38_s26 = sshll.u32 %s8908_s3, 4  ;;  %s6003_s27 = scalar_lea.vmem %s27_s23, 256  ;;  %s39_s26 = int_to_ptr.vmem [resolvable:$true] %s38_s26 }
   0x4   :  { %p6004_p0 = scmp.ne.s32.totalorder %s27_s23, %s6003_s27  ;;  %p6008_p1 = scmp.lt.s32.totalorder %s27_s23, %s27_s23 }
   0x5   :  { %p6009_p2 = scmp.lt.s32.totalorder %s6003_s27, %s6003_s27 }
   0x7   :  { %p6010_p3 = por %p6009_p2, %p6008_p1 }
   0x9   :  { %p6011_p4 = pnand %p6010_p3, %p6004_p0 }
   0xb   :  { %6014 = shalt.err (!%p6011_p4)
}
   0xc   :  { %s6079_s28 = smov [#allocation6]   ;;  %s6080_s29 = smov 128  }
   0xd   :  { %s6081_s30 = smov 8   ;;  %s6015_s7 = scalar_lea.vmem %s39_s26, 256 }
   0xe   :  { %32 = dma.vmem_to_smem %s27_s23, 256, %s6079_s28, [#allocation8], %s6080_s29, %s6080_s29, %s6081_s30  }
   0xf   :  { %p6016_p5 = scmp.ne.s32.totalorder %s39_s26, %s6015_s7  ;;  %p6020_p6 = scmp.lt.s32.totalorder %s39_s26, %s39_s26 }
  0x10   :  { %p6021_p7 = scmp.lt.s32.totalorder %s6015_s7, %s6015_s7 }
  0x12   :  { %p6022_p8 = por %p6021_p7, %p6020_p6 }
  0x14   :  { %p6023_p9 = pnand %p6022_p8, %p6016_p5 }
  0x16   :  { %6026 = shalt.err (!%p6023_p9)
}
  0x17   :  { %s6082_s2 = smov [#allocation9]   ;;  %s6083_s3 = smov [#allocation11]  }
  0x18   :  { %44 = dma.vmem_to_smem %s39_s26, 256, %s6082_s2, [#allocation10], %s6080_s29, %s6080_s29, %s6081_s30  }
  0x19   :  { %s50_s8 = sshll.u32 %s6083_s3, 4  ;;  %s6027_s11 = scalar_lea.hbm %s8909_s4, 6144  ;;  %s51_s8 = int_to_ptr.vmem [resolvable:$true] %s50_s8 }
  0x1a   :  { %p6028_p10 = scmp.ne.s32.totalorder %s8909_s4, %s6027_s11  ;;  %p6031_p11 = scmp.lt.u32.totalorder %s6027_s11, %s8909_s4 }
  0x1c   :  { %p6033_p12 = pnand %p6031_p11, %p6028_p10 }
  0x1e   :  { %6036 = shalt.err (!%p6033_p12)
}
  0x1f   :  { %s6037_s16 = scalar_lea.vmem %s51_s8, 6144  ;;  %p6042_p0 = scmp.lt.s32.totalorder %s51_s8, %s51_s8 }
  0x20   :  { %p6038_p13 = scmp.ne.s32.totalorder %s51_s8, %s6037_s16  ;;  %p6043_p1 = scmp.lt.s32.totalorder %s6037_s16, %s6037_s16 }
  0x22   :  { %p6044_p2 = por %p6043_p1, %p6042_p0 }
  0x24   :  { %p6045_p3 = pnand %p6044_p2, %p6038_p13 }
  0x26   :  { %6048 = shalt.err (!%p6045_p3)
}
  0x27   :  { %s6084_s17 = smov 384   ;;  %s6085_s18 = smov 24  }
  0x28   :  { %56 = dma.hbm_to_vmem [thread:$0]  %s8909_s4, 6144, %s51_s8, [#allocation7], %s6084_s17, %s6084_s17, %s6085_s18  }
  0x29   :  { %s6086_s21 = smov [#allocation12]   ;;  %s6049_s25 = scalar_lea.hbm %s8910_s5, 6144 }
  0x2a   :  { %s62_s22 = sshll.u32 %s6086_s21, 4  ;;  %p6050_p4 = scmp.ne.s32.totalorder %s8910_s5, %s6049_s25  ;;  %s63_s22 = int_to_ptr.vmem [resolvable:$true] %s62_s22 }
  0x2b   :  { %p6053_p5 = scmp.lt.u32.totalorder %s6049_s25, %s8910_s5 }
  0x2d   :  { %p6055_p6 = pnand %p6053_p5, %p6050_p4 }
  0x2f   :  { %6058 = shalt.err (!%p6055_p6)
}
  0x30   :  { %s6059_s30 = scalar_lea.vmem %s63_s22, 6144  ;;  %p6064_p8 = scmp.lt.s32.totalorder %s63_s22, %s63_s22 }
  0x31   :  { %p6060_p7 = scmp.ne.s32.totalorder %s63_s22, %s6059_s30  ;;  %p6065_p9 = scmp.lt.s32.totalorder %s6059_s30, %s6059_s30 }
  0x33   :  { %p6066_p10 = por %p6065_p9, %p6064_p8 }
  0x35   :  { %p6067_p11 = pnand %p6066_p10, %p6060_p7 }
  0x37   :  { %6070 = shalt.err (!%p6067_p11)
}
  0x38   :  { %68 = dma.hbm_to_vmem [thread:$0]  %s8910_s5, 6144, %s63_s22, [#allocation13], %s6084_s17, %s6084_s17, %s6085_s18  }
  0x39   :  { %6071 = dma.done.wait [#allocation8], 256  }
  0x3a   :  { %6072 = vsyncadd [#allocation8], 4294967040 }
  0x3b   :  { %6073 = dma.done.wait [#allocation10], 256  }
  0x3c   :  { %6074 = vsyncadd [#allocation10], 4294967040 }
  0x3d   :  { %6075 = dma.done.wait [#allocation7], 6144  }
  0x3e   :  { %6076 = vsyncadd [#allocation7], 4294961152 }
  0x3f   :  { %6077 = dma.done.wait [#allocation13], 6144  }
  0x40   :  { %6078 = vsyncadd [#allocation13], 4294961152 }
  0x41   :  { %81 = sfence }
  0x42   :  { %v1158_v0 = vld [vmem:[#allocation11 + $0x8] sm:$0xff]  ;;  %v1161_v1 = vld [vmem:[#allocation11 + $0x20] sm:$0xff]  ;;  %v8920_v5 = vmov 0.0|0.0   ;;  %v1160_v6 = vld [vmem:[#allocation11 + $0x18] sm:$0xff]  ;;  %v8912_v10 = vmov 0.0   ;;  %vm6089_vm0 = vmmov 0  }
  0x43   :  { %v1157_v2 = vld [vmem:[#allocation11] sm:$0xff]  ;;  %v1205_v3 = vand.u32 4294901760, %v1158_v0  ;;  %v1209_v4 = vand.u32 4294901760, %v1161_v1  ;;  %5462 = vmatprep.subr.bf16.mxu1 %v8920_v5  ;;  %v1159_v8 = vld [vmem:[#allocation11 + $0x10] sm:$0xff]  ;;  %v1162_v9 = vld [vmem:[#allocation11 + $0x28] sm:$0xff]  ;;  %1301 = vmatprep.mubr.f32.mxu0 %v8912_v10  ;;  %v1211_v11 = vand.u32 4294901760, %v1160_v6 }
  0x44   :  { %v1207_v7 = vand.u32 4294901760, %v1157_v2  ;;  %v2061_v12 = vand.u32 4294901760, %v1159_v8  ;;  %v2064_v13 = vand.u32 4294901760, %v1162_v9  ;;  %v1164_v14 = vld [vmem:[#allocation11 + $0x38] sm:$0xff]  ;;  %v1167_v15 = vld [vmem:[#allocation11 + $0x50] sm:$0xff]  ;;  %4882 = vmatprep.mubr.msk.f32.mxu1 %vm6089_vm0, %v8912_v10  ;;  %v1166_v22 = vld [vmem:[#allocation11 + $0x48] sm:$0xff] }
  0x45   :  { %v1163_v16 = vld [vmem:[#allocation11 + $0x30] sm:$0xff]  ;;  %v6159_v18 = vpack.c.bf16 %v1209_v4, %v1205_v3  ;;  %v6161_v19 = vsub.f32 %v1158_v0, %v1205_v3  ;;  %v6163_v20 = vsub.f32 %v1161_v1, %v1209_v4  ;;  %v1165_v23 = vld [vmem:[#allocation11 + $0x40] sm:$0xff]  ;;  %v1168_v24 = vld [vmem:[#allocation11 + $0x58] sm:$0xff]  ;;  %v6169_v26 = vsub.f32 %v1160_v6, %v1211_v11  ;;  %s6270_s5 = sld [smem:[#allocation6]]  ;;  %s6368_s15 = sld [smem:[#allocation6 + $0x1]] }
  0x46   :  { %v6165_v21 = vsub.f32 %v1157_v2, %v1207_v7  ;;  %v6167_v25 = vpack.c.bf16 %v1211_v11, %v1207_v7  ;;  %v6171_v27 = vpack.c.bf16 %v2064_v13, %v2061_v12  ;;  %v6173_v28 = vsub.f32 %v1159_v8, %v2061_v12  ;;  %v1170_v29 = vld [vmem:[#allocation11 + $0x68] sm:$0xff]  ;;  %v1173_v34 = vld [vmem:[#allocation11 + $0x80] sm:$0xff]  ;;  %v1172_v40 = vld [vmem:[#allocation11 + $0x78] sm:$0xff]  ;;  %s6281_s2 = sld [smem:[#allocation6 + $0x80]]  ;;  %s6370_s16 = sld [smem:[#allocation6 + $0x81]] }
  0x47   :  { %9167 = vst [vmem:[#allocation18_spill] sm:$0xff] %v6159_v18  ;;  %9168 = vst [vmem:[#allocation19_spill] sm:$0xff] %v6161_v19  ;;  %5271 = vmatprep.subr.bf16.mxu0 %v6159_v18  ;;  %v6176_v30 = vsub.f32 %v1162_v9, %v2064_v13  ;;  %v1213_v31 = vand.u32 4294901760, %v1164_v14  ;;  %v1217_v32 = vand.u32 4294901760, %v1167_v15  ;;  %v1215_v33 = vand.u32 4294901760, %v1163_v16  ;;  %v1169_v39 = vld [vmem:[#allocation11 + $0x60] sm:$0xff] }
  0x48   :  { %9169 = vst [vmem:[#allocation20_spill] sm:$0xff] %v6163_v20  ;;  %9170 = vst [vmem:[#allocation21_spill] sm:$0xff] %v6165_v21  ;;  %5273 = vmatpush1.bf16.msra.mxu0 %v6167_v25  ;;  %5464 = vmatpush3.bf16.msra.mxu1 %v6171_v27  ;;  %v1219_v35 = vand.u32 4294901760, %v1166_v22  ;;  %v2067_v36 = vand.u32 4294901760, %v1165_v23  ;;  %v2070_v37 = vand.u32 4294901760, %v1168_v24  ;;  %v1221_v38 = vand.u32 4294901760, %v1170_v29 }
  0x49   :  { %9171 = vst [vmem:[#allocation22_spill] sm:$0xff] %v6167_v25  ;;  %9172 = vst [vmem:[#allocation23_spill] sm:$0xff] %v6169_v26  ;;  %v6180_v41 = vpack.c.bf16 %v1217_v32, %v1213_v31  ;;  %v6182_v42 = vsub.f32 %v1164_v14, %v1213_v31  ;;  %v6184_v43 = vsub.f32 %v1167_v15, %v1217_v32  ;;  %5465 = vmatprep.subr.bf16.mxu1 %v8920_v5  ;;  %v1171_v45 = vld [vmem:[#allocation11 + $0x70] sm:$0xff]  ;;  %v1174_v46 = vld [vmem:[#allocation11 + $0x88] sm:$0xff]  ;;  %s6283_s3 = sld [smem:[#allocation6 + $0x100]]  ;;  %s6380_s17 = sld [smem:[#allocation6 + $0x101]] }
  0x4a   :  { %9173 = vst [vmem:[#allocation24_spill] sm:$0xff] %v6171_v27  ;;  %9174 = vst [vmem:[#allocation25_spill] sm:$0xff] %v6173_v28  ;;  %v6187_v44 = vsub.f32 %v1163_v16, %v1215_v33  ;;  %v1176_v47 = vld [vmem:[#allocation11 + $0x98] sm:$0xff]  ;;  %v6189_v48 = vpack.c.bf16 %v1219_v35, %v1215_v33  ;;  %v6191_v49 = vsub.f32 %v1166_v22, %v1219_v35  ;;  %v1179_v52 = vld [vmem:[#allocation11 + $0xb0] sm:$0xff]  ;;  %v1225_v54 = vand.u32 4294901760, %v1173_v34  ;;  %s6289_s8 = sld [smem:[#allocation6 + $0x180]] }
  0x4b   :  { %9175 = vst [vmem:[#allocation26_spill] sm:$0xff] %v6176_v30  ;;  %9176 = vst [vmem:[#allocation27_spill] sm:$0xff] %v6180_v41  ;;  %v6193_v50 = vpack.c.bf16 %v2070_v37, %v2067_v36  ;;  %v6195_v51 = vsub.f32 %v1165_v23, %v2067_v36  ;;  %5275 = vmatprep.subr.bf16.mxu0 %v6180_v41  ;;  %v6198_v53 = vsub.f32 %v1168_v24, %v2070_v37  ;;  %v1175_v61 = vld [vmem:[#allocation11 + $0x90] sm:$0xff]  ;;  %v1178_v62 = vld [vmem:[#allocation11 + $0xa8] sm:$0xff]  ;;  %s6300_s9 = sld [smem:[#allocation6 + $0x200]]  ;;  %s6382_s18 = sld [smem:[#allocation6 + $0x181]] }
  0x4c   :  { %9177 = vst [vmem:[#allocation28_spill] sm:$0xff] %v6189_v48  ;;  %v6200_v55 = vsub.f32 %v1170_v29, %v1221_v38  ;;  %v1223_v56 = vand.u32 4294901760, %v1169_v39  ;;  %5277 = vmatpush1.bf16.msra.mxu0 %v6189_v48  ;;  %v1227_v57 = vand.u32 4294901760, %v1172_v40  ;;  %v2073_v58 = vand.u32 4294901760, %v1171_v45  ;;  %v1177_v3 = vld [vmem:[#allocation11 + $0xa0] sm:$0xff]  ;;  %v1180_v4 = vld [vmem:[#allocation11 + $0xb8] sm:$0xff] }
  0x4d   :  { %9178 = vst [vmem:[#allocation29_spill] sm:$0xff] %v6193_v50  ;;  %5467 = vmatpush3.bf16.msra.mxu1 %v6193_v50  ;;  %v2076_v59 = vand.u32 4294901760, %v1174_v46  ;;  %v1229_v60 = vand.u32 4294901760, %v1176_v47  ;;  %v6204_v63 = vpack.c.bf16 %v1225_v54, %v1221_v38  ;;  %v6206_v0 = vsub.f32 %v1173_v34, %v1225_v54  ;;  %v1182_v6 = vld [vmem:[#allocation11 + $0xc8] sm:$0xff]  ;;  %v1185_v12 = vld [vmem:[#allocation11 + $0xe0] sm:$0xff]  ;;  %v1184_v14 = vld [vmem:[#allocation11 + $0xd8] sm:$0xff] }
  0x4e   :  { %5468 = vmatprep.subr.bf16.mxu1 %v8920_v5  ;;  %v6209_v1 = vsub.f32 %v1169_v39, %v1223_v56  ;;  %v1233_v2 = vand.u32 4294901760, %v1179_v52  ;;  %v6211_v7 = vpack.c.bf16 %v1227_v57, %v1223_v56  ;;  %v6213_v8 = vsub.f32 %v1172_v40, %v1227_v57  ;;  %v1181_v13 = vld [vmem:[#allocation11 + $0xc0] sm:$0xff]  ;;  %v1183_v37 = vld [vmem:[#allocation11 + $0xd0] sm:$0xff]  ;;  %v1194_v17 = vld [vmem:[#allocation11 + $0x128] sm:$0xff]  ;;  %s6319_s10 = sld [smem:[#allocation6 + $0x280]]  ;;  %s6391_s19 = sld [smem:[#allocation6 + $0x201]] }
  0x4f   :  { %9179 = vst [vmem:[#allocation30_spill] sm:$0xff] %v6204_v63  ;;  %v6215_v9 = vpack.c.bf16 %v2076_v59, %v2073_v58  ;;  %v6217_v11 = vsub.f32 %v1171_v45, %v2073_v58  ;;  %5279 = vmatprep.subr.bf16.mxu0 %v6204_v63  ;;  %v6220_v15 = vsub.f32 %v1174_v46, %v2076_v59  ;;  %v1231_v24 = vand.u32 4294901760, %v1175_v61  ;;  %v1186_v46 = vld [vmem:[#allocation11 + $0xe8] sm:$0xff]  ;;  %v1187_v59 = vld [vmem:[#allocation11 + $0xf0] sm:$0xff]  ;;  %v1201_v41 = vld [vmem:[#allocation11 + $0x160] sm:$0xff]  ;;  %s6322_s11 = sld [smem:[#allocation6 + $0x300]] }
  0x50   :  { %9180 = vst [vmem:[#allocation31_spill] sm:$0xff] %v6211_v7  ;;  %v6222_v16 = vpack.c.bf16 %v1233_v2, %v1229_v60  ;;  %v6224_v22 = vsub.f32 %v1176_v47, %v1229_v60  ;;  %v6226_v23 = vsub.f32 %v1179_v52, %v1233_v2  ;;  %5281 = vmatpush1.bf16.msra.mxu0 %v6211_v7  ;;  %v1235_v29 = vand.u32 4294901760, %v1178_v62  ;;  %v1188_v47 = vld [vmem:[#allocation11 + $0xf8] sm:$0xff]  ;;  %v1191_v52 = vld [vmem:[#allocation11 + $0x110] sm:$0xff]  ;;  %v1190_v60 = vld [vmem:[#allocation11 + $0x108] sm:$0xff]  ;;  %s6328_s12 = sld [smem:[#allocation6 + $0x380]] }
  0x51   :  { %9181 = vst [vmem:[#allocation32_spill] sm:$0xff] %v6215_v9  ;;  %5470 = vmatpush3.bf16.msra.mxu1 %v6215_v9  ;;  %v2079_v31 = vand.u32 4294901760, %v1177_v3  ;;  %v2082_v32 = vand.u32 4294901760, %v1180_v4  ;;  %v1237_v33 = vand.u32 4294901760, %v1182_v6  ;;  %v1241_v34 = vand.u32 4294901760, %v1185_v12  ;;  %v1189_v2 = vld [vmem:[#allocation11 + $0x100] sm:$0xff] }
  0x52   :  { %9182 = vst [vmem:[#allocation33_spill] sm:$0xff] %v6222_v16  ;;  %9183 = vst [vmem:[#allocation34_spill] sm:$0xff] %v6226_v23  ;;  %5283 = vmatprep.subr.bf16.mxu0 %v6222_v16  ;;  %5471 = vmatprep.subr.bf16.mxu1 %v8920_v5  ;;  %v1239_v35 = vand.u32 4294901760, %v1181_v13  ;;  %v1243_v36 = vand.u32 4294901760, %v1184_v14  ;;  %v6232_v38 = vpack.c.bf16 %v1235_v29, %v1231_v24  ;;  %v1247_v10 = vand.u32 4294901760, %v1187_v59  ;;  %v1198_v16 = vld [vmem:[#allocation11 + $0x148] sm:$0xff] }
  0x53   :  { %v6234_v39 = vsub.f32 %v1175_v61, %v1231_v24  ;;  %v6236_v40 = vsub.f32 %v1178_v62, %v1235_v29  ;;  %v6238_v45 = vpack.c.bf16 %v2082_v32, %v2079_v31  ;;  %v6240_v54 = vsub.f32 %v1177_v3, %v2079_v31  ;;  %v1199_v50 = vld [vmem:[#allocation11 + $0x150] sm:$0xff]  ;;  %v1202_v48 = vld [vmem:[#allocation11 + $0x168] sm:$0xff]  ;;  %s6348_s13 = sld [smem:[#allocation6 + $0x400]]  ;;  %s6393_s20 = sld [smem:[#allocation6 + $0x281]] }
  0x54   :  { %9184 = vst [vmem:[#allocation35_spill] sm:$0xff] %v6232_v38  ;;  %v6242_v56 = vsub.f32 %v1180_v4, %v2082_v32  ;;  %v6244_v57 = vpack.c.bf16 %v1241_v34, %v1237_v33  ;;  %v6246_v58 = vsub.f32 %v1182_v6, %v1237_v33  ;;  %5285 = vmatpush1.bf16.msra.mxu0 %v6232_v38  ;;  %v2085_v3 = vand.u32 4294901760, %v1183_v37  ;;  %v1192_v32 = vld [vmem:[#allocation11 + $0x118] sm:$0xff]  ;;  %s6362_s14 = sld [smem:[#allocation6 + $0x480]]  ;;  %s6402_s21 = sld [smem:[#allocation6 + $0x301]] }
  0x55   :  { %9185 = vst [vmem:[#allocation36_spill] sm:$0xff] %v6234_v39  ;;  %9186 = vst [vmem:[#allocation37_spill] sm:$0xff] %v6236_v40  ;;  %5473 = vmatpush3.bf16.msra.mxu1 %v6238_v45  ;;  %v6250_v61 = vsub.f32 %v1185_v12, %v1241_v34  ;;  %v6252_v62 = vpack.c.bf16 %v1243_v36, %v1239_v35  ;;  %v6254_v24 = vsub.f32 %v1181_v13, %v1239_v35  ;;  %v1193_v13 = vld [vmem:[#allocation11 + $0x120] sm:$0xff]  ;;  %s6404_s22 = sld [smem:[#allocation6 + $0x381]]  ;;  %s6424_s25 = sld [smem:[#allocation6 + $0x2]] }
  0x56   :  { %9187 = vst [vmem:[#allocation38_spill] sm:$0xff] %v6238_v45  ;;  %9188 = vst [vmem:[#allocation39_spill] sm:$0xff] %v6240_v54  ;;  %5287 = vmatprep.subr.bf16.mxu0 %v6244_v57  ;;  %5474 = vmatprep.subr.bf16.mxu1 %v8920_v5  ;;  %v6258_v4 = vsub.f32 %v1184_v14, %v1243_v36  ;;  %v2088_v6 = vand.u32 4294901760, %v1186_v46  ;;  %v1245_v29 = vand.u32 4294901760, %v1188_v47  ;;  %v1249_v31 = vand.u32 4294901760, %v1191_v52  ;;  %v1197_v45 = vld [vmem:[#allocation11 + $0x140] sm:$0xff] }
  0x57   :  { %9189 = vst [vmem:[#allocation40_spill] sm:$0xff] %v6244_v57  ;;  %9190 = vst [vmem:[#allocation41_spill] sm:$0xff] %v6252_v62  ;;  %v6260_v33 = vsub.f32 %v1183_v37, %v2085_v3  ;;  %v1251_v12 = vand.u32 4294901760, %v1190_v60  ;;  %v2091_v34 = vand.u32 4294901760, %v1189_v2  ;;  %v1196_v36 = vld [vmem:[#allocation11 + $0x138] sm:$0xff]  ;;  %v1195_v5 = vld [vmem:[#allocation11 + $0x130] sm:$0xff]  ;;  %v6277_v7 = vsub.f32 %v1187_v59, %v1247_v10 }
  0x58   :  { %9191 = vst [vmem:[#allocation42_spill] sm:$0xff] %v6254_v24  ;;  %9192 = vst [vmem:[#allocation43_spill] sm:$0xff] %v6258_v4  ;;  %v6262_v35 = vpack.c.bf16 %v2088_v6, %v2085_v3  ;;  %v6264_v38 = vsub.f32 %v1186_v46, %v2088_v6  ;;  %v6266_v57 = vpack.c.bf16 %v1249_v31, %v1245_v29  ;;  %5289 = vmatpush1.bf16.msra.mxu0 %v6252_v62  ;;  %v1203_v62 = vld [vmem:[#allocation11 + $0x170] sm:$0xff]  ;;  %s6413_s23 = sld [smem:[#allocation6 + $0x401]]  ;;  %s6426_s26 = sld [smem:[#allocation6 + $0x82]] }
  0x59   :  { %9193 = vst [vmem:[#allocation44_spill] sm:$0xff] %v6260_v33  ;;  %v6268_v14 = vsub.f32 %v1188_v47, %v1245_v29  ;;  %v6273_v37 = vsub.f32 %v1191_v52, %v1249_v31  ;;  %v6275_v9 = vpack.c.bf16 %v1251_v12, %v1247_v10  ;;  %v6279_v3 = vsub.f32 %v1190_v60, %v1251_v12  ;;  %v1200_v12 = vld [vmem:[#allocation11 + $0x158] sm:$0xff]  ;;  %s6415_s24 = sld [smem:[#allocation6 + $0x481]]  ;;  %s6434_s27 = sld [smem:[#allocation6 + $0x102]] }
  0x5a   :  { %9194 = vst [vmem:[#allocation45_spill] sm:$0xff] %v6262_v35  ;;  %9195 = vst [vmem:[#allocation46_spill] sm:$0xff] %v6266_v57  ;;  %5476 = vmatpush3.bf16.msra.mxu1 %v6262_v35  ;;  %5291 = vmatprep.subr.bf16.mxu0 %v6266_v57  ;;  %v2094_v46 = vand.u32 4294901760, %v1192_v32  ;;  %v6287_v47 = vsub.f32 %v1189_v2, %v2091_v34  ;;  %v1253_v6 = vand.u32 4294901760, %v1194_v17  ;;  %v1257_v52 = vand.u32 4294901760, %v1197_v45  ;;  %s6436_s28 = sld [smem:[#allocation6 + $0x182]] }
  0x5b   :  { %9196 = vst [vmem:[#allocation47_spill] sm:$0xff] %v6275_v9  ;;  %v9197_v29 = vmov 0.0|0.0   ;;  %v1255_v10 = vand.u32 4294901760, %v1193_v13  ;;  %v1259_v59 = vand.u32 4294901760, %v1196_v36  ;;  %v2097_v60 = vand.u32 4294901760, %v1195_v5  ;;  %s6444_s29 = sld [smem:[#allocation6 + $0x202]] }
  0x5c   :  { %5477 = vmatprep.subr.bf16.mxu1 %v9197_v29  ;;  %v2100_v31 = vand.u32 4294901760, %v1198_v16  ;;  %v6292_v63 = vpack.c.bf16 %v2094_v46, %v2091_v34  ;;  %v6294_v35 = vsub.f32 %v1192_v32, %v2094_v46  ;;  %v6296_v57 = vpack.c.bf16 %v1257_v52, %v1253_v6  ;;  %5293 = vmatpush1.bf16.msra.mxu0 %v6275_v9  ;;  %v1204_v32 = vld [vmem:[#allocation11 + $0x178] sm:$0xff]  ;;  %s6446_s30 = sld [smem:[#allocation6 + $0x282]] }
  0x5d   :  { %v6298_v2 = vsub.f32 %v1194_v17, %v1253_v6  ;;  %v6303_v27 = vsub.f32 %v1197_v45, %v1257_v52  ;;  %v6305_v25 = vpack.c.bf16 %v1259_v59, %v1255_v10  ;;  %v6307_v18 = vsub.f32 %v1193_v13, %v1255_v10  ;;  %s6454_s4 = sld [smem:[#allocation6 + $0x302]] }
  0x5e   :  { %9198 = vst [vmem:[#allocation48_spill] sm:$0xff] %v6292_v63  ;;  %9199 = vst [vmem:[#allocation49_spill] sm:$0xff] %v6296_v57  ;;  %v6309_v34 = vsub.f32 %v1196_v36, %v1259_v59  ;;  %5479 = vmatpush3.bf16.msra.mxu1 %v6292_v63  ;;  %5295 = vmatprep.subr.bf16.mxu0 %v6296_v57  ;;  %v6313_v17 = vpack.c.bf16 %v2100_v31, %v2097_v60  ;;  %v1261_v9 = vand.u32 4294901760, %v1200_v12  ;;  %s6456_s7 = sld [smem:[#allocation6 + $0x382]] }
  0x5f   :  { %9200 = vst [vmem:[#allocation50_spill] sm:$0xff] %v6305_v25  ;;  %v6315_v46 = vsub.f32 %v1195_v5, %v2097_v60  ;;  %v6317_v6 = vsub.f32 %v1198_v16, %v2100_v31  ;;  %5480 = vmatprep.subr.bf16.mxu1 %v9197_v29  ;;  %v1265_v45 = vand.u32 4294901760, %v1203_v62  ;;  %v1263_v13 = vand.u32 4294901760, %v1199_v50 }
  0x60   :  { %9201 = vst [vmem:[#allocation51_spill] sm:$0xff] %v6313_v17  ;;  %v1267_v36 = vand.u32 4294901760, %v1202_v48  ;;  %v2103_v52 = vand.u32 4294901760, %v1201_v41  ;;  %v6324_v10 = vsub.f32 %v1200_v12, %v1261_v9  ;;  %v2106_v59 = vand.u32 4294901760, %v1204_v32  ;;  %5297 = vmatpush1.bf16.msra.mxu0 %v6305_v25 }
  0x61   :  { %v6331_v16 = vpack.c.bf16 %v1265_v45, %v1261_v9  ;;  %v6333_v60 = vsub.f32 %v1203_v62, %v1265_v45  ;;  %v6337_v12 = vsub.f32 %v1199_v50, %v1263_v13  ;;  %v9208_v50 = vand.u32 4294901760, %v6161_v19 }
  0x62   :  { %v6335_v31 = vpack.c.bf16 %v1267_v36, %v1263_v13  ;;  %5482 = vmatpush3.bf16.msra.mxu1 %v6313_v17  ;;  %v6340_v5 = vsub.f32 %v1202_v48, %v1267_v36  ;;  %v6342_v57 = vpack.c.bf16 %v2106_v59, %v2103_v52  ;;  %v6344_v25 = vsub.f32 %v1201_v41, %v2103_v52 }
  0x63   :  { %9202 = vst [vmem:[#allocation52_spill] sm:$0xff] %v6331_v16  ;;  %v6346_v9 = vsub.f32 %v1204_v32, %v2106_v59  ;;  %5299 = vmatprep.subr.bf16.mxu0 %v6331_v16  ;;  %5483 = vmatprep.subr.bf16.mxu1 %v9197_v29  ;;  %v1316_v62 = vsub.f32 %v6161_v19, %v9208_v50  ;;  %v9209_v45 = vand.u32 4294901760, %v6163_v20  ;;  %v9210_v13 = vlaneseq }
  0x64   :  { %9203 = vst [vmem:[#allocation53_spill] sm:$0xff] %v6335_v31  ;;  %9204 = vst [vmem:[#allocation54_spill] sm:$0xff] %v6340_v5  ;;  %v85_v41 = vstv %s6270_s5  ;;  %v91_v32 = vstv %s6281_s2  ;;  %v97_v52 = vstv %s6283_s3  ;;  %v103_v59 = vstv %s6289_s8  ;;  %5301 = vmatpush1.bf16.msra.mxu0 %v6335_v31  ;;  %s6464_s5 = sld [smem:[#allocation6 + $0x402]]  ;;  %s6474_s3 = sld [smem:[#allocation6 + $0x3]] }
  0x65   :  { %9205 = vst [vmem:[#allocation55_spill] sm:$0xff] %v6342_v57  ;;  %9206 = vst [vmem:[#allocation56_spill] sm:$0xff] %v6344_v25  ;;  %v1328_v48 = vsub.f32 %v6163_v20, %v9209_v45  ;;  %v6359_v36 = vand.u32 127, %v9210_v13  ;;  %v109_v16 = vstv %s6300_s9  ;;  %v1317_v50 = vand.u32 4294901760, %v1316_v62  ;;  %s6466_s2 = sld [smem:[#allocation6 + $0x482]]  ;;  %s6476_s8 = sld [smem:[#allocation6 + $0x83]] }
  0x66   :  { %9207 = vst [vmem:[#allocation57_spill] sm:$0xff] %v6346_v9  ;;  %5485 = vmatpush3.bf16.msra.mxu1 %v6342_v57  ;;  %v9212_v45 = vmov 0.0   ;;  %v115_v57 = vstv %s6319_s10  ;;  %v121_v31 = vstv %s6322_s11  ;;  %v164_v20 = vstv %s6382_s18  ;;  %s6480_s9 = sld [smem:[#allocation6 + $0x103]]  ;;  %s6527_s18 = sld [smem:[#allocation6 + $0x84]] }
  0x67   :  { %9211 = vst [vmem:[#allocation58_spill] sm:$0xff] %v6359_v36  ;;  %v1329_v17 = vand.u32 4294901760, %v1328_v48  ;;  %vm86_vm1 = vcmp.eq.s32.totalorder %v6359_v36, %v85_v41  ;;  %vm92_vm2 = vcmp.eq.s32.totalorder %v6359_v36, %v91_v32  ;;  %vm98_vm3 = vcmp.eq.s32.totalorder %v6359_v36, %v97_v52  ;;  %5486 = vmatprep.subr.bf16.mxu1 %v9197_v29  ;;  %s6486_s10 = sld [smem:[#allocation6 + $0x183]] }
  0x68   :  { %v4295_v13 = vsel %vm86_vm1, 1.0, %v9212_v45  ;;  %v4297_v63 = vsel %vm92_vm2, 1.0, %v9212_v45  ;;  %vm104_vm4 = vcmp.eq.s32.totalorder %v6359_v36, %v103_v59  ;;  %v4299_v41 = vsel %vm98_vm3, 1.0, %v9212_v45  ;;  %s6490_s11 = sld [smem:[#allocation6 + $0x203]] }
  0x69   :  { %v5302_v62 = vpack.c.bf16 %v1329_v17, %v1317_v50  ;;  %v95_v48 = vadd.f32 %v4297_v63, %v4295_v13  ;;  %v4301_v32 = vsel %vm104_vm4, 1.0, %v9212_v45  ;;  %vm110_vm5 = vcmp.eq.s32.totalorder %v6359_v36, %v109_v16 }
  0x6a   :  { %v127_v52 = vstv %s6328_s12  ;;  %v4303_v63 = vsel %vm110_vm5, 1.0, %v9212_v45  ;;  %vm116_vm6 = vcmp.eq.s32.totalorder %v6359_v36, %v115_v57  ;;  %vm122_vm7 = vcmp.eq.s32.totalorder %v6359_v36, %v121_v31  ;;  %s6496_s12 = sld [smem:[#allocation6 + $0x283]] }
  0x6b   :  { %5303 = vmatprep.subr.bf16.mxu0 %v5302_v62  ;;  %v101_v17 = vadd.f32 %v4299_v41, %v95_v48  ;;  %v4305_v16 = vsel %vm116_vm6, 1.0, %v9212_v45  ;;  %v4307_v59 = vsel %vm122_vm7, 1.0, %v9212_v45  ;;  %vm128_vm8 = vcmp.eq.s32.totalorder %v6359_v36, %v127_v52 }
  0x6c   :  { %v133_v50 = vstv %s6348_s13  ;;  %v4309_v62 = vsel %vm128_vm8, 1.0, %v9212_v45  ;;  %v139_v57 = vstv %s6362_s14  ;;  %v146_v48 = vstv %s6368_s15  ;;  %s6498_s13 = sld [smem:[#allocation6 + $0x303]] }
  0x6d   :  { %v107_v13 = vadd.f32 %v4301_v32, %v101_v17  ;;  %vm134_vm9 = vcmp.eq.s32.totalorder %v6359_v36, %v133_v50  ;;  %vm140_vm10 = vcmp.eq.s32.totalorder %v6359_v36, %v139_v57  ;;  %v152_v41 = vstv %s6370_s16  ;;  %s6506_s14 = sld [smem:[#allocation6 + $0x383]] }
  0x6e   :  { %v4311_v31 = vsel %vm134_vm9, 1.0, %v9212_v45  ;;  %v4313_v32 = vsel %vm140_vm10, 1.0, %v9212_v45  ;;  %vm147_vm11 = vcmp.eq.s32.totalorder %v6359_v36, %v146_v48  ;;  %vm153_vm12 = vcmp.eq.s32.totalorder %v6359_v36, %v152_v41  ;;  %s6510_s15 = sld [smem:[#allocation6 + $0x403]] }
  0x6f   :  { %v113_v52 = vadd.f32 %v4303_v63, %v107_v13  ;;  %v4315_v17 = vsel %vm147_vm11, 1.0, %v9212_v45  ;;  %v4317_v50 = vsel %vm153_vm12, 1.0, %v9212_v45  ;;  %v158_v57 = vstv %s6380_s17  ;;  %s6516_s16 = sld [smem:[#allocation6 + $0x483]]  ;;  %s6518_s17 = sld [smem:[#allocation6 + $0x4]] }
  0x70   :  { %v156_v63 = vadd.f32 %v4317_v50, %v4315_v17  ;;  %vm159_vm13 = vcmp.eq.s32.totalorder %v6359_v36, %v158_v57  ;;  %vm165_vm14 = vcmp.eq.s32.totalorder %v6359_v36, %v164_v20  ;;  %v170_v41 = vstv %s6391_s19  ;;  %s6531_s19 = sld [smem:[#allocation6 + $0x104]] }
  0x71   :  { %v119_v19 = vadd.f32 %v4305_v16, %v113_v52  ;;  %v4319_v13 = vsel %vm159_vm13, 1.0, %v9212_v45  ;;  %v4321_v48 = vsel %vm165_vm14, 1.0, %v9212_v45  ;;  %v176_v9 = vstv %s6393_s20  ;;  %s6537_s20 = sld [smem:[#allocation6 + $0x184]] }
  0x72   :  { %v162_v16 = vadd.f32 %v4319_v13, %v156_v63  ;;  %vm171_vm15 = vcmp.eq.s32.totalorder %v6359_v36, %v170_v41  ;;  %vm177_vm1 = vcmp.eq.s32.totalorder %v6359_v36, %v176_v9  ;;  %v182_v17 = vstv %s6402_s21  ;;  %s6539_s21 = sld [smem:[#allocation6 + $0x204]] }
  0x73   :  { %v125_v25 = vadd.f32 %v4307_v59, %v119_v19  ;;  %v4323_v20 = vsel %vm171_vm15, 1.0, %v9212_v45  ;;  %v4325_v52 = vsel %vm177_vm1, 1.0, %v9212_v45  ;;  %v188_v50 = vstv %s6404_s22  ;;  %s6547_s22 = sld [smem:[#allocation6 + $0x284]] }
  0x74   :  { %v168_v19 = vadd.f32 %v4321_v48, %v162_v16  ;;  %vm183_vm2 = vcmp.eq.s32.totalorder %v6359_v36, %v182_v17  ;;  %vm189_vm3 = vcmp.eq.s32.totalorder %v6359_v36, %v188_v50  ;;  %v194_v63 = vstv %s6413_s23  ;;  %s6549_s23 = sld [smem:[#allocation6 + $0x304]] }
  0x75   :  { %v131_v57 = vadd.f32 %v4309_v62, %v125_v25  ;;  %v4327_v9 = vsel %vm183_vm2, 1.0, %v9212_v45  ;;  %v4329_v59 = vsel %vm189_vm3, 1.0, %v9212_v45  ;;  %v200_v13 = vstv %s6415_s24  ;;  %s6557_s24 = sld [smem:[#allocation6 + $0x384]] }
  0x76   :  { %v174_v25 = vadd.f32 %v4323_v20, %v168_v19  ;;  %vm195_vm4 = vcmp.eq.s32.totalorder %v6359_v36, %v194_v63  ;;  %vm201_vm5 = vcmp.eq.s32.totalorder %v6359_v36, %v200_v13  ;;  %v207_v16 = vstv %s6424_s25  ;;  %s6559_s25 = sld [smem:[#allocation6 + $0x404]] }
  0x77   :  { %v137_v41 = vadd.f32 %v4311_v31, %v131_v57  ;;  %v4331_v62 = vsel %vm195_vm4, 1.0, %v9212_v45  ;;  %v4333_v48 = vsel %vm201_vm5, 1.0, %v9212_v45  ;;  %v213_v17 = vstv %s6426_s26  ;;  %s6567_s26 = sld [smem:[#allocation6 + $0x484]] }
  0x78   :  { %v180_v5 = vadd.f32 %v4325_v52, %v174_v25  ;;  %vm208_vm6 = vcmp.eq.s32.totalorder %v6359_v36, %v207_v16  ;;  %vm214_vm7 = vcmp.eq.s32.totalorder %v6359_v36, %v213_v17  ;;  %v219_v57 = vstv %s6434_s27  ;;  %s6569_s27 = sld [smem:[#allocation6 + $0x5]] }
  0x79   :  { %v143_v50 = vadd.f32 %v4313_v32, %v137_v41  ;;  %v4335_v31 = vsel %vm208_vm6, 1.0, %v9212_v45  ;;  %v4337_v20 = vsel %vm214_vm7, 1.0, %v9212_v45  ;;  %v225_v19 = vstv %s6436_s28  ;;  %s6578_s28 = sld [smem:[#allocation6 + $0x85]] }
  0x7a   :  { %v186_v63 = vadd.f32 %v4327_v9, %v180_v5  ;;  %v217_v32 = vadd.f32 %v4337_v20, %v4335_v31  ;;  %vm220_vm8 = vcmp.eq.s32.totalorder %v6359_v36, %v219_v57  ;;  %vm226_vm9 = vcmp.eq.s32.totalorder %v6359_v36, %v225_v19 }
  0x7b   :  { %144 = vst [vmem:[#allocation2] sm:$0x1] %v143_v50  ;;  %v4339_v52 = vsel %vm220_vm8, 1.0, %v9212_v45  ;;  %v4341_v13 = vsel %vm226_vm9, 1.0, %v9212_v45  ;;  %v231_v41 = vstv %s6444_s29  ;;  %v237_v25 = vstv %s6446_s30  ;;  %s6580_s29 = sld [smem:[#allocation6 + $0x105]] }
  0x7c   :  { %v192_v16 = vadd.f32 %v4329_v59, %v186_v63  ;;  %v223_v17 = vadd.f32 %v4339_v52, %v217_v32  ;;  %vm232_vm10 = vcmp.eq.s32.totalorder %v6359_v36, %v231_v41  ;;  %vm238_vm11 = vcmp.eq.s32.totalorder %v6359_v36, %v237_v25  ;;  %s6588_s30 = sld [smem:[#allocation6 + $0x185]] }
  0x7d   :  { %v4343_v5 = vsel %vm232_vm10, 1.0, %v9212_v45  ;;  %v4345_v9 = vsel %vm238_vm11, 1.0, %v9212_v45  ;;  %v243_v50 = vstv %s6454_s4  ;;  %v249_v31 = vstv %s6456_s7  ;;  %s6590_s4 = sld [smem:[#allocation6 + $0x205]] }
  0x7e   :  { %v198_v59 = vadd.f32 %v4331_v62, %v192_v16  ;;  %v229_v20 = vadd.f32 %v4341_v13, %v223_v17  ;;  %vm244_vm12 = vcmp.eq.s32.totalorder %v6359_v36, %v243_v50  ;;  %vm250_vm13 = vcmp.eq.s32.totalorder %v6359_v36, %v249_v31  ;;  %s6598_s7 = sld [smem:[#allocation6 + $0x285]] }
  0x7f   :  { %v4347_v57 = vsel %vm244_vm12, 1.0, %v9212_v45  ;;  %v4349_v19 = vsel %vm250_vm13, 1.0, %v9212_v45  ;;  %v255_v63 = vstv %s6464_s5  ;;  %v261_v32 = vstv %s6466_s2  ;;  %s6600_s5 = sld [smem:[#allocation6 + $0x305]] }
  0x80   :  { %v204_v52 = vadd.f32 %v4333_v48, %v198_v59  ;;  %v235_v41 = vadd.f32 %v4343_v5, %v229_v20  ;;  %vm256_vm14 = vcmp.eq.s32.totalorder %v6359_v36, %v255_v63  ;;  %vm262_vm15 = vcmp.eq.s32.totalorder %v6359_v36, %v261_v32  ;;  %s6608_s2 = sld [smem:[#allocation6 + $0x385]] }
  0x81   :  { %v4351_v62 = vsel %vm256_vm14, 1.0, %v9212_v45  ;;  %v4353_v13 = vsel %vm262_vm15, 1.0, %v9212_v45  ;;  %v268_v25 = vstv %s6474_s3  ;;  %v274_v16 = vstv %s6476_s8  ;;  %s6610_s3 = sld [smem:[#allocation6 + $0x405]] }
  0x82   :  { %205 = vst [vmem:[#allocation2 + $0x1] sm:$0x1] %v204_v52  ;;  %v241_v48 = vadd.f32 %v4345_v9, %v235_v41  ;;  %vm269_vm1 = vcmp.eq.s32.totalorder %v6359_v36, %v268_v25  ;;  %vm275_vm2 = vcmp.eq.s32.totalorder %v6359_v36, %v274_v16  ;;  %v280_v17 = vstv %s6480_s9  ;;  %s6618_s8 = sld [smem:[#allocation6 + $0x485]]  ;;  %s6620_s9 = sld [smem:[#allocation6 + $0x6]] }
  0x83   :  { %v4355_v5 = vsel %vm269_vm1, 1.0, %v9212_v45  ;;  %v4357_v50 = vsel %vm275_vm2, 1.0, %v9212_v45  ;;  %vm281_vm3 = vcmp.eq.s32.totalorder %v6359_v36, %v280_v17  ;;  %v286_v31 = vstv %s6486_s10  ;;  %s6629_s10 = sld [smem:[#allocation6 + $0x86]] }
  0x84   :  { %v247_v59 = vadd.f32 %v4347_v57, %v241_v48  ;;  %v278_v20 = vadd.f32 %v4357_v50, %v4355_v5  ;;  %v4359_v9 = vsel %vm281_vm3, 1.0, %v9212_v45  ;;  %vm287_vm4 = vcmp.eq.s32.totalorder %v6359_v36, %v286_v31 }
  0x85   :  { %v4361_v63 = vsel %vm287_vm4, 1.0, %v9212_v45  ;;  %v292_v32 = vstv %s6490_s11  ;;  %v298_v52 = vstv %s6496_s12  ;;  %v304_v41 = vstv %s6498_s13  ;;  %s6631_s11 = sld [smem:[#allocation6 + $0x106]] }
  0x86   :  { %v253_v25 = vadd.f32 %v4349_v19, %v247_v59  ;;  %v284_v57 = vadd.f32 %v4359_v9, %v278_v20  ;;  %vm293_vm5 = vcmp.eq.s32.totalorder %v6359_v36, %v292_v32  ;;  %vm299_vm6 = vcmp.eq.s32.totalorder %v6359_v36, %v298_v52  ;;  %s6635_s12 = sld [smem:[#allocation6 + $0x186]] }
  0x87   :  { %v4363_v16 = vsel %vm293_vm5, 1.0, %v9212_v45  ;;  %v4365_v48 = vsel %vm299_vm6, 1.0, %v9212_v45  ;;  %vm305_vm7 = vcmp.eq.s32.totalorder %v6359_v36, %v304_v41  ;;  %v310_v17 = vstv %s6506_s14  ;;  %s6641_s13 = sld [smem:[#allocation6 + $0x206]] }
  0x88   :  { %v259_v5 = vadd.f32 %v4351_v62, %v253_v25  ;;  %v290_v19 = vadd.f32 %v4361_v63, %v284_v57  ;;  %v4367_v50 = vsel %vm305_vm7, 1.0, %v9212_v45  ;;  %vm311_vm8 = vcmp.eq.s32.totalorder %v6359_v36, %v310_v17  ;;  %s6645_s14 = sld [smem:[#allocation6 + $0x286]] }
  0x89   :  { %v4369_v31 = vsel %vm311_vm8, 1.0, %v9212_v45  ;;  %v316_v59 = vstv %s6510_s15  ;;  %v322_v20 = vstv %s6516_s16  ;;  %v329_v9 = vstv %s6518_s17  ;;  %s6651_s15 = sld [smem:[#allocation6 + $0x306]] }
  0x8a   :  { %v265_v32 = vadd.f32 %v4353_v13, %v259_v5  ;;  %v296_v52 = vadd.f32 %v4363_v16, %v290_v19  ;;  %vm317_vm9 = vcmp.eq.s32.totalorder %v6359_v36, %v316_v59  ;;  %vm323_vm10 = vcmp.eq.s32.totalorder %v6359_v36, %v322_v20  ;;  %s6653_s16 = sld [smem:[#allocation6 + $0x386]] }
  0x8b   :  { %v4371_v62 = vsel %vm317_vm9, 1.0, %v9212_v45  ;;  %v4373_v63 = vsel %vm323_vm10, 1.0, %v9212_v45  ;;  %vm330_vm11 = vcmp.eq.s32.totalorder %v6359_v36, %v329_v9  ;;  %v335_v41 = vstv %s6527_s18  ;;  %s6661_s17 = sld [smem:[#allocation6 + $0x406]] }
  0x8c   :  { %266 = vst [vmem:[#allocation2 + $0x2] sm:$0x1] %v265_v32  ;;  %v302_v13 = vadd.f32 %v4365_v48, %v296_v52  ;;  %v4375_v25 = vsel %vm330_vm11, 1.0, %v9212_v45  ;;  %vm336_vm12 = vcmp.eq.s32.totalorder %v6359_v36, %v335_v41  ;;  %v341_v57 = vstv %s6531_s19  ;;  %s6665_s18 = sld [smem:[#allocation6 + $0x486]]  ;;  %s6671_s19 = sld [smem:[#allocation6 + $0x7]] }
  0x8d   :  { %v4377_v16 = vsel %vm336_vm12, 1.0, %v9212_v45  ;;  %vm342_vm13 = vcmp.eq.s32.totalorder %v6359_v36, %v341_v57  ;;  %v347_v17 = vstv %s6537_s20  ;;  %v353_v5 = vstv %s6539_s21  ;;  %s6673_s20 = sld [smem:[#allocation6 + $0x87]] }
  0x8e   :  { %v308_v19 = vadd.f32 %v4367_v50, %v302_v13  ;;  %v339_v48 = vadd.f32 %v4377_v16, %v4375_v25  ;;  %v4379_v59 = vsel %vm342_vm13, 1.0, %v9212_v45  ;;  %vm348_vm14 = vcmp.eq.s32.totalorder %v6359_v36, %v347_v17  ;;  %s6682_s21 = sld [smem:[#allocation6 + $0x107]] }
  0x8f   :  { %v4381_v20 = vsel %vm348_vm14, 1.0, %v9212_v45  ;;  %vm354_vm15 = vcmp.eq.s32.totalorder %v6359_v36, %v353_v5  ;;  %v359_v9 = vstv %s6547_s22  ;;  %v365_v32 = vstv %s6549_s23  ;;  %s6686_s22 = sld [smem:[#allocation6 + $0x187]] }
  0x90   :  { %v314_v52 = vadd.f32 %v4369_v31, %v308_v19  ;;  %v345_v50 = vadd.f32 %v4379_v59, %v339_v48  ;;  %v4383_v41 = vsel %vm354_vm15, 1.0, %v9212_v45  ;;  %vm360_vm1 = vcmp.eq.s32.totalorder %v6359_v36, %v359_v9  ;;  %s6692_s23 = sld [smem:[#allocation6 + $0x207]] }
  0x91   :  { %v4385_v13 = vsel %vm360_vm1, 1.0, %v9212_v45  ;;  %vm366_vm2 = vcmp.eq.s32.totalorder %v6359_v36, %v365_v32  ;;  %v371_v25 = vstv %s6557_s24  ;;  %v377_v57 = vstv %s6559_s25  ;;  %s6696_s24 = sld [smem:[#allocation6 + $0x287]] }
  0x92   :  { %v320_v16 = vadd.f32 %v4371_v62, %v314_v52  ;;  %v351_v31 = vadd.f32 %v4381_v20, %v345_v50  ;;  %v4387_v17 = vsel %vm366_vm2, 1.0, %v9212_v45  ;;  %vm372_vm3 = vcmp.eq.s32.totalorder %v6359_v36, %v371_v25  ;;  %s6702_s25 = sld [smem:[#allocation6 + $0x307]] }
  0x93   :  { %v4389_v5 = vsel %vm372_vm3, 1.0, %v9212_v45  ;;  %vm378_vm4 = vcmp.eq.s32.totalorder %v6359_v36, %v377_v57  ;;  %v383_v19 = vstv %s6567_s26  ;;  %v390_v48 = vstv %s6569_s27  ;;  %s6706_s26 = sld [smem:[#allocation6 + $0x387]] }
  0x94   :  { %v326_v59 = vadd.f32 %v4373_v63, %v320_v16  ;;  %v357_v9 = vadd.f32 %v4383_v41, %v351_v31  ;;  %v4391_v62 = vsel %vm378_vm4, 1.0, %v9212_v45  ;;  %vm384_vm5 = vcmp.eq.s32.totalorder %v6359_v36, %v383_v19  ;;  %s6712_s27 = sld [smem:[#allocation6 + $0x407]] }
  0x95   :  { %v4393_v20 = vsel %vm384_vm5, 1.0, %v9212_v45  ;;  %vm391_vm6 = vcmp.eq.s32.totalorder %v6359_v36, %v390_v48  ;;  %v396_v32 = vstv %s6578_s28  ;;  %v402_v52 = vstv %s6580_s29  ;;  %s6716_s28 = sld [smem:[#allocation6 + $0x487]]  ;;  %s7145_s29 = sld [smem:[#allocation9]] }
  0x96   :  { %327 = vst [vmem:[#allocation2 + $0x3] sm:$0x1] %v326_v59  ;;  %v363_v50 = vadd.f32 %v4385_v13, %v357_v9  ;;  %v4395_v63 = vsel %vm391_vm6, 1.0, %v9212_v45  ;;  %vm397_vm7 = vcmp.eq.s32.totalorder %v6359_v36, %v396_v32  ;;  %vm403_vm8 = vcmp.eq.s32.totalorder %v6359_v36, %v402_v52 }
  0x97   :  { %v4397_v41 = vsel %vm397_vm7, 1.0, %v9212_v45  ;;  %v4399_v25 = vsel %vm403_vm8, 1.0, %v9212_v45  ;;  %v408_v57 = vstv %s6588_s30  ;;  %v414_v16 = vstv %s6590_s4  ;;  %s4455_s30 = sld [smem:[#allocation9 + $0x80]] }
  0x98   :  { %v369_v31 = vadd.f32 %v4387_v17, %v363_v50  ;;  %v400_v13 = vadd.f32 %v4397_v41, %v4395_v63  ;;  %vm409_vm9 = vcmp.eq.s32.totalorder %v6359_v36, %v408_v57  ;;  %vm415_vm10 = vcmp.eq.s32.totalorder %v6359_v36, %v414_v16  ;;  %s7198_s4 = sld [smem:[#allocation9 + $0x100]] }
  0x99   :  { %v4401_v19 = vsel %vm409_vm9, 1.0, %v9212_v45  ;;  %v4403_v48 = vsel %vm415_vm10, 1.0, %v9212_v45  ;;  %v420_v59 = vstv %s6598_s7  ;;  %v426_v9 = vstv %s6600_s5  ;;  %s7218_s7 = sld [smem:[#allocation9 + $0x180]] }
  0x9a   :  { %v375_v32 = vadd.f32 %v4389_v5, %v369_v31  ;;  %v406_v52 = vadd.f32 %v4399_v25, %v400_v13  ;;  %vm421_vm11 = vcmp.eq.s32.totalorder %v6359_v36, %v420_v59  ;;  %vm427_vm12 = vcmp.eq.s32.totalorder %v6359_v36, %v426_v9  ;;  %s7237_s5 = sld [smem:[#allocation9 + $0x200]] }
  0x9b   :  { %v4405_v17 = vsel %vm421_vm11, 1.0, %v9212_v45  ;;  %v4407_v50 = vsel %vm427_vm12, 1.0, %v9212_v45  ;;  %v432_v63 = vstv %s6608_s2  ;;  %v438_v41 = vstv %s6610_s3  ;;  %s7289_s2 = sld [smem:[#allocation9 + $0x280]] }
  0x9c   :  { %v381_v5 = vadd.f32 %v4391_v62, %v375_v32  ;;  %v412_v25 = vadd.f32 %v4401_v19, %v406_v52  ;;  %vm433_vm13 = vcmp.eq.s32.totalorder %v6359_v36, %v432_v63  ;;  %vm439_vm14 = vcmp.eq.s32.totalorder %v6359_v36, %v438_v41  ;;  %s7356_s3 = sld [smem:[#allocation9 + $0x300]] }
  0x9d   :  { %v4409_v57 = vsel %vm433_vm13, 1.0, %v9212_v45  ;;  %v4411_v16 = vsel %vm439_vm14, 1.0, %v9212_v45  ;;  %v444_v31 = vstv %s6618_s8  ;;  %v451_v13 = vstv %s6620_s9  ;;  %s7374_s8 = sld [smem:[#allocation9 + $0x380]] }
  0x9e   :  { %v387_v59 = vadd.f32 %v4393_v20, %v381_v5  ;;  %v418_v9 = vadd.f32 %v4403_v48, %v412_v25  ;;  %vm445_vm15 = vcmp.eq.s32.totalorder %v6359_v36, %v444_v31  ;;  %vm452_vm1 = vcmp.eq.s32.totalorder %v6359_v36, %v451_v13  ;;  %s7396_s9 = sld [smem:[#allocation9 + $0x400]] }
  0x9f   :  { %v4413_v62 = vsel %vm445_vm15, 1.0, %v9212_v45  ;;  %v4415_v19 = vsel %vm452_vm1, 1.0, %v9212_v45  ;;  %v457_v32 = vstv %s6629_s10  ;;  %v463_v52 = vstv %s6631_s11  ;;  %s7398_s10 = sld [smem:[#allocation9 + $0x480]] }
  0xa0   :  { %388 = vst [vmem:[#allocation2 + $0x4] sm:$0x1] %v387_v59  ;;  %v424_v20 = vadd.f32 %v4405_v17, %v418_v9  ;;  %vm458_vm2 = vcmp.eq.s32.totalorder %v6359_v36, %v457_v32  ;;  %vm464_vm3 = vcmp.eq.s32.totalorder %v6359_v36, %v463_v52  ;;  %v469_v48 = vstv %s6635_s12  ;;  %s7410_s11 = sld [smem:[#allocation9 + $0x500]]  ;;  %s7421_s12 = sld [smem:[#allocation9 + $0x1]] }
  0xa1   :  { %v4417_v63 = vsel %vm458_vm2, 1.0, %v9212_v45  ;;  %v4419_v41 = vsel %vm464_vm3, 1.0, %v9212_v45  ;;  %vm470_vm4 = vcmp.eq.s32.totalorder %v6359_v36, %v469_v48  ;;  %v475_v5 = vstv %s6641_s13  ;;  %s7432_s13 = sld [smem:[#allocation9 + $0x580]] }
  0xa2   :  { %v430_v25 = vadd.f32 %v4407_v50, %v424_v20  ;;  %v461_v31 = vadd.f32 %v4417_v63, %v4415_v19  ;;  %v4421_v17 = vsel %vm470_vm4, 1.0, %v9212_v45  ;;  %vm476_vm5 = vcmp.eq.s32.totalorder %v6359_v36, %v475_v5 }
  0xa3   :  { %v4423_v13 = vsel %vm476_vm5, 1.0, %v9212_v45  ;;  %v481_v59 = vstv %s6645_s14  ;;  %v487_v9 = vstv %s6651_s15  ;;  %v493_v32 = vstv %s6653_s16  ;;  %s7434_s14 = sld [smem:[#allocation9 + $0x81]] }
  0xa4   :  { %v436_v52 = vadd.f32 %v4409_v57, %v430_v25  ;;  %v467_v48 = vadd.f32 %v4419_v41, %v461_v31  ;;  %vm482_vm6 = vcmp.eq.s32.totalorder %v6359_v36, %v481_v59  ;;  %vm488_vm7 = vcmp.eq.s32.totalorder %v6359_v36, %v487_v9  ;;  %s7451_s15 = sld [smem:[#allocation9 + $0x101]] }
  0xa5   :  { %v4425_v50 = vsel %vm482_vm6, 1.0, %v9212_v45  ;;  %v4427_v19 = vsel %vm488_vm7, 1.0, %v9212_v45  ;;  %vm494_vm8 = vcmp.eq.s32.totalorder %v6359_v36, %v493_v32  ;;  %v499_v20 = vstv %s6661_s17  ;;  %s7467_s16 = sld [smem:[#allocation9 + $0x181]] }
  0xa6   :  { %v442_v57 = vadd.f32 %v4411_v16, %v436_v52  ;;  %v473_v63 = vadd.f32 %v4421_v17, %v467_v48  ;;  %v4429_v41 = vsel %vm494_vm8, 1.0, %v9212_v45  ;;  %vm500_vm9 = vcmp.eq.s32.totalorder %v6359_v36, %v499_v20  ;;  %s7469_s17 = sld [smem:[#allocation9 + $0x201]] }
  0xa7   :  { %v4431_v5 = vsel %vm500_vm9, 1.0, %v9212_v45  ;;  %v505_v25 = vstv %s6665_s18  ;;  %v512_v31 = vstv %s6671_s19  ;;  %v518_v59 = vstv %s6673_s20  ;;  %s7477_s18 = sld [smem:[#allocation9 + $0x281]] }
  0xa8   :  { %v448_v9 = vadd.f32 %v4413_v62, %v442_v57  ;;  %v479_v32 = vadd.f32 %v4423_v13, %v473_v63  ;;  %vm506_vm10 = vcmp.eq.s32.totalorder %v6359_v36, %v505_v25  ;;  %vm513_vm11 = vcmp.eq.s32.totalorder %v6359_v36, %v512_v31  ;;  %s7492_s19 = sld [smem:[#allocation9 + $0x301]] }
  0xa9   :  { %v4433_v16 = vsel %vm506_vm10, 1.0, %v9212_v45  ;;  %v4435_v17 = vsel %vm513_vm11, 1.0, %v9212_v45  ;;  %vm519_vm12 = vcmp.eq.s32.totalorder %v6359_v36, %v518_v59  ;;  %v524_v52 = vstv %s6682_s21  ;;  %s7502_s20 = sld [smem:[#allocation9 + $0x381]] }
  0xaa   :  { %449 = vst [vmem:[#allocation2 + $0x5] sm:$0x1] %v448_v9  ;;  %v485_v48 = vadd.f32 %v4425_v50, %v479_v32  ;;  %v4437_v62 = vsel %vm519_vm12, 1.0, %v9212_v45  ;;  %vm525_vm13 = vcmp.eq.s32.totalorder %v6359_v36, %v524_v52  ;;  %v530_v13 = vstv %s6686_s22  ;;  %s7504_s21 = sld [smem:[#allocation9 + $0x401]] }
  0xab   :  { %v522_v20 = vadd.f32 %v4437_v62, %v4435_v17  ;;  %v4439_v57 = vsel %vm525_vm13, 1.0, %v9212_v45  ;;  %vm531_vm14 = vcmp.eq.s32.totalorder %v6359_v36, %v530_v13  ;;  %v536_v63 = vstv %s6692_s23  ;;  %s7515_s22 = sld [smem:[#allocation9 + $0x481]] }
  0xac   :  { %v491_v25 = vadd.f32 %v4427_v19, %v485_v48  ;;  %v4441_v31 = vsel %vm531_vm14, 1.0, %v9212_v45  ;;  %vm537_vm15 = vcmp.eq.s32.totalorder %v6359_v36, %v536_v63  ;;  %v542_v59 = vstv %s6696_s24  ;;  %s7527_s23 = sld [smem:[#allocation9 + $0x501]] }
  0xad   :  { %v528_v50 = vadd.f32 %v4439_v57, %v522_v20  ;;  %v4443_v9 = vsel %vm537_vm15, 1.0, %v9212_v45  ;;  %vm543_vm1 = vcmp.eq.s32.totalorder %v6359_v36, %v542_v59  ;;  %v548_v32 = vstv %s6702_s25  ;;  %s7529_s24 = sld [smem:[#allocation9 + $0x581]]  ;;  %s7534_s25 = sld [smem:[#allocation9 + $0x2]] }
  0xae   :  { %v497_v17 = vadd.f32 %v4429_v41, %v491_v25  ;;  %v4445_v52 = vsel %vm543_vm1, 1.0, %v9212_v45  ;;  %vm549_vm2 = vcmp.eq.s32.totalorder %v6359_v36, %v548_v32  ;;  %v554_v62 = vstv %s6706_s26  ;;  %s7539_s26 = sld [smem:[#allocation9 + $0x82]] }
  0xaf   :  { %v534_v13 = vadd.f32 %v4441_v31, %v528_v50  ;;  %v4447_v19 = vsel %vm549_vm2, 1.0, %v9212_v45  ;;  %vm555_vm3 = vcmp.eq.s32.totalorder %v6359_v36, %v554_v62  ;;  %v560_v48 = vstv %s6712_s27  ;;  %s7541_s27 = sld [smem:[#allocation9 + $0x102]] }
  0xb0   :  { %v503_v63 = vadd.f32 %v4431_v5, %v497_v17  ;;  %v4449_v20 = vsel %vm555_vm3, 1.0, %v9212_v45  ;;  %vm561_vm4 = vcmp.eq.s32.totalorder %v6359_v36, %v560_v48  ;;  %v566_v57 = vstv %s6716_s28  ;;  %s7552_s28 = sld [smem:[#allocation9 + $0x182]] }
  0xb1   :  { %v540_v59 = vadd.f32 %v4443_v9, %v534_v13  ;;  %v4451_v41 = vsel %vm561_vm4, 1.0, %v9212_v45  ;;  %vm567_vm5 = vcmp.eq.s32.totalorder %v6359_v36, %v566_v57  ;;  %v8971_v25 = vand.u32 4294901760, %v6165_v21 }
  0xb2   :  { %v509_v32 = vadd.f32 %v4433_v16, %v503_v63  ;;  %v4453_v31 = vsel %vm567_vm5, 1.0, %v9212_v45  ;;  %v8974_v50 = vand.u32 4294901760, %v6169_v26  ;;  %v8975_v62 = vand.u32 4294901760, %v6173_v28 }
  0xb3   :  { %v546_v5 = vadd.f32 %v4445_v52, %v540_v59  ;;  %v1322_v17 = vsub.f32 %v6165_v21, %v8971_v25  ;;  %v8980_v9 = vand.u32 4294901760, %v6176_v30  ;;  %v8985_v13 = vand.u32 4294901760, %v6182_v42 }
  0xb4   :  { %510 = vst [vmem:[#allocation2 + $0x6] sm:$0x1] %v509_v32  ;;  %v1334_v16 = vsub.f32 %v6169_v26, %v8974_v50  ;;  %v2155_v48 = vsub.f32 %v6173_v28, %v8975_v62  ;;  %v8986_v63 = vand.u32 4294901760, %v6184_v43  ;;  %v8987_v52 = vand.u32 4294901760, %v6187_v44 }
  0xb5   :  { %v552_v57 = vadd.f32 %v4447_v19, %v546_v5  ;;  %v1323_v59 = vand.u32 4294901760, %v1322_v17  ;;  %v2162_v25 = vsub.f32 %v6176_v30, %v8980_v9  ;;  %v1340_v32 = vsub.f32 %v6182_v42, %v8985_v13 }
  0xb6   :  { %v1335_v36 = vand.u32 4294901760, %v1334_v16  ;;  %v2156_v50 = vand.u32 4294901760, %v2155_v48  ;;  %v1352_v62 = vsub.f32 %v6184_v43, %v8986_v63  ;;  %v1346_v28 = vsub.f32 %v6187_v44, %v8987_v52 }
  0xb7   :  { %v558_v19 = vadd.f32 %v4449_v20, %v552_v57  ;;  %v2163_v5 = vand.u32 4294901760, %v2162_v25  ;;  %v1341_v17 = vand.u32 4294901760, %v1340_v32  ;;  %v8998_v26 = vand.u32 4294901760, %v6191_v49 }
  0xb8   :  { %v6775_v9 = vpack.c.bf16 %v1335_v36, %v1323_v59  ;;  %v1353_v30 = vand.u32 4294901760, %v1352_v62  ;;  %v1347_v21 = vand.u32 4294901760, %v1346_v28  ;;  %v8996_v16 = vand.u32 4294901760, %v6195_v51 }
  0xb9   :  { %v564_v48 = vadd.f32 %v4451_v41, %v558_v19  ;;  %v6778_v13 = vpack.c.bf16 %v2163_v5, %v2156_v50  ;;  %v1358_v63 = vsub.f32 %v6191_v49, %v8998_v26  ;;  %v8990_v52 = vand.u32 4294901760, %v6198_v53 }
  0xba   :  { %v6784_v20 = vpack.c.bf16 %v1353_v30, %v1341_v17  ;;  %v2169_v36 = vsub.f32 %v6195_v51, %v8996_v16  ;;  %v8988_v25 = vand.u32 4294901760, %v6200_v55  ;;  %v8989_v28 = vand.u32 4294901760, %v6206_v0 }
  0xbb   :  { %v570_v62 = vadd.f32 %v4453_v31, %v564_v48  ;;  %v1359_v41 = vand.u32 4294901760, %v1358_v63  ;;  %v2176_v50 = vsub.f32 %v6198_v53, %v8990_v52  ;;  %v8991_v57 = vand.u32 4294901760, %v6209_v1 }
  0xbc   :  { %v2170_v59 = vand.u32 4294901760, %v2169_v36  ;;  %v1364_v30 = vsub.f32 %v6200_v55, %v8988_v25  ;;  %v1376_v32 = vsub.f32 %v6206_v0, %v8989_v28  ;;  %v8992_v19 = vand.u32 4294901760, %v6213_v8 }
  0xbd   :  { %571 = vst [vmem:[#allocation2 + $0x7] sm:$0x1] %v570_v62  ;;  %v6802_v31 = vpack.c.bf16 %v1359_v41, %v1347_v21  ;;  %v2177_v63 = vand.u32 4294901760, %v2176_v50  ;;  %v1370_v5 = vsub.f32 %v6209_v1, %v8991_v57  ;;  %v8993_v17 = vand.u32 4294901760, %v6217_v11 }
  0xbe   :  { %v1365_v48 = vand.u32 4294901760, %v1364_v30  ;;  %v1377_v36 = vand.u32 4294901760, %v1376_v32  ;;  %v1382_v25 = vsub.f32 %v6213_v8, %v8992_v19  ;;  %v8994_v28 = vand.u32 4294901760, %v6220_v15 }
  0xbf   :  { %v6812_v52 = vpack.c.bf16 %v2177_v63, %v2170_v59  ;;  %v1371_v62 = vand.u32 4294901760, %v1370_v5  ;;  %v2183_v21 = vsub.f32 %v6217_v11, %v8993_v17  ;;  %v8995_v41 = vand.u32 4294901760, %v6224_v22 }
  0xc0   :  { %v6818_v50 = vpack.c.bf16 %v1377_v36, %v1365_v48  ;;  %v1383_v57 = vand.u32 4294901760, %v1382_v25  ;;  %v2190_v30 = vsub.f32 %v6220_v15, %v8994_v28  ;;  %v8997_v32 = vand.u32 4294901760, %v6226_v23 }
  0xc1   :  { %v2184_v19 = vand.u32 4294901760, %v2183_v21  ;;  %v1388_v59 = vsub.f32 %v6224_v22, %v8995_v41  ;;  %v9001_v63 = vand.u32 4294901760, %v6234_v39  ;;  %v9002_v5 = vand.u32 4294901760, %v6236_v40 }
  0xc2   :  { %v6829_v17 = vpack.c.bf16 %v1383_v57, %v1371_v62  ;;  %v2191_v48 = vand.u32 4294901760, %v2190_v30  ;;  %v1400_v25 = vsub.f32 %v6226_v23, %v8997_v32  ;;  %v9007_v36 = vand.u32 4294901760, %v6240_v54 }
  0xc3   :  { %v1389_v28 = vand.u32 4294901760, %v1388_v59  ;;  %v1394_v21 = vsub.f32 %v6234_v39, %v9001_v63  ;;  %v1406_v41 = vsub.f32 %v6236_v40, %v9002_v5  ;;  %v9011_v16 = vand.u32 4294901760, %v6242_v56 }
  0xc4   :  { %v1156_v57 = vld [vmem:[#allocation2] sm:$0xff]  ;;  %v6842_v62 = vpack.c.bf16 %v2191_v48, %v2184_v19  ;;  %v1401_v30 = vand.u32 4294901760, %v1400_v25  ;;  %v2197_v32 = vsub.f32 %v6240_v54, %v9007_v36  ;;  %v9010_v59 = vand.u32 4294901760, %v6246_v58 }
  0xc5   :  { %v6848_v26 = vand.u32 4294901760, %v1156_v57  ;;  %v1395_v23 = vand.u32 4294901760, %v1394_v21  ;;  %v1407_v63 = vand.u32 4294901760, %v1406_v41  ;;  %v2204_v5 = vsub.f32 %v6242_v56, %v9011_v16 }
  0xc6   :  { %v6853_v40 = vpack.c.bf16 %v1401_v30, %v1389_v28  ;;  %v2198_v39 = vand.u32 4294901760, %v2197_v32  ;;  %v1412_v19 = vsub.f32 %v6246_v58, %v9010_v59  ;;  %v9012_v48 = vand.u32 4294901760, %v6250_v61 }
  0xc7   :  { %9213 = vst [vmem:[#allocation59_spill] sm:$0xff] %v6848_v26  ;;  %v6860_v25 = vsub.f32 %v1156_v57, %v6848_v26  ;;  %v6862_v36 = vpack.c.bf16 %v1407_v63, %v1395_v23  ;;  %v2205_v21 = vand.u32 4294901760, %v2204_v5  ;;  %v9013_v41 = vand.u32 4294901760, %v6254_v24 }
  0xc8   :  { %v1413_v54 = vand.u32 4294901760, %v1412_v19  ;;  %v1424_v28 = vsub.f32 %v6250_v61, %v9012_v48  ;;  %v9018_v32 = vand.u32 4294901760, %v6258_v4  ;;  %v9019_v30 = vand.u32 4294901760, %v6260_v33 }
  0xc9   :  { %9214 = vst [vmem:[#allocation60_spill] sm:$0xff] %v6860_v25  ;;  %v6871_v59 = vand.u32 4294901760, %v6860_v25  ;;  %v6873_v16 = vpack.c.bf16 %v2205_v21, %v2198_v39  ;;  %v1418_v23 = vsub.f32 %v6254_v24, %v9013_v41  ;;  %v9028_v63 = vand.u32 4294901760, %v6264_v38 }
  0xca   :  { %v1425_v5 = vand.u32 4294901760, %v1424_v28  ;;  %v1430_v57 = vsub.f32 %v6258_v4, %v9018_v32  ;;  %v2211_v19 = vsub.f32 %v6260_v33, %v9019_v30  ;;  %v9044_v48 = vand.u32 4294901760, %v6268_v14 }
  0xcb   :  { %9215 = vst [vmem:[#allocation61_spill] sm:$0xff] %v6871_v59  ;;  %v1305_v39 = vsub.f32 %v6860_v25, %v6871_v59  ;;  %v1419_v21 = vand.u32 4294901760, %v1418_v23  ;;  %v2218_v41 = vsub.f32 %v6264_v38, %v9028_v63  ;;  %v9041_v28 = vand.u32 4294901760, %v6273_v37 }
  0xcc   :  { %v6892_v26 = vpack.c.bf16 %v1425_v5, %v1413_v54  ;;  %v1431_v24 = vand.u32 4294901760, %v1430_v57  ;;  %v2212_v32 = vand.u32 4294901760, %v2211_v19  ;;  %v1436_v30 = vsub.f32 %v6268_v14, %v9044_v48 }
  0xcd   :  { %v1306_v33 = vand.u32 4294901760, %v1305_v39  ;;  %v2219_v4 = vand.u32 4294901760, %v2218_v41  ;;  %v1448_v23 = vsub.f32 %v6273_v37, %v9041_v28  ;;  %v9035_v59 = vand.u32 4294901760, %v6277_v7 }
  0xce   :  { %v6901_v25 = vpack.c.bf16 %v1431_v24, %v1419_v21  ;;  %v1437_v63 = vand.u32 4294901760, %v1436_v30  ;;  %v9029_v54 = vand.u32 4294901760, %v6279_v3  ;;  %v9030_v5 = vand.u32 4294901760, %v6287_v47 }
  0xcf   :  { %1307 = vmatmul.mubr.f32.vlgmr.msra.gmra.mrb[0].mxu0 %v1306_v33  ;;  %4883 = vmatmul.mubr.f32.vlgmr.msra.gmra.mrb[0].mxu1 %v1306_v33  ;;  %v6905_v57 = vpack.c.bf16 %v2219_v4, %v2212_v32  ;;  %v1449_v19 = vand.u32 4294901760, %v1448_v23  ;;  %v1442_v41 = vsub.f32 %v6277_v7, %v9035_v59  ;;  %v9033_v39 = vand.u32 4294901760, %v6294_v35 }
  0xd0   :  { %5305 = vmatpush1.bf16.msra.mxu0 %v6775_v9  ;;  %5488 = vmatpush3.bf16.msra.mxu1 %v6778_v13  ;;  %v1454_v24 = vsub.f32 %v6279_v3, %v9029_v54  ;;  %v2225_v4 = vsub.f32 %v6287_v47, %v9030_v5  ;;  %v9032_v33 = vand.u32 4294901760, %v6298_v2  ;;  %v9031_v32 = vand.u32 4294901760, %v6303_v27 }
  0xd1   :  { %5307 = vmatprep.subr.bf16.mxu0 %v6784_v20  ;;  %5489 = vmatprep.subr.bf16.mxu1 %v9197_v29  ;;  %v6923_v30 = vpack.c.bf16 %v1449_v19, %v1437_v63  ;;  %v1443_v9 = vand.u32 4294901760, %v1442_v41  ;;  %v2232_v13 = vsub.f32 %v6294_v35, %v9033_v39  ;;  %v9034_v21 = vand.u32 4294901760, %v6307_v18 }
  0xd2   :  { %v1455_v23 = vand.u32 4294901760, %v1454_v24  ;;  %v2226_v54 = vand.u32 4294901760, %v2225_v4  ;;  %v1460_v5 = vsub.f32 %v6298_v2, %v9032_v33  ;;  %v1472_v20 = vsub.f32 %v6303_v27, %v9031_v32  ;;  %1537 = vmatprep.mubr.f32.mxu0 %v9212_v45  ;;  %4917 = vmatprep.mubr.msk.f32.mxu1 %vm6089_vm0, %v9212_v45  ;;  %v9223_v45 = vld [vmem:[#allocation26_spill] sm:$0xff] }
  0xd3   :  { %v2233_v63 = vand.u32 4294901760, %v2232_v13  ;;  %v1466_v19 = vsub.f32 %v6307_v18, %v9034_v21  ;;  %v9039_v41 = vand.u32 4294901760, %v6309_v34  ;;  %v9037_v24 = vand.u32 4294901760, %v6315_v46 }
  0xd4   :  { %5309 = vmatpush1.bf16.msra.mxu0 %v6802_v31  ;;  %5491 = vmatpush3.bf16.msra.mxu1 %v6812_v52  ;;  %v6945_v4 = vpack.c.bf16 %v1455_v23, %v1443_v9  ;;  %v1461_v32 = vand.u32 4294901760, %v1460_v5  ;;  %v1473_v33 = vand.u32 4294901760, %v1472_v20  ;;  %v9036_v39 = vand.u32 4294901760, %v6317_v6 }
  0xd5   :  { %5311 = vmatprep.subr.bf16.mxu0 %v6818_v50  ;;  %5492 = vmatprep.subr.bf16.mxu1 %v9197_v29  ;;  %v6950_v13 = vpack.c.bf16 %v2233_v63, %v2226_v54  ;;  %v1467_v21 = vand.u32 4294901760, %v1466_v19  ;;  %v1478_v59 = vsub.f32 %v6309_v34, %v9039_v41  ;;  %v2239_v52 = vsub.f32 %v6315_v46, %v9037_v24  ;;  %v9216_v63 = vld [vmem:[#allocation54_spill] sm:$0xff]  ;;  %v9217_v24 = vld [vmem:[#allocation56_spill] sm:$0xff] }
  0xd6   :  { %v6958_v31 = vpack.c.bf16 %v1473_v33, %v1461_v32  ;;  %v2246_v5 = vsub.f32 %v6317_v6, %v9036_v39  ;;  %v9038_v50 = vand.u32 4294901760, %v6324_v10  ;;  %v9040_v54 = vand.u32 4294901760, %v6333_v60 }
  0xd7   :  { %v1479_v9 = vand.u32 4294901760, %v1478_v59  ;;  %v2240_v23 = vand.u32 4294901760, %v2239_v52  ;;  %v9042_v20 = vand.u32 4294901760, %v6337_v12  ;;  %v9043_v19 = vand.u32 4294901760, %v9216_v63 }
  0xd8   :  { %5313 = vmatpush1.bf16.msra.mxu0 %v6829_v17  ;;  %5494 = vmatpush3.bf16.msra.mxu1 %v6842_v62  ;;  %v2247_v33 = vand.u32 4294901760, %v2246_v5  ;;  %v1484_v32 = vsub.f32 %v6324_v10, %v9038_v50  ;;  %v1496_v39 = vsub.f32 %v6333_v60, %v9040_v54  ;;  %v9047_v59 = vand.u32 4294901760, %v9217_v24  ;;  %v9218_v5 = vld [vmem:[#allocation57_spill] sm:$0xff] }
  0xd9   :  { %5315 = vmatprep.subr.bf16.mxu0 %v6853_v40  ;;  %5495 = vmatprep.subr.bf16.mxu1 %v9197_v29  ;;  %v6978_v52 = vpack.c.bf16 %v1479_v9, %v1467_v21  ;;  %v1490_v17 = vsub.f32 %v6337_v12, %v9042_v20  ;;  %v1502_v62 = vsub.f32 %v9216_v63, %v9043_v19  ;;  %v9046_v50 = vand.u32 4294901760, %v9218_v5 }
  0xda   :  { %v6987_v41 = vpack.c.bf16 %v2247_v33, %v2240_v23  ;;  %v1485_v54 = vand.u32 4294901760, %v1484_v32  ;;  %v1497_v28 = vand.u32 4294901760, %v1496_v39  ;;  %v2253_v40 = vsub.f32 %v9217_v24, %v9047_v59  ;;  %v9220_v23 = vld [vmem:[#allocation21_spill] sm:$0xff]  ;;  %v9221_v33 = vld [vmem:[#allocation23_spill] sm:$0xff]  ;;  %v9232_v32 = vld [vmem:[#allocation20_spill] sm:$0xff] }
  0xdb   :  { %v1491_v21 = vand.u32 4294901760, %v1490_v17  ;;  %v1503_v9 = vand.u32 4294901760, %v1502_v62  ;;  %v2260_v20 = vsub.f32 %v9218_v5, %v9046_v50  ;;  %v9222_v39 = vld [vmem:[#allocation25_spill] sm:$0xff]  ;;  %v9234_v59 = vand.u32 4294901760, %v9221_v33 }
  0xdc   :  { %9219 = vst [vmem:[#allocation54_spill] sm:$0xff] %v6987_v41  ;;  %5317 = vmatpush1.bf16.msra.mxu0 %v6862_v36  ;;  %5497 = vmatpush3.bf16.msra.mxu1 %v6873_v16  ;;  %v5330_v19 = vpack.c.bf16 %v1497_v28, %v1485_v54  ;;  %v2254_v48 = vand.u32 4294901760, %v2253_v40  ;;  %v9226_v50 = vld [vmem:[#allocation37_spill] sm:$0xff]  ;;  %v9227_v16 = vld [vmem:[#allocation39_spill] sm:$0xff]  ;;  %v9228_v28 = vld [vmem:[#allocation42_spill] sm:$0xff]  ;;  %v9233_v54 = vand.u32 4294901760, %v9220_v23 }
  0xdd   :  { %5319 = vmatprep.subr.bf16.mxu0 %v6892_v26  ;;  %5498 = vmatprep.subr.bf16.mxu1 %v9197_v29  ;;  %v5332_v17 = vpack.c.bf16 %v1503_v9, %v1491_v21  ;;  %v2261_v62 = vand.u32 4294901760, %v2260_v20  ;;  %v9224_v20 = vld [vmem:[#allocation34_spill] sm:$0xff]  ;;  %v9225_v9 = vld [vmem:[#allocation36_spill] sm:$0xff]  ;;  %v9229_v36 = vld [vmem:[#allocation43_spill] sm:$0xff]  ;;  %v9242_v23 = vand.u32 4294901760, %v6187_v44 }
  0xde   :  { %v9231_v41 = vld [vmem:[#allocation19_spill] sm:$0xff]  ;;  %v7055_v26 = vpack.c.bf16 %v9234_v59, %v9233_v54  ;;  %v9243_v59 = vand.u32 4294901760, %v6191_v49 }
  0xdf   :  { %v5508_v40 = vpack.c.bf16 %v2261_v62, %v2254_v48  ;;  %v9230_v48 = vld [vmem:[#allocation44_spill] sm:$0xff]  ;;  %v5334_v21 = vpack.c.bf16 %v9232_v32, %v9231_v41  ;;  %v9236_v62 = vand.u32 4294901760, %v9222_v39 }
  0xe0   :  { %5321 = vmatpush1.bf16.msra.mxu0 %v6901_v25  ;;  %5500 = vmatpush3.bf16.msra.mxu1 %v6905_v57  ;;  %9235 = vst [vmem:[#allocation23_spill] sm:$0xff] %v7055_v26  ;;  %v9239_v25 = vand.u32 4294901760, %v6182_v42  ;;  %v9240_v57 = vand.u32 4294901760, %v6184_v43  ;;  %v7075_v54 = vpack.c.bf16 %v9243_v59, %v9242_v23  ;;  %v9252_v23 = vand.u32 4294901760, %v6213_v8  ;;  %v2711_v26 = vld [vmem:[#allocation12 + $0x48] sm:$0xff] }
  0xe1   :  { %5323 = vmatprep.subr.bf16.mxu0 %v6923_v30  ;;  %5501 = vmatprep.subr.bf16.mxu1 %v9197_v29  ;;  %v9237_v30 = vand.u32 4294901760, %v9223_v45 }
  0xe2   :  { %v7069_v41 = vpack.c.bf16 %v9240_v57, %v9239_v25  ;;  %9244 = vst [vmem:[#allocation34_spill] sm:$0xff] %v7075_v54  ;;  %v9249_v25 = vand.u32 4294901760, %v6206_v0  ;;  %v9255_v54 = vand.u32 4294901760, %v6220_v15 }
  0xe3   :  { %v7063_v32 = vpack.c.bf16 %v9237_v30, %v9236_v62  ;;  %v9248_v30 = vand.u32 4294901760, %v6200_v55 }
  0xe4   :  { %5325 = vmatpush1.bf16.msra.mxu0 %v6945_v4  ;;  %5503 = vmatpush3.bf16.msra.mxu1 %v6950_v13  ;;  %9241 = vst [vmem:[#allocation26_spill] sm:$0xff] %v7069_v41  ;;  %v9245_v4 = vand.u32 4294901760, %v6195_v51  ;;  %v9246_v13 = vand.u32 4294901760, %v6198_v53  ;;  %v9251_v41 = vand.u32 4294901760, %v6209_v1 }
  0xe5   :  { %9238 = vst [vmem:[#allocation25_spill] sm:$0xff] %v7063_v32  ;;  %5327 = vmatprep.subr.bf16.mxu0 %v6958_v31  ;;  %5504 = vmatprep.subr.bf16.mxu1 %v9197_v29  ;;  %v7089_v57 = vpack.c.bf16 %v9249_v25, %v9248_v30  ;;  %v9254_v31 = vand.u32 4294901760, %v6217_v11  ;;  %v9260_v30 = vand.u32 4294901760, %v9225_v9  ;;  %v9261_v25 = vand.u32 4294901760, %v9226_v50 }
  0xe6   :  { %v7083_v62 = vpack.c.bf16 %v9246_v13, %v9245_v4  ;;  %v7095_v59 = vpack.c.bf16 %v9252_v23, %v9251_v41  ;;  %v9257_v4 = vand.u32 4294901760, %v6224_v22  ;;  %v9258_v13 = vand.u32 4294901760, %v9224_v20 }
  0xe7   :  { %9250 = vst [vmem:[#allocation37_spill] sm:$0xff] %v7089_v57  ;;  %v7101_v32 = vpack.c.bf16 %v9255_v54, %v9254_v31  ;;  %v7113_v57 = vpack.c.bf16 %v9261_v25, %v9260_v30  ;;  %v9263_v41 = vand.u32 4294901760, %v9227_v16  ;;  %v9264_v23 = vand.u32 4294901760, %v6242_v56 }
  0xe8   :  { %9247 = vst [vmem:[#allocation36_spill] sm:$0xff] %v7083_v62  ;;  %9253 = vst [vmem:[#allocation39_spill] sm:$0xff] %v7095_v59  ;;  %v7107_v62 = vpack.c.bf16 %v9258_v13, %v9257_v4  ;;  %v9266_v54 = vand.u32 4294901760, %v6246_v58  ;;  %v9267_v31 = vand.u32 4294901760, %v6250_v61  ;;  %v9269_v4 = vand.u32 4294901760, %v9228_v28  ;;  %5329 = vmatpush1.bf16.msra.mxu0 %v6978_v52 }
  0xe9   :  { %9256 = vst [vmem:[#allocation42_spill] sm:$0xff] %v7101_v32  ;;  %9262 = vst [vmem:[#allocation44_spill] sm:$0xff] %v7113_v57  ;;  %v7119_v59 = vpack.c.bf16 %v9264_v23, %v9263_v41  ;;  %v9270_v13 = vand.u32 4294901760, %v9229_v36  ;;  %v9272_v30 = vand.u32 4294901760, %v9230_v48  ;;  %v9273_v25 = vand.u32 4294901760, %v6264_v38  ;;  %5331 = vmatprep.subr.bf16.mxu0 %v5330_v19 }
  0xea   :  { %9259 = vst [vmem:[#allocation43_spill] sm:$0xff] %v7107_v62  ;;  %v7125_v32 = vpack.c.bf16 %v9267_v31, %v9266_v54  ;;  %v9275_v41 = vand.u32 4294901760, %v6268_v14  ;;  %v9276_v23 = vand.u32 4294901760, %v6273_v37  ;;  %v9278_v54 = vld [vmem:[#allocation54_spill] sm:$0xff]  ;;  %v9279_v31 = vand.u32 4294901760, %v6277_v7 }
  0xeb   :  { %9265 = vst [vmem:[#allocation62_spill] sm:$0xff] %v7119_v59  ;;  %v7131_v62 = vpack.c.bf16 %v9270_v13, %v9269_v4  ;;  %v7137_v57 = vpack.c.bf16 %v9273_v25, %v9272_v30  ;;  %5506 = vmatpush3.bf16.msra.mxu1 %v9278_v54  ;;  %v9280_v4 = vand.u32 4294901760, %v6279_v3  ;;  %v9282_v30 = vand.u32 4294901760, %v6287_v47 }
  0xec   :  { %9268 = vst [vmem:[#allocation63_spill] sm:$0xff] %v7125_v32  ;;  %v7143_v59 = vpack.c.bf16 %v9276_v23, %v9275_v41  ;;  %v9283_v25 = vand.u32 4294901760, %v6294_v35  ;;  %v9285_v41 = vand.u32 4294901760, %v6298_v2  ;;  %v9286_v23 = vand.u32 4294901760, %v6303_v27  ;;  %5507 = vmatprep.subr.bf16.mxu1 %v9197_v29  ;;  %5333 = vmatpush1.bf16.msra.mxu0 %v5332_v17  ;;  %v2708_v32 = vld [vmem:[#allocation12 + $0x30] sm:$0xff] }
  0xed   :  { %9271 = vst [vmem:[#allocation64_spill] sm:$0xff] %v7131_v62  ;;  %9274 = vst [vmem:[#allocation65_spill] sm:$0xff] %v7137_v57  ;;  %v7153_v13 = vpack.c.bf16 %v9280_v4, %v9279_v31  ;;  %v9288_v52 = vand.u32 4294901760, %v6307_v18  ;;  %v9289_v54 = vand.u32 4294901760, %v6309_v34  ;;  %v9291_v4 = vand.u32 4294901760, %v6315_v46  ;;  %5335 = vmatprep.subr.bf16.mxu0 %v5334_v21  ;;  %v2706_v21 = vld [vmem:[#allocation12 + $0x20] sm:$0xff] }
  0xee   :  { %9277 = vst [vmem:[#allocation66_spill] sm:$0xff] %v7143_v59  ;;  %v7159_v57 = vpack.c.bf16 %v9283_v25, %v9282_v30  ;;  %v7165_v59 = vpack.c.bf16 %v9286_v23, %v9285_v41  ;;  %v9292_v30 = vand.u32 4294901760, %v6317_v6  ;;  %v9294_v41 = vand.u32 4294901760, %v6324_v10 }
  0xef   :  { %9281 = vst [vmem:[#allocation54_spill] sm:$0xff] %v7153_v13  ;;  %v7172_v31 = vpack.c.bf16 %v9289_v54, %v9288_v52  ;;  %v9295_v23 = vand.u32 4294901760, %v6333_v60  ;;  %v9297_v19 = vand.u32 4294901760, %v6337_v12  ;;  %v9300_v52 = vand.u32 4294901760, %v9217_v24  ;;  %5509 = vmatpush3.bf16.msra.mxu1 %v5508_v40  ;;  %v2703_v40 = vld [vmem:[#allocation12 + $0x8] sm:$0xff] }
  0xf0   :  { %9284 = vst [vmem:[#allocation67_spill] sm:$0xff] %v7159_v57  ;;  %9287 = vst [vmem:[#allocation68_spill] sm:$0xff] %v7165_v59  ;;  %v7178_v25 = vpack.c.bf16 %v9292_v30, %v9291_v4  ;;  %v9298_v57 = vand.u32 4294901760, %v9216_v63  ;;  %v9301_v54 = vand.u32 4294901760, %v9218_v5  ;;  %5510 = vmatprep.subr.bf16.mxu1 %v9197_v29  ;;  %v9303_v4 = vld [vmem:[#allocation59_spill] sm:$0xff]  ;;  %v9304_v30 = vld [vmem:[#allocation21_spill] sm:$0xff]  ;;  %v9307_v17 = vpack.c.bf16 %v6184_v43, %v6182_v42 }
  0xf1   :  { %9290 = vst [vmem:[#allocation69_spill] sm:$0xff] %v7172_v31  ;;  %v7184_v59 = vpack.c.bf16 %v9295_v23, %v9294_v41  ;;  %1539 = vmatmul.mubr.f32.vlgmr.msra.gmra.mrb[0].mxu0 %v9303_v4  ;;  %v9305_v41 = vpack.c.bf16 %v9221_v33, %v9304_v30  ;;  %v9306_v23 = vpack.c.bf16 %v9223_v45, %v9222_v39  ;;  %v9309_v33 = vld [vmem:[#allocation58_spill] sm:$0xff]  ;;  %v2705_v39 = vld [vmem:[#allocation12 + $0x18] sm:$0xff]  ;;  %v585_v42 = vstv %s7198_s4  ;;  %s7581_s4 = sld [smem:[#allocation9 + $0x302]] }
  0xf2   :  { %9293 = vst [vmem:[#allocation70_spill] sm:$0xff] %v7178_v25  ;;  %v7190_v13 = vpack.c.bf16 %v9298_v57, %v9297_v19  ;;  %v7196_v31 = vpack.c.bf16 %v9301_v54, %v9300_v52  ;;  %4918 = vmatmul.mubr.f32.vlgmr.msra.gmra.mrb[0].mxu1 %v9303_v4  ;;  %v573_v57 = vstv %s7145_s29  ;;  %v579_v19 = vstv %s4455_s30  ;;  %v2702_v45 = vld [vmem:[#allocation12] sm:$0xff]  ;;  %v9321_v25 = vld [vmem:[#allocation20_spill] sm:$0xff]  ;;  %s7563_s29 = sld [smem:[#allocation9 + $0x202]] }
  0xf3   :  { %9296 = vst [vmem:[#allocation71_spill] sm:$0xff] %v7184_v59  ;;  %5337 = vmatpush1.bf16.msra.mxu0 %v9305_v41  ;;  %5512 = vmatpush3.bf16.msra.mxu1 %v9306_v23  ;;  %v9308_v52 = vmov 0.0   ;;  %vm574_vm6 = vcmp.eq.s32.totalorder %v9309_v33, %v573_v57  ;;  %vm7221_vm7 = vcmp.eq.s32.totalorder %v9309_v33, %v579_v19  ;;  %v2750_v41 = vand.u32 4294901760, %v2703_v40  ;;  %v2704_v23 = vld [vmem:[#allocation12 + $0x10] sm:$0xff]  ;;  %v2718_v5 = vld [vmem:[#allocation12 + $0x80] sm:$0xff]  ;;  %s7579_s30 = sld [smem:[#allocation9 + $0x282]] }
  0xf4   :  { %9299 = vst [vmem:[#allocation72_spill] sm:$0xff] %v7190_v13  ;;  %9302 = vst [vmem:[#allocation73_spill] sm:$0xff] %v7196_v31  ;;  %5339 = vmatprep.subr.bf16.mxu0 %v9307_v17  ;;  %5513 = vmatprep.subr.bf16.mxu1 %v9197_v29  ;;  %v9312_v43 = vpack.c.bf16 %v6191_v49, %v6187_v44  ;;  %v9313_v30 = vpack.c.bf16 %v6198_v53, %v6195_v51  ;;  %v2754_v57 = vand.u32 4294901760, %v2706_v21  ;;  %v2707_v17 = vld [vmem:[#allocation12 + $0x28] sm:$0xff]  ;;  %v2712_v31 = vld [vmem:[#allocation12 + $0x50] sm:$0xff] }
  0xf5   :  { %1673 = vmatprep.mubr.f32.mxu0 %v9308_v52  ;;  %4952 = vmatprep.mubr.msk.f32.mxu1 %vm6089_vm0, %v9308_v52  ;;  %v9314_v4 = vpack.c.bf16 %v6206_v0, %v6200_v55  ;;  %v4454_v19 = vsel %vm574_vm6, 1.0, %v9308_v52  ;;  %v2752_v44 = vand.u32 4294901760, %v2702_v45  ;;  %v2756_v49 = vand.u32 4294901760, %v2705_v39  ;;  %v9319_v13 = vld [vmem:[#allocation19_spill] sm:$0xff] }
  0xf6   :  { %v4456_v51 = vsel %vm7221_vm7, 1.0, %v9308_v52  ;;  %vm7243_vm8 = vcmp.eq.s32.totalorder %v9309_v33, %v585_v42  ;;  %v3606_v55 = vand.u32 4294901760, %v2704_v23  ;;  %v3609_v0 = vand.u32 4294901760, %v2707_v17 }
  0xf7   :  { %5341 = vmatpush1.bf16.msra.mxu0 %v9312_v43  ;;  %5515 = vmatpush3.bf16.msra.mxu1 %v9313_v30  ;;  %v2709_v43 = vld [vmem:[#allocation12 + $0x38] sm:$0xff]  ;;  %v9318_v30 = vpack.c.bf16 %v6220_v15, %v6217_v11  ;;  %v9320_v59 = vand.u32 4294901760, %v9319_v13  ;;  %v9322_v54 = vand.u32 4294901760, %v9321_v25  ;;  %v7259_v42 = vpack.c.bf16 %v2754_v57, %v2750_v41  ;;  %v2710_v11 = vld [vmem:[#allocation12 + $0x40] sm:$0xff] }
  0xf8   :  { %5343 = vmatprep.subr.bf16.mxu0 %v9314_v4  ;;  %5516 = vmatprep.subr.bf16.mxu1 %v9197_v29  ;;  %v9317_v4 = vpack.c.bf16 %v6213_v8, %v6209_v1  ;;  %v9325_v24 = vpack.c.bf16 %v9224_v20, %v6224_v22  ;;  %v2758_v1 = vand.u32 4294901760, %v2709_v43  ;;  %v2762_v8 = vand.u32 4294901760, %v2712_v31  ;;  %v2713_v15 = vld [vmem:[#allocation12 + $0x58] sm:$0xff] }
  0xf9   :  { %v7257_v62 = vpack.c.bf16 %v9322_v54, %v9320_v59  ;;  %9324 = vst [vmem:[#allocation58_spill] sm:$0xff] %v7259_v42  ;;  %v583_v13 = vadd.f32 %v4456_v51, %v4454_v19  ;;  %v4458_v59 = vsel %vm7243_vm8, 1.0, %v9308_v52  ;;  %v7268_v25 = vsub.f32 %v2703_v40, %v2750_v41  ;;  %v2715_v54 = vld [vmem:[#allocation12 + $0x68] sm:$0xff]  ;;  %v2714_v19 = vld [vmem:[#allocation12 + $0x60] sm:$0xff]  ;;  %v2717_v51 = vld [vmem:[#allocation12 + $0x78] sm:$0xff] }
  0xfa   :  { %v591_v22 = vstv %s7218_s7  ;;  %v7277_v20 = vpack.c.bf16 %v3609_v0, %v3606_v55  ;;  %v2760_v42 = vand.u32 4294901760, %v2708_v32  ;;  %v9331_v40 = vpack.c.bf16 %v9226_v50, %v9225_v9  ;;  %s7590_s7 = sld [smem:[#allocation9 + $0x382]] }
  0xfb   :  { %5345 = vmatpush1.bf16.msra.mxu0 %v9317_v4  ;;  %5518 = vmatpush3.bf16.msra.mxu1 %v9318_v30  ;;  %9323 = vst [vmem:[#allocation21_spill] sm:$0xff] %v7257_v62  ;;  %9326 = vst [vmem:[#allocation19_spill] sm:$0xff] %v7268_v25  ;;  %v7270_v4 = vsub.f32 %v2706_v21, %v2754_v57  ;;  %v7272_v30 = vpack.c.bf16 %v2756_v49, %v2752_v44  ;;  %v2764_v62 = vand.u32 4294901760, %v2711_v26 }
  0xfc   :  { %5347 = vmatprep.subr.bf16.mxu0 %v9325_v24  ;;  %5519 = vmatprep.subr.bf16.mxu1 %v9197_v29  ;;  %v7275_v24 = vsub.f32 %v2702_v45, %v2752_v44  ;;  %9330 = vst [vmem:[#allocation76_spill] sm:$0xff] %v7277_v20  ;;  %v9332_v21 = vpack.c.bf16 %v6242_v56, %v9227_v16  ;;  %v3612_v57 = vand.u32 4294901760, %v2710_v11  ;;  %v3615_v44 = vand.u32 4294901760, %v2713_v15  ;;  %v2716_v16 = vld [vmem:[#allocation12 + $0x70] sm:$0xff] }
  0xfd   :  { %9327 = vst [vmem:[#allocation20_spill] sm:$0xff] %v7270_v4  ;;  %9328 = vst [vmem:[#allocation74_spill] sm:$0xff] %v7272_v30  ;;  %v7285_v41 = vsub.f32 %v2705_v39, %v2756_v49  ;;  %v7287_v45 = vsub.f32 %v2704_v23, %v3606_v55  ;;  %v9335_v53 = vpack.c.bf16 %v6250_v61, %v6246_v58  ;;  %v2719_v39 = vld [vmem:[#allocation12 + $0x88] sm:$0xff]  ;;  %v2766_v49 = vand.u32 4294901760, %v2715_v54  ;;  %v2724_v20 = vld [vmem:[#allocation12 + $0xb0] sm:$0xff] }
  0xfe   :  { %9329 = vst [vmem:[#allocation75_spill] sm:$0xff] %v7275_v24  ;;  %v7295_v50 = vsub.f32 %v2707_v17, %v3609_v0  ;;  %v7297_v9 = vpack.c.bf16 %v2762_v8, %v2758_v1  ;;  %v7299_v56 = vsub.f32 %v2709_v43, %v2758_v1  ;;  %v2770_v55 = vand.u32 4294901760, %v2718_v5  ;;  %v2720_v23 = vld [vmem:[#allocation12 + $0x90] sm:$0xff] }
  0xff   :  { %5349 = vmatpush1.bf16.msra.mxu0 %v9331_v40  ;;  %5521 = vmatpush3.bf16.msra.mxu1 %v9332_v21  ;;  %9333 = vst [vmem:[#allocation77_spill] sm:$0xff] %v7285_v41  ;;  %9334 = vst [vmem:[#allocation78_spill] sm:$0xff] %v7287_v45  ;;  %v2768_v40 = vand.u32 4294901760, %v2714_v19  ;;  %v2772_v21 = vand.u32 4294901760, %v2717_v51  ;;  %v2721_v45 = vld [vmem:[#allocation12 + $0x98] sm:$0xff]  ;;  %v7302_v30 = vsub.f32 %v2712_v31, %v2762_v8  ;;  %v3618_v31 = vand.u32 4294901760, %v2716_v16 }
 0x100   :  { %5351 = vmatprep.subr.bf16.mxu0 %v9335_v53  ;;  %5522 = vmatprep.subr.bf16.mxu1 %v9197_v29  ;;  %9336 = vst [vmem:[#allocation79_spill] sm:$0xff] %v7295_v50  ;;  %9337 = vst [vmem:[#allocation80_spill] sm:$0xff] %v7297_v9  ;;  %v7304_v58 = vpack.c.bf16 %v2764_v62, %v2760_v42  ;;  %v7306_v61 = vsub.f32 %v2708_v32, %v2760_v42  ;;  %v3621_v8 = vand.u32 4294901760, %v2719_v39 }
 0x101   :  { %9338 = vst [vmem:[#allocation81_spill] sm:$0xff] %v7299_v56  ;;  %9339 = vst [vmem:[#allocation82_spill] sm:$0xff] %v7302_v30  ;;  %v7308_v17 = vadd.f32 %v4458_v59, %v583_v13  ;;  %v9342_v43 = vpack.c.bf16 %v9229_v36, %v9228_v28  ;;  %v9343_v0 = vpack.c.bf16 %v6264_v38, %v9230_v48  ;;  %v2723_v30 = vld [vmem:[#allocation12 + $0xa8] sm:$0xff]  ;;  %v2774_v38 = vand.u32 4294901760, %v2721_v45  ;;  %v2722_v59 = vld [vmem:[#allocation12 + $0xa0] sm:$0xff] }
 0x102   :  { %9340 = vst [vmem:[#allocation83_spill] sm:$0xff] %v7304_v58  ;;  %9341 = vst [vmem:[#allocation84_spill] sm:$0xff] %v7306_v61  ;;  %v7316_v1 = vsub.f32 %v2711_v26, %v2764_v62  ;;  %v7318_v53 = vpack.c.bf16 %v3615_v44, %v3612_v57  ;;  %v9346_v32 = vpack.c.bf16 %v6273_v37, %v6268_v14  ;;  %v2778_v48 = vand.u32 4294901760, %v2724_v20  ;;  %v2725_v14 = vld [vmem:[#allocation12 + $0xb8] sm:$0xff] }
 0x103   :  { %5353 = vmatpush1.bf16.msra.mxu0 %v9342_v43  ;;  %5524 = vmatpush3.bf16.msra.mxu1 %v9343_v0  ;;  %v7324_v36 = vsub.f32 %v2710_v11, %v3612_v57  ;;  %v7326_v28 = vsub.f32 %v2713_v15, %v3615_v44  ;;  %v7328_v26 = vpack.c.bf16 %v2770_v55, %v2766_v49  ;;  %v2776_v43 = vand.u32 4294901760, %v2720_v23  ;;  %v2727_v57 = vld [vmem:[#allocation12 + $0xc8] sm:$0xff]  ;;  %v2730_v15 = vld [vmem:[#allocation12 + $0xe0] sm:$0xff]  ;;  %v2729_v0 = vld [vmem:[#allocation12 + $0xd8] sm:$0xff] }
 0x104   :  { %9344 = vst [vmem:[#allocation85_spill] sm:$0xff] %v7316_v1  ;;  %9345 = vst [vmem:[#allocation86_spill] sm:$0xff] %v7318_v53  ;;  %5355 = vmatprep.subr.bf16.mxu0 %v9346_v32  ;;  %5525 = vmatprep.subr.bf16.mxu1 %v9197_v29  ;;  %v7330_v62 = vsub.f32 %v2715_v54, %v2766_v49  ;;  %v7332_v42 = vsub.f32 %v2718_v5, %v2770_v55  ;;  %v2780_v11 = vand.u32 4294901760, %v2723_v30 }
 0x105   :  { %9347 = vst [vmem:[#allocation87_spill] sm:$0xff] %v7324_v36  ;;  %9348 = vst [vmem:[#allocation88_spill] sm:$0xff] %v7326_v28  ;;  %v7334_v13 = vpack.c.bf16 %v2772_v21, %v2768_v40  ;;  %v7336_v37 = vsub.f32 %v2714_v19, %v2768_v40  ;;  %vm7339_vm9 = vcmp.eq.s32.totalorder %v9309_v33, %v591_v22  ;;  %v2726_v40 = vld [vmem:[#allocation12 + $0xc0] sm:$0xff]  ;;  %v7370_v22 = vld [vmem:[#allocation12 + $0xf8] sm:$0xff] }
 0x106   :  { %9349 = vst [vmem:[#allocation89_spill] sm:$0xff] %v7328_v26  ;;  %9350 = vst [vmem:[#allocation90_spill] sm:$0xff] %v7330_v62  ;;  %v9356_v5 = vpack.c.bf16 %v6279_v3, %v6277_v7  ;;  %v9357_v54 = vpack.c.bf16 %v6294_v35, %v6287_v47  ;;  %v7349_v49 = vsub.f32 %v2717_v51, %v2772_v21  ;;  %v3624_v3 = vand.u32 4294901760, %v2722_v59  ;;  %v2728_v51 = vld [vmem:[#allocation12 + $0xd0] sm:$0xff] }
 0x107   :  { %9351 = vst [vmem:[#allocation91_spill] sm:$0xff] %v7332_v42  ;;  %9352 = vst [vmem:[#allocation92_spill] sm:$0xff] %v7334_v13  ;;  %v7351_v19 = vpack.c.bf16 %v3621_v8, %v3618_v31  ;;  %v7353_v55 = vsub.f32 %v2716_v16, %v3618_v31  ;;  %v9361_v32 = vpack.c.bf16 %v6303_v27, %v6298_v2  ;;  %v3627_v47 = vand.u32 4294901760, %v2725_v14  ;;  %v2731_v16 = vld [vmem:[#allocation12 + $0xe8] sm:$0xff]  ;;  %v7372_v27 = vld [vmem:[#allocation12 + $0x110] sm:$0xff] }
 0x108   :  { %9353 = vst [vmem:[#allocation93_spill] sm:$0xff] %v7336_v37  ;;  %5357 = vmatpush1.bf16.msra.mxu0 %v9356_v5  ;;  %5527 = vmatpush3.bf16.msra.mxu1 %v9357_v54  ;;  %9358 = vst [vmem:[#allocation94_spill] sm:$0xff] %v7349_v49  ;;  %v7362_v7 = vsub.f32 %v2719_v39, %v3621_v8  ;;  %v7364_v35 = vpack.c.bf16 %v2778_v48, %v2774_v38  ;;  %v2782_v5 = vand.u32 4294901760, %v2727_v57 }
 0x109   :  { %9359 = vst [vmem:[#allocation95_spill] sm:$0xff] %v7351_v19  ;;  %9360 = vst [vmem:[#allocation96_spill] sm:$0xff] %v7353_v55  ;;  %5359 = vmatprep.subr.bf16.mxu0 %v9361_v32  ;;  %5528 = vmatprep.subr.bf16.mxu1 %v9197_v29  ;;  %v7366_v21 = vsub.f32 %v2721_v45, %v2774_v38  ;;  %v7368_v31 = vsub.f32 %v2724_v20, %v2778_v48  ;;  %v2786_v54 = vand.u32 4294901760, %v2730_v15 }
 0x10a   :  { %9362 = vst [vmem:[#allocation97_spill] sm:$0xff] %v7362_v7  ;;  %9363 = vst [vmem:[#allocation98_spill] sm:$0xff] %v7364_v35  ;;  %v7376_v2 = vpack.c.bf16 %v2780_v11, %v2776_v43  ;;  %v2784_v39 = vand.u32 4294901760, %v2726_v40  ;;  %v2788_v8 = vand.u32 4294901760, %v2729_v0  ;;  %v4460_v45 = vsel %vm7339_vm9, 1.0, %v9308_v52 }
 0x10b   :  { %9364 = vst [vmem:[#allocation99_spill] sm:$0xff] %v7366_v21  ;;  %9365 = vst [vmem:[#allocation100_spill] sm:$0xff] %v7368_v31  ;;  %v9367_v20 = vpack.c.bf16 %v6309_v34, %v6307_v18  ;;  %v9368_v38 = vpack.c.bf16 %v6317_v6, %v6315_v46  ;;  %v7387_v48 = vsub.f32 %v2720_v23, %v2776_v43  ;;  %v3630_v32 = vand.u32 4294901760, %v2728_v51 }
 0x10c   :  { %9366 = vst [vmem:[#allocation101_spill] sm:$0xff] %v7376_v2  ;;  %v3633_v31 = vand.u32 4294901760, %v2731_v16  ;;  %v9370_v21 = vstv %s7237_s5  ;;  %v9373_v18 = vpack.c.bf16 %v6333_v60, %v6324_v10  ;;  %v7404_v34 = vsub.f32 %v2723_v30, %v2780_v11  ;;  %v7418_v10 = vld [vmem:[#allocation12 + $0xf0] sm:$0xff]  ;;  %s7592_s5 = sld [smem:[#allocation9 + $0x402]] }
 0x10d   :  { %5361 = vmatpush1.bf16.msra.mxu0 %v9367_v20  ;;  %5530 = vmatpush3.bf16.msra.mxu1 %v9368_v38  ;;  %9369 = vst [vmem:[#allocation102_spill] sm:$0xff] %v7387_v48  ;;  %vm7392_vm10 = vcmp.eq.s32.totalorder %v9309_v33, %v9370_v21  ;;  %v7406_v46 = vpack.c.bf16 %v3627_v47, %v3624_v3  ;;  %v2790_v6 = vand.u32 4294901760, %v7370_v22  ;;  %v2794_v23 = vand.u32 4294901760, %v7372_v27  ;;  %v9425_v48 = vld [vmem:[#allocation48_spill] sm:$0xff] }
 0x10e   :  { %5363 = vmatprep.subr.bf16.mxu0 %v9373_v18  ;;  %5531 = vmatprep.subr.bf16.mxu1 %v9197_v29  ;;  %9374 = vst [vmem:[#allocation103_spill] sm:$0xff] %v7404_v34  ;;  %v7412_v43 = vsub.f32 %v2722_v59, %v3624_v3  ;;  %v7414_v44 = vsub.f32 %v2725_v14, %v3627_v47  ;;  %v4462_v59 = vsel %vm7392_vm10, 1.0, %v9308_v52  ;;  %v609_v2 = vstv %s7356_s3  ;;  %v9395_v18 = vld [vmem:[#allocation22_spill] sm:$0xff]  ;;  %s7626_s3 = sld [smem:[#allocation9 + $0x502]] }
 0x10f   :  { %9375 = vst [vmem:[#allocation104_spill] sm:$0xff] %v7406_v46  ;;  %v7416_v21 = vpack.c.bf16 %v2786_v54, %v2782_v5  ;;  %v595_v60 = vadd.f32 %v4460_v45, %v7308_v17  ;;  %v7423_v30 = vsub.f32 %v2727_v57, %v2782_v5  ;;  %v7425_v11 = vsub.f32 %v2730_v15, %v2786_v54  ;;  %v9383_v17 = vld [vmem:[#allocation57_spill] sm:$0xff]  ;;  %v9384_v57 = vld [vmem:[#allocation56_spill] sm:$0xff]  ;;  %v7448_v54 = vld [vmem:[#allocation12 + $0x108] sm:$0xff] }
 0x110   :  { %9376 = vst [vmem:[#allocation105_spill] sm:$0xff] %v7412_v43  ;;  %9377 = vst [vmem:[#allocation106_spill] sm:$0xff] %v7414_v44  ;;  %v7427_v20 = vpack.c.bf16 %v2788_v8, %v2784_v39  ;;  %v9382_v14 = vpack.c.bf16 %v9216_v63, %v6337_v12  ;;  %v9385_v3 = vpack.c.bf16 %v9383_v17, %v9384_v57  ;;  %v9389_v45 = vld [vmem:[#allocation18_spill] sm:$0xff]  ;;  %v621_v17 = vstv %s7396_s9  ;;  %s7635_s9 = sld [smem:[#allocation9 + $0x3]] }
 0x111   :  { %9378 = vst [vmem:[#allocation107_spill] sm:$0xff] %v7416_v21  ;;  %9379 = vst [vmem:[#allocation108_spill] sm:$0xff] %v7423_v30  ;;  %v7442_v15 = vsub.f32 %v2726_v40, %v2784_v39  ;;  %v7444_v47 = vsub.f32 %v2729_v0, %v2788_v8  ;;  %v7446_v5 = vpack.c.bf16 %v3633_v31, %v3630_v32  ;;  %v9393_v39 = vstv %s7289_s2  ;;  %s7599_s2 = sld [smem:[#allocation9 + $0x482]] }
 0x112   :  { %9380 = vst [vmem:[#allocation109_spill] sm:$0xff] %v7425_v11  ;;  %9381 = vst [vmem:[#allocation110_spill] sm:$0xff] %v7427_v20  ;;  %5365 = vmatpush1.bf16.msra.mxu0 %v9382_v14  ;;  %5533 = vmatpush3.bf16.msra.mxu1 %v9385_v3  ;;  %v7455_v12 = vsub.f32 %v2728_v51, %v3630_v32  ;;  %v7457_v63 = vsub.f32 %v2731_v16, %v3633_v31  ;;  %v615_v8 = vstv %s7374_s8  ;;  %v9394_v51 = vld [vmem:[#allocation60_spill] sm:$0xff]  ;;  %v9398_v3 = vld [vmem:[#allocation27_spill] sm:$0xff]  ;;  %s7628_s8 = sld [smem:[#allocation9 + $0x582]] }
 0x113   :  { %9386 = vst [vmem:[#allocation57_spill] sm:$0xff] %v7442_v15  ;;  %9387 = vst [vmem:[#allocation56_spill] sm:$0xff] %v7444_v47  ;;  %5367 = vmatprep.subr.bf16.mxu0 %v9389_v45  ;;  %5534 = vmatprep.subr.bf16.mxu1 %v9197_v29  ;;  %v7459_v38 = vpack.c.bf16 %v2794_v23, %v2790_v6  ;;  %v601_v0 = vadd.f32 %v4462_v59, %v595_v60  ;;  %v9396_v60 = vld [vmem:[#allocation24_spill] sm:$0xff]  ;;  %v627_v57 = vstv %s7398_s10  ;;  %v9401_v16 = vld [vmem:[#allocation29_spill] sm:$0xff]  ;;  %s7643_s10 = sld [smem:[#allocation9 + $0x83]] }
 0x114   :  { %9388 = vst [vmem:[#allocation111_spill] sm:$0xff] %v7446_v5  ;;  %9390 = vst [vmem:[#allocation18_spill] sm:$0xff] %v7455_v12  ;;  %vm604_vm11 = vcmp.eq.s32.totalorder %v9309_v33, %v9393_v39  ;;  %vm610_vm12 = vcmp.eq.s32.totalorder %v9309_v33, %v609_v2  ;;  %vm616_vm13 = vcmp.eq.s32.totalorder %v9309_v33, %v615_v8  ;;  %v633_v39 = vstv %s7410_s11  ;;  %s7653_s11 = sld [smem:[#allocation9 + $0x103]] }
 0x115   :  { %9391 = vst [vmem:[#allocation112_spill] sm:$0xff] %v7457_v63  ;;  %9392 = vst [vmem:[#allocation113_spill] sm:$0xff] %v7459_v38  ;;  %1676 = vmatmul.mubr.f32.vlgmr.msra.gmra.mrb[0].mxu0 %v9394_v51  ;;  %4953 = vmatmul.mubr.f32.vlgmr.msra.gmra.mrb[0].mxu1 %v9394_v51  ;;  %v4464_v31 = vsel %vm604_vm11, 1.0, %v9308_v52  ;;  %v4466_v32 = vsel %vm610_vm12, 1.0, %v9308_v52  ;;  %v7482_v59 = vsub.f32 %v7370_v22, %v2790_v6  ;;  %v4468_v2 = vsel %vm616_vm13, 1.0, %v9308_v52  ;;  %v9423_v38 = vld [vmem:[#allocation46_spill] sm:$0xff] }
 0x116   :  { %5369 = vmatpush1.bf16.msra.mxu0 %v9395_v18  ;;  %5536 = vmatpush3.bf16.msra.mxu1 %v9396_v60  ;;  %v607_v14 = vadd.f32 %v4464_v31, %v601_v0  ;;  %vm622_vm14 = vcmp.eq.s32.totalorder %v9309_v33, %v621_v17  ;;  %vm628_vm15 = vcmp.eq.s32.totalorder %v9309_v33, %v627_v57  ;;  %v639_v51 = vstv %s7432_s13  ;;  %v9400_v57 = vld [vmem:[#allocation28_spill] sm:$0xff]  ;;  %s7673_s13 = sld [smem:[#allocation9 + $0x203]] }
 0x117   :  { %9397 = vst [vmem:[#allocation60_spill] sm:$0xff] %v7482_v59  ;;  %5371 = vmatprep.subr.bf16.mxu0 %v9398_v3  ;;  %5537 = vmatprep.subr.bf16.mxu1 %v9197_v29  ;;  %v7498_v22 = vsub.f32 %v7372_v27, %v2794_v23  ;;  %v4470_v0 = vsel %vm622_vm14, 1.0, %v9308_v52  ;;  %vm634_vm1 = vcmp.eq.s32.totalorder %v9309_v33, %v633_v39  ;;  %v4472_v8 = vsel %vm628_vm15, 1.0, %v9308_v52 }
 0x118   :  { %1778 = vmatprep.mubr.f32.mxu0 %v9308_v52  ;;  %4987 = vmatprep.mubr.msk.f32.mxu1 %vm6089_vm0, %v9308_v52  ;;  %v613_v6 = vadd.f32 %v4466_v32, %v607_v14  ;;  %v646_v31 = vstv %s7421_s12  ;;  %v652_v17 = vstv %s7434_s14  ;;  %v4474_v23 = vsel %vm634_vm1, 1.0, %v9308_v52  ;;  %v9402_v14 = vld [vmem:[#allocation30_spill] sm:$0xff]  ;;  %s7655_s12 = sld [smem:[#allocation9 + $0x183]] }
 0x119   :  { %9399 = vst [vmem:[#allocation22_spill] sm:$0xff] %v7498_v22  ;;  %vm647_vm2 = vcmp.eq.s32.totalorder %v9309_v33, %v646_v31  ;;  %v658_v32 = vstv %s7451_s15  ;;  %vm7520_vm3 = vcmp.eq.s32.totalorder %v9309_v33, %v639_v51  ;;  %vm653_vm4 = vcmp.eq.s32.totalorder %v9309_v33, %v652_v17  ;;  %v9405_v17 = vld [vmem:[#allocation31_spill] sm:$0xff]  ;;  %s7679_s14 = sld [smem:[#allocation9 + $0x283]] }
 0x11a   :  { %5373 = vmatpush1.bf16.msra.mxu0 %v9400_v57  ;;  %5539 = vmatpush3.bf16.msra.mxu1 %v9401_v16  ;;  %v619_v27 = vadd.f32 %v4468_v2, %v613_v6  ;;  %v4478_v2 = vsel %vm647_vm2, 1.0, %v9308_v52  ;;  %vm659_vm5 = vcmp.eq.s32.totalorder %v9309_v33, %v658_v32  ;;  %v4480_v31 = vsel %vm653_vm4, 1.0, %v9308_v52  ;;  %s7681_s15 = sld [smem:[#allocation9 + $0x303]] }
 0x11b   :  { %5375 = vmatprep.subr.bf16.mxu0 %v9402_v14  ;;  %5540 = vmatprep.subr.bf16.mxu1 %v9197_v29  ;;  %v4482_v40 = vsel %vm659_vm5, 1.0, %v9308_v52  ;;  %v664_v22 = vstv %s7467_s16  ;;  %v656_v51 = vadd.f32 %v4480_v31, %v4478_v2  ;;  %v670_v59 = vstv %s7469_s17  ;;  %v9407_v31 = vld [vmem:[#allocation33_spill] sm:$0xff]  ;;  %s7697_s16 = sld [smem:[#allocation9 + $0x383]] }
 0x11c   :  { %v625_v6 = vadd.f32 %v4470_v0, %v619_v27  ;;  %vm665_vm6 = vcmp.eq.s32.totalorder %v9309_v33, %v664_v22  ;;  %v676_v63 = vstv %s7477_s18  ;;  %v9406_v0 = vld [vmem:[#allocation32_spill] sm:$0xff]  ;;  %v7545_v27 = vld [vmem:[#allocation12 + $0x100] sm:$0xff]  ;;  %v4476_v22 = vsel %vm7520_vm3, 1.0, %v9308_v52  ;;  %s7707_s17 = sld [smem:[#allocation9 + $0x403]] }
 0x11d   :  { %v4484_v2 = vsel %vm665_vm6, 1.0, %v9308_v52  ;;  %vm671_vm7 = vcmp.eq.s32.totalorder %v9309_v33, %v670_v59  ;;  %v662_v12 = vadd.f32 %v4482_v40, %v656_v51  ;;  %vm7558_vm8 = vcmp.eq.s32.totalorder %v9309_v33, %v676_v63  ;;  %v9415_v51 = vld [vmem:[#allocation38_spill] sm:$0xff]  ;;  %v9421_v40 = vld [vmem:[#allocation41_spill] sm:$0xff]  ;;  %s7709_s18 = sld [smem:[#allocation9 + $0x483]] }
 0x11e   :  { %5377 = vmatpush1.bf16.msra.mxu0 %v9405_v17  ;;  %5542 = vmatpush3.bf16.msra.mxu1 %v9406_v0  ;;  %v631_v32 = vadd.f32 %v4472_v8, %v625_v6  ;;  %v4486_v47 = vsel %vm671_vm7, 1.0, %v9308_v52  ;;  %v682_v39 = vstv %s7492_s19  ;;  %v688_v59 = vstv %s7502_s20  ;;  %v9422_v63 = vld [vmem:[#allocation45_spill] sm:$0xff]  ;;  %s7723_s19 = sld [smem:[#allocation9 + $0x503]] }
 0x11f   :  { %5379 = vmatprep.subr.bf16.mxu0 %v9407_v31  ;;  %5543 = vmatprep.subr.bf16.mxu1 %v9197_v29  ;;  %vm683_vm9 = vcmp.eq.s32.totalorder %v9309_v33, %v682_v39  ;;  %v694_v15 = vstv %s7504_s21  ;;  %v668_v30 = vadd.f32 %v4484_v2, %v662_v12  ;;  %vm7570_vm10 = vcmp.eq.s32.totalorder %v9309_v33, %v688_v59  ;;  %v9416_v39 = vld [vmem:[#allocation40_spill] sm:$0xff]  ;;  %s7730_s20 = sld [smem:[#allocation9 + $0x583]]  ;;  %s7732_s21 = sld [smem:[#allocation9 + $0x4]] }
 0x120   :  { %v637_v6 = vadd.f32 %v4474_v23, %v631_v32  ;;  %vm7575_vm11 = vcmp.eq.s32.totalorder %v9309_v33, %v694_v15  ;;  %v9414_v23 = vld [vmem:[#allocation35_spill] sm:$0xff]  ;;  %v4488_v32 = vsel %vm7558_vm8, 1.0, %v9308_v52  ;;  %v4490_v15 = vsel %vm683_vm9, 1.0, %v9308_v52 }
 0x121   :  { %v700_v2 = vstv %s7515_s22  ;;  %v674_v59 = vadd.f32 %v4486_v47, %v668_v30  ;;  %v712_v8 = vstv %s7529_s24  ;;  %v4494_v11 = vsel %vm7575_vm11, 1.0, %v9308_v52  ;;  %s7742_s22 = sld [smem:[#allocation9 + $0x84]] }
 0x122   :  { %5381 = vmatpush1.bf16.msra.mxu0 %v9414_v23  ;;  %5545 = vmatpush3.bf16.msra.mxu1 %v9415_v51  ;;  %v643_v12 = vadd.f32 %v4476_v22, %v637_v6  ;;  %vm701_vm12 = vcmp.eq.s32.totalorder %v9309_v33, %v700_v2  ;;  %v706_v22 = vstv %s7527_s23  ;;  %v4492_v6 = vsel %vm7570_vm10, 1.0, %v9308_v52  ;;  %s7757_s23 = sld [smem:[#allocation9 + $0x104]] }
 0x123   :  { %5383 = vmatprep.subr.bf16.mxu0 %v9416_v39  ;;  %5546 = vmatprep.subr.bf16.mxu1 %v9197_v29  ;;  %v4496_v30 = vsel %vm701_vm12, 1.0, %v9308_v52  ;;  %v719_v47 = vstv %s7534_s25  ;;  %v680_v2 = vadd.f32 %v4488_v32, %v674_v59  ;;  %vm7610_vm13 = vcmp.eq.s32.totalorder %v9309_v33, %v706_v22  ;;  %s7759_s24 = sld [smem:[#allocation9 + $0x184]] }
 0x124   :  { %644 = vst [vmem:[#allocation3] sm:$0x1] %v643_v12  ;;  %vm7615_vm14 = vcmp.eq.s32.totalorder %v9309_v33, %v712_v8  ;;  %vm720_vm15 = vcmp.eq.s32.totalorder %v9309_v33, %v719_v47  ;;  %v725_v32 = vstv %s7539_s26  ;;  %v731_v59 = vstv %s7541_s27  ;;  %s7770_s25 = sld [smem:[#allocation9 + $0x204]] }
 0x125   :  { %v4502_v43 = vsel %vm720_vm15, 1.0, %v9308_v52  ;;  %v737_v22 = vstv %s7552_s28  ;;  %v686_v8 = vadd.f32 %v4490_v15, %v680_v2  ;;  %vm726_vm1 = vcmp.eq.s32.totalorder %v9309_v33, %v725_v32  ;;  %s7778_s26 = sld [smem:[#allocation9 + $0x284]] }
 0x126   :  { %5385 = vmatpush1.bf16.msra.mxu0 %v9421_v40  ;;  %5548 = vmatpush3.bf16.msra.mxu1 %v9422_v63  ;;  %vm732_vm2 = vcmp.eq.s32.totalorder %v9309_v33, %v731_v59  ;;  %v743_v47 = vstv %s7563_s29  ;;  %v4498_v34 = vsel %vm7610_vm13, 1.0, %v9308_v52  ;;  %v4504_v5 = vsel %vm726_vm1, 1.0, %v9308_v52  ;;  %v9424_v59 = vld [vmem:[#allocation47_spill] sm:$0xff]  ;;  %s7789_s27 = sld [smem:[#allocation9 + $0x304]] }
 0x127   :  { %5387 = vmatprep.subr.bf16.mxu0 %v9423_v38  ;;  %5549 = vmatprep.subr.bf16.mxu1 %v9197_v29  ;;  %v4506_v20 = vsel %vm732_vm2, 1.0, %v9308_v52  ;;  %vm738_vm3 = vcmp.eq.s32.totalorder %v9309_v33, %v737_v22  ;;  %v692_v15 = vadd.f32 %v4492_v6, %v686_v8  ;;  %v729_v2 = vadd.f32 %v4504_v5, %v4502_v43  ;;  %v9426_v22 = vld [vmem:[#allocation49_spill] sm:$0xff]  ;;  %s7791_s28 = sld [smem:[#allocation9 + $0x384]] }
 0x128   :  { %v4508_v32 = vsel %vm738_vm3, 1.0, %v9308_v52  ;;  %vm744_vm4 = vcmp.eq.s32.totalorder %v9309_v33, %v743_v47  ;;  %v749_v44 = vstv %s7579_s30  ;;  %v755_v21 = vstv %s7581_s4  ;;  %s7805_s29 = sld [smem:[#allocation9 + $0x404]] }
 0x129   :  { %v761_v46 = vstv %s7590_s7  ;;  %v767_v7 = vstv %s7592_s5  ;;  %v698_v43 = vadd.f32 %v4494_v11, %v692_v15  ;;  %v735_v5 = vadd.f32 %v4506_v20, %v729_v2  ;;  %s7823_s30 = sld [smem:[#allocation9 + $0x484]]  ;;  %s7842_s5 = sld [smem:[#allocation9 + $0x5]] }
 0x12a   :  { %5389 = vmatpush1.bf16.msra.mxu0 %v9424_v59  ;;  %5551 = vmatpush3.bf16.msra.mxu1 %v9425_v48  ;;  %vm750_vm5 = vcmp.eq.s32.totalorder %v9309_v33, %v749_v44  ;;  %v773_v6 = vstv %s7599_s2  ;;  %v4510_v8 = vsel %vm744_vm4, 1.0, %v9308_v52  ;;  %vm756_vm6 = vcmp.eq.s32.totalorder %v9309_v33, %v755_v21  ;;  %v9433_v44 = vld [vmem:[#allocation52_spill] sm:$0xff]  ;;  %s7825_s4 = sld [smem:[#allocation9 + $0x504]]  ;;  %s7846_s2 = sld [smem:[#allocation9 + $0x85]] }
 0x12b   :  { %5391 = vmatprep.subr.bf16.mxu0 %v9426_v22  ;;  %5552 = vmatprep.subr.bf16.mxu1 %v9197_v29  ;;  %vm7664_vm7 = vcmp.eq.s32.totalorder %v9309_v33, %v761_v46  ;;  %vm7669_vm8 = vcmp.eq.s32.totalorder %v9309_v33, %v767_v7  ;;  %v704_v11 = vadd.f32 %v4496_v30, %v698_v43  ;;  %v4500_v20 = vsel %vm7615_vm14, 1.0, %v9308_v52  ;;  %v9431_v46 = vld [vmem:[#allocation50_spill] sm:$0xff]  ;;  %v9432_v7 = vld [vmem:[#allocation51_spill] sm:$0xff]  ;;  %s7840_s7 = sld [smem:[#allocation9 + $0x584]] }
 0x12c   :  { %v741_v15 = vadd.f32 %v4508_v32, %v735_v5  ;;  %v4512_v21 = vsel %vm750_vm5, 1.0, %v9308_v52  ;;  %v4514_v2 = vsel %vm756_vm6, 1.0, %v9308_v52  ;;  %vm774_vm9 = vcmp.eq.s32.totalorder %v9309_v33, %v773_v6 }
 0x12d   :  { %v779_v30 = vstv %s7626_s3  ;;  %v785_v12 = vstv %s7628_s8  ;;  %v710_v32 = vadd.f32 %v4498_v34, %v704_v11  ;;  %v4516_v5 = vsel %vm7664_vm7, 1.0, %v9308_v52  ;;  %s7852_s3 = sld [smem:[#allocation9 + $0x105]] }
 0x12e   :  { %5393 = vmatpush1.bf16.msra.mxu0 %v9431_v46  ;;  %5554 = vmatpush3.bf16.msra.mxu1 %v9432_v7  ;;  %v747_v43 = vadd.f32 %v4510_v8, %v741_v15  ;;  %v4518_v55 = vsel %vm7669_vm8, 1.0, %v9308_v52  ;;  %v4520_v6 = vsel %vm774_vm9, 1.0, %v9308_v52  ;;  %vm7701_vm10 = vcmp.eq.s32.totalorder %v9309_v33, %v779_v30  ;;  %v9438_v15 = vld [vmem:[#allocation53_spill] sm:$0xff]  ;;  %v9439_v30 = vld [vmem:[#allocation55_spill] sm:$0xff]  ;;  %s7854_s8 = sld [smem:[#allocation9 + $0x185]] }
 0x12f   :  { %5395 = vmatprep.subr.bf16.mxu0 %v9433_v44  ;;  %5555 = vmatprep.subr.bf16.mxu1 %v9197_v29  ;;  %v792_v34 = vstv %s7635_s9  ;;  %v798_v8 = vstv %s7643_s10  ;;  %v716_v47 = vadd.f32 %v4500_v20, %v710_v32  ;;  %vm7712_vm11 = vcmp.eq.s32.totalorder %v9309_v33, %v785_v12  ;;  %v9440_v20 = vld [vmem:[#allocation21_spill] sm:$0xff]  ;;  %s7872_s9 = sld [smem:[#allocation9 + $0x205]] }
 0x130   :  { %v753_v35 = vadd.f32 %v4512_v21, %v747_v43  ;;  %vm793_vm12 = vcmp.eq.s32.totalorder %v9309_v33, %v792_v34  ;;  %vm799_vm13 = vcmp.eq.s32.totalorder %v9309_v33, %v798_v8  ;;  %v804_v19 = vstv %s7653_s11  ;;  %s7882_s10 = sld [smem:[#allocation9 + $0x285]] }
 0x131   :  { %v4526_v37 = vsel %vm793_vm12, 1.0, %v9308_v52  ;;  %v810_v13 = vstv %s7655_s12  ;;  %717 = vst [vmem:[#allocation3 + $0x1] sm:$0x1] %v716_v47  ;;  %v4528_v12 = vsel %vm799_vm13, 1.0, %v9308_v52  ;;  %vm805_vm14 = vcmp.eq.s32.totalorder %v9309_v33, %v804_v19  ;;  %v9442_v47 = vld [vmem:[#allocation23_spill] sm:$0xff]  ;;  %s7888_s11 = sld [smem:[#allocation9 + $0x305]] }
 0x132   :  { %5397 = vmatpush1.bf16.msra.mxu0 %v9438_v15  ;;  %5557 = vmatpush3.bf16.msra.mxu1 %v9439_v30  ;;  %v759_v21 = vadd.f32 %v4514_v2, %v753_v35  ;;  %vm811_vm15 = vcmp.eq.s32.totalorder %v9309_v33, %v810_v13  ;;  %v802_v32 = vadd.f32 %v4528_v12, %v4526_v37  ;;  %v4530_v43 = vsel %vm805_vm14, 1.0, %v9308_v52  ;;  %v9443_v37 = vld [vmem:[#allocation25_spill] sm:$0xff]  ;;  %s7890_s12 = sld [smem:[#allocation9 + $0x385]] }
 0x133   :  { %5399 = vmatprep.subr.bf16.mxu0 %v9440_v20  ;;  %5558 = vmatprep.subr.bf16.mxu1 %v9197_v29  ;;  %v4532_v34 = vsel %vm811_vm15, 1.0, %v9308_v52  ;;  %v816_v8 = vstv %s7673_s13  ;;  %v9441_v20 = vld [vmem:[#allocation61_spill] sm:$0xff]  ;;  %v822_v19 = vstv %s7679_s14  ;;  %v828_v13 = vstv %s7681_s15  ;;  %s7898_s13 = sld [smem:[#allocation9 + $0x405]] }
 0x134   :  { %v765_v2 = vadd.f32 %v4516_v5, %v759_v21  ;;  %vm817_vm1 = vcmp.eq.s32.totalorder %v9309_v33, %v816_v8  ;;  %v4522_v35 = vsel %vm7701_vm10, 1.0, %v9308_v52  ;;  %v4524_v12 = vsel %vm7712_vm11, 1.0, %v9308_v52  ;;  %v9446_v8 = vld [vmem:[#allocation26_spill] sm:$0xff]  ;;  %s7918_s14 = sld [smem:[#allocation9 + $0x485]] }
 0x135   :  { %1782 = vmatmul.mubr.f32.vlgmr.msra.gmra.mrb[0].mxu0 %v9441_v20  ;;  %4988 = vmatmul.mubr.f32.vlgmr.msra.gmra.mrb[0].mxu1 %v9441_v20  ;;  %v808_v5 = vadd.f32 %v4530_v43, %v802_v32  ;;  %vm7753_vm2 = vcmp.eq.s32.totalorder %v9309_v33, %v822_v19  ;;  %v4534_v11 = vsel %vm817_vm1, 1.0, %v9308_v52  ;;  %vm7765_vm3 = vcmp.eq.s32.totalorder %v9309_v33, %v828_v13  ;;  %s7920_s15 = sld [smem:[#allocation9 + $0x505]] }
 0x136   :  { %5401 = vmatpush1.bf16.msra.mxu0 %v9442_v47  ;;  %5560 = vmatpush3.bf16.msra.mxu1 %v9443_v37  ;;  %v771_v49 = vadd.f32 %v4518_v55, %v765_v2  ;;  %v834_v43 = vstv %s7697_s16  ;;  %v840_v55 = vstv %s7707_s17  ;;  %v846_v2 = vstv %s7709_s18  ;;  %v9458_v47 = vld [vmem:[#allocation39_spill] sm:$0xff]  ;;  %s7927_s16 = sld [smem:[#allocation9 + $0x6]]  ;;  %s7935_s17 = sld [smem:[#allocation9 + $0x585]] }
 0x137   :  { %5403 = vmatprep.subr.bf16.mxu0 %v9446_v8  ;;  %5561 = vmatprep.subr.bf16.mxu1 %v9197_v29  ;;  %v814_v20 = vadd.f32 %v4532_v34, %v808_v5  ;;  %vm835_vm4 = vcmp.eq.s32.totalorder %v9309_v33, %v834_v43  ;;  %v4536_v13 = vsel %vm7753_vm2, 1.0, %v9308_v52  ;;  %vm841_vm5 = vcmp.eq.s32.totalorder %v9309_v33, %v840_v55  ;;  %v9451_v34 = vld [vmem:[#allocation34_spill] sm:$0xff]  ;;  %s7947_s18 = sld [smem:[#allocation9 + $0x86]] }
 0x138   :  { %1948 = vmatprep.mubr.f32.mxu0 %v9308_v52  ;;  %5022 = vmatprep.mubr.msk.f32.mxu1 %vm6089_vm0, %v9308_v52  ;;  %v777_v19 = vadd.f32 %v4520_v6, %v771_v49  ;;  %vm7785_vm6 = vcmp.eq.s32.totalorder %v9309_v33, %v846_v2  ;;  %v9452_v6 = vld [vmem:[#allocation36_spill] sm:$0xff]  ;;  %v4538_v5 = vsel %vm7765_vm3, 1.0, %v9308_v52  ;;  %v4540_v21 = vsel %vm835_vm4, 1.0, %v9308_v52  ;;  %v9453_v49 = vld [vmem:[#allocation37_spill] sm:$0xff] }
 0x139   :  { %v820_v37 = vadd.f32 %v4534_v11, %v814_v20  ;;  %v852_v8 = vstv %s7723_s19  ;;  %v4542_v55 = vsel %vm841_vm5, 1.0, %v9308_v52  ;;  %v858_v2 = vstv %s7730_s20  ;;  %v9473_v20 = vld [vmem:[#allocation54_spill] sm:$0xff]  ;;  %s7953_s19 = sld [smem:[#allocation9 + $0x106]] }
 0x13a   :  { %5405 = vmatpush1.bf16.msra.mxu0 %v9451_v34  ;;  %5563 = vmatpush3.bf16.msra.mxu1 %v9452_v6  ;;  %v783_v43 = vadd.f32 %v4522_v35, %v777_v19  ;;  %v865_v34 = vstv %s7732_s21  ;;  %v4544_v32 = vsel %vm7785_vm6, 1.0, %v9308_v52  ;;  %vm7811_vm7 = vcmp.eq.s32.totalorder %v9309_v33, %v852_v8  ;;  %v9468_v19 = vld [vmem:[#allocation64_spill] sm:$0xff]  ;;  %s7955_s20 = sld [smem:[#allocation9 + $0x186]] }
 0x13b   :  { %5407 = vmatprep.subr.bf16.mxu0 %v9453_v49  ;;  %5564 = vmatprep.subr.bf16.mxu1 %v9197_v29  ;;  %v826_v11 = vadd.f32 %v4536_v13, %v820_v37  ;;  %vm866_vm8 = vcmp.eq.s32.totalorder %v9309_v33, %v865_v34  ;;  %vm7817_vm9 = vcmp.eq.s32.totalorder %v9309_v33, %v858_v2  ;;  %v871_v13 = vstv %s7742_s22  ;;  %v9459_v37 = vld [vmem:[#allocation42_spill] sm:$0xff]  ;;  %v7834_v2 = vld [vmem:[#allocation12 + $0x118] sm:$0xff]  ;;  %s7961_s21 = sld [smem:[#allocation9 + $0x206]] }
 0x13c   :  { %v789_v35 = vadd.f32 %v4524_v12, %v783_v43  ;;  %v4550_v6 = vsel %vm866_vm8, 1.0, %v9308_v52  ;;  %vm872_vm10 = vcmp.eq.s32.totalorder %v9309_v33, %v871_v13  ;;  %v877_v12 = vstv %s7757_s23  ;;  %v9460_v43 = vld [vmem:[#allocation43_spill] sm:$0xff]  ;;  %s7985_s22 = sld [smem:[#allocation9 + $0x286]] }
 0x13d   :  { %v832_v8 = vadd.f32 %v4538_v5, %v826_v11  ;;  %v883_v49 = vstv %s7759_s24  ;;  %v4552_v34 = vsel %vm872_vm10, 1.0, %v9308_v52  ;;  %vm878_vm11 = vcmp.eq.s32.totalorder %v9309_v33, %v877_v12  ;;  %s7987_s23 = sld [smem:[#allocation9 + $0x306]] }
 0x13e   :  { %5409 = vmatpush1.bf16.msra.mxu0 %v9458_v47  ;;  %5566 = vmatpush3.bf16.msra.mxu1 %v9459_v37  ;;  %790 = vst [vmem:[#allocation3 + $0x2] sm:$0x1] %v789_v35  ;;  %vm884_vm12 = vcmp.eq.s32.totalorder %v9309_v33, %v883_v49  ;;  %v889_v5 = vstv %s7770_s25  ;;  %v875_v13 = vadd.f32 %v4552_v34, %v4550_v6  ;;  %v4554_v47 = vsel %vm878_vm11, 1.0, %v9308_v52  ;;  %v9461_v49 = vld [vmem:[#allocation44_spill] sm:$0xff]  ;;  %s7993_s24 = sld [smem:[#allocation9 + $0x386]] }
 0x13f   :  { %5411 = vmatprep.subr.bf16.mxu0 %v9460_v43  ;;  %5567 = vmatprep.subr.bf16.mxu1 %v9197_v29  ;;  %v838_v11 = vadd.f32 %v4540_v21, %v832_v8  ;;  %v4556_v37 = vsel %vm884_vm12, 1.0, %v9308_v52  ;;  %vm890_vm13 = vcmp.eq.s32.totalorder %v9309_v33, %v889_v5  ;;  %v895_v35 = vstv %s7778_s26  ;;  %v9462_v21 = vld [vmem:[#allocation62_spill] sm:$0xff]  ;;  %v9463_v5 = vld [vmem:[#allocation63_spill] sm:$0xff]  ;;  %s7995_s25 = sld [smem:[#allocation9 + $0x406]] }
 0x140   :  { %v901_v12 = vstv %s7789_s27  ;;  %v907_v43 = vstv %s7791_s28  ;;  %v881_v34 = vadd.f32 %v4554_v47, %v875_v13  ;;  %vm896_vm14 = vcmp.eq.s32.totalorder %v9309_v33, %v895_v35  ;;  %s8017_s26 = sld [smem:[#allocation9 + $0x486]] }
 0x141   :  { %v844_v8 = vadd.f32 %v4542_v55, %v838_v11  ;;  %v4546_v42 = vsel %vm7811_vm7, 1.0, %v9308_v52  ;;  %vm7867_vm15 = vcmp.eq.s32.totalorder %v9309_v33, %v901_v12  ;;  %v913_v55 = vstv %s7805_s29  ;;  %s8025_s27 = sld [smem:[#allocation9 + $0x506]]  ;;  %s8044_s29 = sld [smem:[#allocation9 + $0x7]] }
 0x142   :  { %5413 = vmatpush1.bf16.msra.mxu0 %v9461_v49  ;;  %5569 = vmatpush3.bf16.msra.mxu1 %v9462_v21  ;;  %v4558_v49 = vsel %vm890_vm13, 1.0, %v9308_v52  ;;  %v4548_v13 = vsel %vm7817_vm9, 1.0, %v9308_v52  ;;  %v887_v47 = vadd.f32 %v4556_v37, %v881_v34  ;;  %vm7878_vm1 = vcmp.eq.s32.totalorder %v9309_v33, %v907_v43  ;;  %v9469_v37 = vld [vmem:[#allocation65_spill] sm:$0xff]  ;;  %s8032_s28 = sld [smem:[#allocation9 + $0x586]] }
 0x143   :  { %5415 = vmatprep.subr.bf16.mxu0 %v9463_v5  ;;  %5570 = vmatprep.subr.bf16.mxu1 %v9197_v29  ;;  %v850_v11 = vadd.f32 %v4544_v32, %v844_v8  ;;  %v4560_v35 = vsel %vm896_vm14, 1.0, %v9308_v52  ;;  %vm914_vm2 = vcmp.eq.s32.totalorder %v9309_v33, %v913_v55  ;;  %v919_v12 = vstv %s7823_s30  ;;  %v9470_v5 = vld [vmem:[#allocation66_spill] sm:$0xff]  ;;  %s8046_s30 = sld [smem:[#allocation9 + $0x87]] }
 0x144   :  { %v925_v32 = vstv %s7825_s4  ;;  %v893_v8 = vadd.f32 %v4558_v49, %v887_v47  ;;  %v4562_v34 = vsel %vm7867_vm15, 1.0, %v9308_v52  ;;  %vm920_vm3 = vcmp.eq.s32.totalorder %v9309_v33, %v919_v12  ;;  %s8057_s4 = sld [smem:[#allocation9 + $0x107]] }
 0x145   :  { %v856_v43 = vadd.f32 %v4546_v42, %v850_v11  ;;  %v4564_v42 = vsel %vm7878_vm1, 1.0, %v9308_v52  ;;  %v4566_v49 = vsel %vm914_vm2, 1.0, %v9308_v52  ;;  %v931_v55 = vstv %s7840_s7  ;;  %s8059_s7 = sld [smem:[#allocation9 + $0x187]] }
 0x146   :  { %5417 = vmatpush1.bf16.msra.mxu0 %v9468_v19  ;;  %5572 = vmatpush3.bf16.msra.mxu1 %v9469_v37  ;;  %v938_v11 = vstv %s7842_s5  ;;  %v899_v47 = vadd.f32 %v4560_v35, %v893_v8  ;;  %v4568_v19 = vsel %vm920_vm3, 1.0, %v9308_v52  ;;  %vm7910_vm4 = vcmp.eq.s32.totalorder %v9309_v33, %v925_v32  ;;  %s8081_s5 = sld [smem:[#allocation9 + $0x207]] }
 0x147   :  { %5419 = vmatprep.subr.bf16.mxu0 %v9470_v5  ;;  %5573 = vmatprep.subr.bf16.mxu1 %v9197_v29  ;;  %v862_v21 = vadd.f32 %v4548_v13, %v856_v43  ;;  %vm939_vm5 = vcmp.eq.s32.totalorder %v9309_v33, %v938_v11  ;;  %v944_v37 = vstv %s7846_s2  ;;  %v950_v5 = vstv %s7852_s3  ;;  %v9474_v13 = vld [vmem:[#allocation67_spill] sm:$0xff]  ;;  %v9475_v43 = vld [vmem:[#allocation68_spill] sm:$0xff]  ;;  %s8090_s2 = sld [smem:[#allocation9 + $0x287]] }
 0x148   :  { %v956_v6 = vstv %s7854_s8  ;;  %v905_v35 = vadd.f32 %v4562_v34, %v899_v47  ;;  %v4574_v32 = vsel %vm939_vm5, 1.0, %v9308_v52  ;;  %vm945_vm6 = vcmp.eq.s32.totalorder %v9309_v33, %v944_v37  ;;  %s8092_s3 = sld [smem:[#allocation9 + $0x307]] }
 0x149   :  { %863 = vst [vmem:[#allocation3 + $0x3] sm:$0x1] %v862_v21  ;;  %vm951_vm7 = vcmp.eq.s32.totalorder %v9309_v33, %v950_v5  ;;  %v4576_v8 = vsel %vm945_vm6, 1.0, %v9308_v52  ;;  %vm957_vm8 = vcmp.eq.s32.totalorder %v9309_v33, %v956_v6  ;;  %v962_v34 = vstv %s7872_s9  ;;  %s8108_s8 = sld [smem:[#allocation9 + $0x387]] }
 0x14a   :  { %5421 = vmatpush1.bf16.msra.mxu0 %v9473_v20  ;;  %5575 = vmatpush3.bf16.msra.mxu1 %v9474_v13  ;;  %v4578_v11 = vsel %vm951_vm7, 1.0, %v9308_v52  ;;  %v911_v21 = vadd.f32 %v4564_v42, %v905_v35  ;;  %vm7938_vm9 = vcmp.eq.s32.totalorder %v9309_v33, %v931_v55  ;;  %v948_v37 = vadd.f32 %v4576_v8, %v4574_v32  ;;  %v9480_v42 = vld [vmem:[#allocation69_spill] sm:$0xff]  ;;  %v9481_v55 = vld [vmem:[#allocation70_spill] sm:$0xff]  ;;  %s8126_s9 = sld [smem:[#allocation9 + $0x407]] }
 0x14b   :  { %5423 = vmatprep.subr.bf16.mxu0 %v9475_v43  ;;  %5576 = vmatprep.subr.bf16.mxu1 %v9197_v29  ;;  %vm7943_vm10 = vcmp.eq.s32.totalorder %v9309_v33, %v962_v34  ;;  %v4580_v6 = vsel %vm957_vm8, 1.0, %v9308_v52  ;;  %v968_v20 = vstv %s7882_s10  ;;  %v974_v13 = vstv %s7888_s11  ;;  %v9482_v34 = vld [vmem:[#allocation71_spill] sm:$0xff]  ;;  %s8139_s10 = sld [smem:[#allocation9 + $0x487]] }
 0x14c   :  { %v980_v43 = vstv %s7890_s12  ;;  %v917_v35 = vadd.f32 %v4566_v49, %v911_v21  ;;  %v954_v32 = vadd.f32 %v4578_v11, %v948_v37  ;;  %vm969_vm11 = vcmp.eq.s32.totalorder %v9309_v33, %v968_v20  ;;  %s8151_s11 = sld [smem:[#allocation9 + $0x507]] }
 0x14d   :  { %v986_v8 = vstv %s7898_s13  ;;  %v4570_v62 = vsel %vm7910_vm4, 1.0, %v9308_v52  ;;  %v4572_v49 = vsel %vm7938_vm9, 1.0, %v9308_v52  ;;  %v4582_v11 = vsel %vm7943_vm10, 1.0, %v9308_v52  ;;  %s8171_s12 = sld [smem:[#allocation9 + $0x587]] }
 0x14e   :  { %5425 = vmatpush1.bf16.msra.mxu0 %v9480_v42  ;;  %5578 = vmatpush3.bf16.msra.mxu1 %v9481_v55  ;;  %vm975_vm12 = vcmp.eq.s32.totalorder %v9309_v33, %v974_v13  ;;  %v923_v21 = vadd.f32 %v4568_v19, %v917_v35  ;;  %v960_v37 = vadd.f32 %v4580_v6, %v954_v32  ;;  %v4584_v47 = vsel %vm969_vm11, 1.0, %v9308_v52  ;;  %v9487_v13 = vld [vmem:[#allocation72_spill] sm:$0xff] }
 0x14f   :  { %5427 = vmatprep.subr.bf16.mxu0 %v9482_v34  ;;  %5579 = vmatprep.subr.bf16.mxu1 %v9197_v29  ;;  %vm7976_vm13 = vcmp.eq.s32.totalorder %v9309_v33, %v980_v43  ;;  %vm7981_vm14 = vcmp.eq.s32.totalorder %v9309_v33, %v986_v8  ;;  %v4586_v19 = vsel %vm975_vm12, 1.0, %v9308_v52  ;;  %v992_v5 = vstv %s7918_s14  ;;  %v9488_v43 = vld [vmem:[#allocation73_spill] sm:$0xff] }
 0x150   :  { %v998_v6 = vstv %s7920_s15  ;;  %v929_v42 = vadd.f32 %v4570_v62, %v923_v21  ;;  %v966_v55 = vadd.f32 %v4582_v11, %v960_v37  ;;  %vm993_vm15 = vcmp.eq.s32.totalorder %v9309_v33, %v992_v5  ;;  %v9491_v37 = vld [vmem:[#allocation59_spill] sm:$0xff] }
 0x151   :  { %v1011_v35 = vstv %s7927_s16  ;;  %v4588_v32 = vsel %vm7976_vm13, 1.0, %v9308_v52  ;;  %v4590_v8 = vsel %vm7981_vm14, 1.0, %v9308_v52  ;;  %v1004_v62 = vstv %s7935_s17 }
 0x152   :  { %5429 = vmatpush1.bf16.msra.mxu0 %v9487_v13  ;;  %5581 = vmatpush3.bf16.msra.mxu1 %v9488_v43  ;;  %vm1012_vm1 = vcmp.eq.s32.totalorder %v9309_v33, %v1011_v35  ;;  %v935_v34 = vadd.f32 %v4572_v49, %v929_v42  ;;  %v972_v11 = vadd.f32 %v4584_v47, %v966_v55  ;;  %v4592_v21 = vsel %vm993_vm15, 1.0, %v9308_v52 }
 0x153   :  { %5431 = vmatprep.subr.bf16.mxu0 %v9389_v45  ;;  %5582 = vmatprep.subr.bf16.mxu1 %v9197_v29  ;;  %vm8013_vm2 = vcmp.eq.s32.totalorder %v9309_v33, %v998_v6  ;;  %v4598_v20 = vsel %vm1012_vm1, 1.0, %v9308_v52  ;;  %v1017_v12 = vstv %s7947_s18  ;;  %v1023_v5 = vstv %s7953_s19 }
 0x154   :  { %v1029_v49 = vstv %s7955_s20  ;;  %936 = vst [vmem:[#allocation3 + $0x4] sm:$0x1] %v935_v34  ;;  %v978_v47 = vadd.f32 %v4586_v19, %v972_v11  ;;  %vm1018_vm3 = vcmp.eq.s32.totalorder %v9309_v33, %v1017_v12  ;;  %vm1024_vm4 = vcmp.eq.s32.totalorder %v9309_v33, %v1023_v5 }
 0x155   :  { %1950 = vmatmul.mubr.f32.vlgmr.msra.gmra.mrb[0].mxu0 %v9491_v37  ;;  %5023 = vmatmul.mubr.f32.vlgmr.msra.gmra.mrb[0].mxu1 %v9491_v37  ;;  %v1035_v6 = vstv %s7961_s21  ;;  %vm8037_vm5 = vcmp.eq.s32.totalorder %v9309_v33, %v1004_v62  ;;  %v4602_v19 = vsel %vm1024_vm4, 1.0, %v9308_v52  ;;  %vm1030_vm6 = vcmp.eq.s32.totalorder %v9309_v33, %v1029_v49 }
 0x156   :  { %5433 = vmatpush1.bf16.msra.mxu0 %v9395_v18  ;;  %5584 = vmatpush3.bf16.msra.mxu1 %v9396_v60  ;;  %v4600_v60 = vsel %vm1018_vm3, 1.0, %v9308_v52  ;;  %v4604_v43 = vsel %vm1030_vm6, 1.0, %v9308_v52  ;;  %vm1036_vm7 = vcmp.eq.s32.totalorder %v9309_v33, %v1035_v6  ;;  %v1041_v42 = vstv %s7985_s22 }
 0x157   :  { %5435 = vmatprep.subr.bf16.mxu0 %v9398_v3  ;;  %5585 = vmatprep.subr.bf16.mxu1 %v9197_v29  ;;  %v984_v3 = vadd.f32 %v4588_v32, %v978_v47  ;;  %v1021_v13 = vadd.f32 %v4600_v60, %v4598_v20  ;;  %v1047_v55 = vstv %s7987_s23  ;;  %v1053_v35 = vstv %s7993_s24 }
 0x158   :  { %2052 = vmatprep.mubr.f32.mxu0 %v9308_v52  ;;  %5057 = vmatprep.mubr.msk.f32.mxu1 %vm6089_vm0, %v9308_v52  ;;  %v1059_v62 = vstv %s7995_s25  ;;  %v4594_v32 = vsel %vm8013_vm2, 1.0, %v9308_v52  ;;  %vm1042_vm8 = vcmp.eq.s32.totalorder %v9309_v33, %v1041_v42  ;;  %v4606_v20 = vsel %vm1036_vm7, 1.0, %v9308_v52 }
 0x159   :  { %v990_v34 = vadd.f32 %v4590_v8, %v984_v3  ;;  %v1027_v11 = vadd.f32 %v4602_v19, %v1021_v13  ;;  %vm1048_vm9 = vcmp.eq.s32.totalorder %v9309_v33, %v1047_v55  ;;  %vm8072_vm10 = vcmp.eq.s32.totalorder %v9309_v33, %v1053_v35 }
 0x15a   :  { %5437 = vmatpush1.bf16.msra.mxu0 %v9400_v57  ;;  %5587 = vmatpush3.bf16.msra.mxu1 %v9401_v16  ;;  %vm8077_vm11 = vcmp.eq.s32.totalorder %v9309_v33, %v1059_v62  ;;  %v9499_v8 = vand.u32 4294901760, %v7448_v54  ;;  %v1065_v49 = vstv %s8017_s26  ;;  %v4596_v47 = vsel %vm8037_vm5, 1.0, %v9308_v52 }
 0x15b   :  { %5439 = vmatprep.subr.bf16.mxu0 %v9402_v14  ;;  %5588 = vmatprep.subr.bf16.mxu1 %v9197_v29  ;;  %v9498_v14 = vand.u32 4294901760, %v7418_v10  ;;  %v996_v12 = vadd.f32 %v4592_v21, %v990_v34  ;;  %v1033_v5 = vadd.f32 %v4604_v43, %v1027_v11  ;;  %v4608_v6 = vsel %vm1042_vm8, 1.0, %v9308_v52  ;;  %v8134_v11 = vld [vmem:[#allocation12 + $0x128] sm:$0xff] }
 0x15c   :  { %v4610_v60 = vsel %vm1048_vm9, 1.0, %v9308_v52  ;;  %v1071_v19 = vstv %s8025_s27  ;;  %v4612_v13 = vsel %vm8072_vm10, 1.0, %v9308_v52  ;;  %v4614_v18 = vsel %vm8077_vm11, 1.0, %v9308_v52 }
 0x15d   :  { %v8087_v45 = vpack.c.bf16 %v9499_v8, %v9498_v14  ;;  %v1002_v21 = vadd.f32 %v4594_v32, %v996_v12  ;;  %v1039_v3 = vadd.f32 %v4606_v20, %v1033_v5  ;;  %vm8113_vm12 = vcmp.eq.s32.totalorder %v9309_v33, %v1065_v49  ;;  %v8146_v8 = vld [vmem:[#allocation12 + $0x140] sm:$0xff] }
 0x15e   :  { %5441 = vmatpush1.bf16.msra.mxu0 %v9405_v17  ;;  %5590 = vmatpush3.bf16.msra.mxu1 %v9406_v0  ;;  %v1077_v0 = vstv %s8032_s28  ;;  %v1084_v43 = vstv %s8044_s29  ;;  %v1090_v42 = vstv %s8046_s30  ;;  %vm8121_vm13 = vcmp.eq.s32.totalorder %v9309_v33, %v1071_v19 }
 0x15f   :  { %9500 = vst [vmem:[#allocation24_spill] sm:$0xff] %v8087_v45  ;;  %5443 = vmatprep.subr.bf16.mxu0 %v9407_v31  ;;  %5591 = vmatprep.subr.bf16.mxu1 %v9197_v29  ;;  %v1008_v55 = vadd.f32 %v4596_v47, %v1002_v21  ;;  %v1045_v35 = vadd.f32 %v4608_v6, %v1039_v3  ;;  %v1096_v34 = vstv %s8057_s4  ;;  %v1102_v32 = vstv %s8059_s7 }
 0x160   :  { %vm1085_vm14 = vcmp.eq.s32.totalorder %v9309_v33, %v1084_v43  ;;  %vm1091_vm15 = vcmp.eq.s32.totalorder %v9309_v33, %v1090_v42  ;;  %vm1097_vm1 = vcmp.eq.s32.totalorder %v9309_v33, %v1096_v34  ;;  %vm1103_vm2 = vcmp.eq.s32.totalorder %v9309_v33, %v1102_v32 }
 0x161   :  { %v4622_v31 = vsel %vm1085_vm14, 1.0, %v9308_v52  ;;  %1009 = vst [vmem:[#allocation3 + $0x5] sm:$0x1] %v1008_v55  ;;  %v1051_v20 = vadd.f32 %v4610_v60, %v1045_v35  ;;  %v4624_v16 = vsel %vm1091_vm15, 1.0, %v9308_v52  ;;  %v4628_v57 = vsel %vm1103_vm2, 1.0, %v9308_v52 }
 0x162   :  { %5445 = vmatpush1.bf16.msra.mxu0 %v9414_v23  ;;  %5593 = vmatpush3.bf16.msra.mxu1 %v9415_v51  ;;  %v1094_v23 = vadd.f32 %v4624_v16, %v4622_v31  ;;  %v4626_v51 = vsel %vm1097_vm1, 1.0, %v9308_v52  ;;  %v1108_v14 = vstv %s8081_s5  ;;  %v1114_v5 = vstv %s8090_s2  ;;  %v6002_v31 = vld [vmem:[#allocation12 + $0x108] sm:$0xff] }
 0x163   :  { %5447 = vmatprep.subr.bf16.mxu0 %v9416_v39  ;;  %5594 = vmatprep.subr.bf16.mxu1 %v9197_v29  ;;  %v1057_v12 = vadd.f32 %v4612_v13, %v1051_v20  ;;  %vm1109_vm3 = vcmp.eq.s32.totalorder %v9309_v33, %v1108_v14  ;;  %v1120_v49 = vstv %s8092_s3  ;;  %v2798_v39 = vand.u32 4294901760, %v8134_v11  ;;  %v2741_v20 = vld [vmem:[#allocation12 + $0x138] sm:$0xff] }
 0x164   :  { %v4616_v47 = vsel %vm8113_vm12, 1.0, %v9308_v52  ;;  %v1100_v6 = vadd.f32 %v4626_v51, %v1094_v23  ;;  %vm8158_vm4 = vcmp.eq.s32.totalorder %v9309_v33, %v1114_v5  ;;  %vm8165_vm5 = vcmp.eq.s32.totalorder %v9309_v33, %v1077_v0  ;;  %v6001_v0 = vld [vmem:[#allocation12 + $0xf0] sm:$0xff] }
 0x165   :  { %v1063_v19 = vadd.f32 %v4614_v18, %v1057_v12  ;;  %v4630_v3 = vsel %vm1109_vm3, 1.0, %v9308_v52  ;;  %v1126_v13 = vstv %s8108_s8  ;;  %vm8180_vm6 = vcmp.eq.s32.totalorder %v9309_v33, %v1120_v49 }
 0x166   :  { %5449 = vmatpush1.bf16.msra.mxu0 %v9421_v40  ;;  %5596 = vmatpush3.bf16.msra.mxu1 %v9422_v63  ;;  %v2802_v40 = vand.u32 4294901760, %v8146_v8  ;;  %v4618_v63 = vsel %vm8121_vm13, 1.0, %v9308_v52  ;;  %v1106_v18 = vadd.f32 %v4628_v57, %v1100_v6  ;;  %v9511_v43 = vand.u32 4294901760, %v7418_v10  ;;  %v2743_v6 = vld [vmem:[#allocation12 + $0x148] sm:$0xff] }
 0x167   :  { %5451 = vmatprep.subr.bf16.mxu0 %v9423_v38  ;;  %5597 = vmatprep.subr.bf16.mxu1 %v9197_v29  ;;  %v2738_v38 = vld [vmem:[#allocation12 + $0x120] sm:$0xff]  ;;  %v1069_v55 = vadd.f32 %v4616_v47, %v1063_v19  ;;  %v4632_v35 = vsel %vm8158_vm4, 1.0, %v9308_v52  ;;  %v1132_v62 = vstv %s8126_s9  ;;  %v9513_v34 = vand.u32 4294901760, %v7448_v54  ;;  %v2740_v47 = vld [vmem:[#allocation12 + $0x130] sm:$0xff]  ;;  %v2749_v19 = vld [vmem:[#allocation12 + $0x178] sm:$0xff] }
 0x168   :  { %v8186_v42 = vsub.f32 %v6001_v0, %v9511_v43  ;;  %v4620_v10 = vsel %vm8165_vm5, 1.0, %v9308_v52  ;;  %v1112_v16 = vadd.f32 %v4630_v3, %v1106_v18  ;;  %vm8200_vm7 = vcmp.eq.s32.totalorder %v9309_v33, %v1126_v13 }
 0x169   :  { %v8194_v32 = vsub.f32 %v6002_v31, %v9513_v34  ;;  %v9516_v51 = vand.u32 4294901760, %v7545_v27  ;;  %v9517_v54 = vand.u32 4294901760, %v7834_v2  ;;  %v1075_v14 = vadd.f32 %v4618_v63, %v1069_v55 }
 0x16a   :  { %9512 = vst [vmem:[#allocation27_spill] sm:$0xff] %v8186_v42  ;;  %5453 = vmatpush1.bf16.msra.mxu0 %v9424_v59  ;;  %5599 = vmatpush3.bf16.msra.mxu1 %v9425_v48  ;;  %v4634_v12 = vsel %vm8180_vm6, 1.0, %v9308_v52  ;;  %v1138_v5 = vstv %s8139_s10  ;;  %v2800_v49 = vand.u32 4294901760, %v2738_v38  ;;  %v1118_v60 = vadd.f32 %v4632_v35, %v1112_v16  ;;  %v2745_v35 = vld [vmem:[#allocation12 + $0x158] sm:$0xff] }
 0x16b   :  { %v8210_v57 = vpack.c.bf16 %v9517_v54, %v9516_v51  ;;  %5455 = vmatprep.subr.bf16.mxu0 %v9426_v22  ;;  %5600 = vmatprep.subr.bf16.mxu1 %v9197_v29  ;;  %v9519_v59 = vmov %v9516_v51  ;;  %vm8224_vm8 = vcmp.eq.s32.totalorder %v9309_v33, %v1132_v62  ;;  %v2804_v21 = vand.u32 4294901760, %v2741_v20  ;;  %v2748_v62 = vld [vmem:[#allocation12 + $0x170] sm:$0xff] }
 0x16c   :  { %v8221_v48 = vsub.f32 %v7545_v27, %v9519_v59  ;;  %v1081_v3 = vadd.f32 %v4620_v10, %v1075_v14  ;;  %v4636_v22 = vsel %vm8200_vm7, 1.0, %v9308_v52  ;;  %v1144_v13 = vstv %s8151_s11 }
 0x16d   :  { %9518 = vst [vmem:[#allocation28_spill] sm:$0xff] %v8210_v57  ;;  %v9522_v27 = vmov %v9517_v54  ;;  %v8239_v18 = vpack.c.bf16 %v2802_v40, %v2798_v39  ;;  %v1124_v17 = vadd.f32 %v4634_v12, %v1118_v60  ;;  %vm8242_vm9 = vcmp.eq.s32.totalorder %v9309_v33, %v1138_v5  ;;  %v2744_v12 = vld [vmem:[#allocation12 + $0x150] sm:$0xff]  ;;  %v2747_v5 = vld [vmem:[#allocation12 + $0x168] sm:$0xff]  ;;  %v9543_v60 = vld [vmem:[#allocation78_spill] sm:$0xff] }
 0x16e   :  { %v8235_v63 = vsub.f32 %v7834_v2, %v9522_v27  ;;  %5457 = vmatpush1.bf16.msra.mxu0 %v9431_v46  ;;  %5602 = vmatpush3.bf16.msra.mxu1 %v9432_v7  ;;  %v3642_v43 = vand.u32 4294901760, %v2740_v47  ;;  %v3645_v55 = vand.u32 4294901760, %v2743_v6  ;;  %1082 = vst [vmem:[#allocation3 + $0x6] sm:$0x1] %v1081_v3  ;;  %v4638_v2 = vsel %vm8224_vm8, 1.0, %v9308_v52 }
 0x16f   :  { %9524 = vst [vmem:[#allocation30_spill] sm:$0xff] %v8239_v18  ;;  %v1150_v31 = vstv %s8171_s12  ;;  %5459 = vmatprep.subr.bf16.mxu0 %v9433_v44  ;;  %5603 = vmatprep.subr.bf16.mxu1 %v9197_v29  ;;  %v9087_v34 = vand.u32 4294901760, %v7268_v25  ;;  %v9086_v46 = vand.u32 4294901760, %v7270_v4  ;;  %v1130_v10 = vadd.f32 %v4636_v22, %v1124_v17 }
 0x170   :  { %9523 = vst [vmem:[#allocation29_spill] sm:$0xff] %v8235_v63  ;;  %vm8257_vm10 = vcmp.eq.s32.totalorder %v9309_v33, %v1144_v13  ;;  %v8264_v16 = vsub.f32 %v8134_v11, %v2798_v39  ;;  %v8267_v23 = vsub.f32 %v8146_v8, %v2802_v40  ;;  %v8269_v44 = vpack.c.bf16 %v2804_v21, %v2800_v49  ;;  %v2746_v40 = vld [vmem:[#allocation12 + $0x160] sm:$0xff] }
 0x171   :  { %v4640_v51 = vsel %vm8242_vm9, 1.0, %v9308_v52  ;;  %v2806_v54 = vand.u32 4294901760, %v2745_v35  ;;  %v2810_v14 = vand.u32 4294901760, %v2748_v62  ;;  %v1136_v59 = vadd.f32 %v4638_v2, %v1130_v10  ;;  %v9539_v10 = vld [vmem:[#allocation76_spill] sm:$0xff] }
 0x172   :  { %9529 = vst [vmem:[#allocation31_spill] sm:$0xff] %v8267_v23  ;;  %9530 = vst [vmem:[#allocation32_spill] sm:$0xff] %v8269_v44  ;;  %vm8275_vm11 = vcmp.eq.s32.totalorder %v9309_v33, %v1150_v31  ;;  %5461 = vmatpush1.bf16.msra.mxu0 %v9438_v15  ;;  %5605 = vmatpush3.bf16.msra.mxu1 %v9439_v30  ;;  %v8281_v11 = vsub.f32 %v2738_v38, %v2800_v49  ;;  %v4642_v3 = vsel %vm8257_vm10, 1.0, %v9308_v52  ;;  %v9536_v33 = vld [vmem:[#allocation58_spill] sm:$0xff] }
 0x173   :  { %v8283_v8 = vsub.f32 %v2741_v20, %v2804_v21  ;;  %v8285_v39 = vpack.c.bf16 %v3645_v55, %v3642_v43  ;;  %5607 = vmatprep.subr.bf16.mxu0 %v9536_v33  ;;  %5798 = vmatprep.subr.bf16.mxu1 %v9197_v29  ;;  %v2861_v15 = vsub.f32 %v7268_v25, %v9087_v34  ;;  %v9090_v20 = vand.u32 4294901760, %v7275_v24  ;;  %v9538_v31 = vld [vmem:[#allocation74_spill] sm:$0xff] }
 0x174   :  { %9533 = vst [vmem:[#allocation33_spill] sm:$0xff] %v8281_v11  ;;  %v2873_v30 = vsub.f32 %v7270_v4, %v9086_v46  ;;  %v1142_v38 = vadd.f32 %v4640_v51, %v1136_v59  ;;  %v2808_v49 = vand.u32 4294901760, %v2744_v12  ;;  %v2812_v21 = vand.u32 4294901760, %v2747_v5  ;;  %v9550_v34 = vld [vmem:[#allocation90_spill] sm:$0xff] }
 0x175   :  { %9534 = vst [vmem:[#allocation35_spill] sm:$0xff] %v8283_v8  ;;  %9535 = vst [vmem:[#allocation38_spill] sm:$0xff] %v8285_v39  ;;  %v4644_v22 = vsel %vm8275_vm11, 1.0, %v9308_v52  ;;  %v9089_v13 = vand.u32 4294901760, %v7285_v41  ;;  %2054 = vmatmul.mubr.f32.vlgmr.msra.gmra.mrb[0].mxu0 %v9491_v37  ;;  %5058 = vmatmul.mubr.f32.vlgmr.msra.gmra.mrb[0].mxu1 %v9491_v37  ;;  %v8305_v27 = vsub.f32 %v2740_v47, %v3642_v43  ;;  %v3648_v17 = vand.u32 4294901760, %v2746_v40 }
 0x176   :  { %v3651_v0 = vand.u32 4294901760, %v2749_v19  ;;  %v1148_v2 = vadd.f32 %v4642_v3, %v1142_v38  ;;  %5609 = vmatpush1.bf16.msra.mxu0 %v9538_v31  ;;  %5800 = vmatpush3.bf16.msra.mxu1 %v9539_v10  ;;  %v8309_v7 = vsub.f32 %v2743_v6, %v3645_v55  ;;  %v8311_v51 = vpack.c.bf16 %v2810_v14, %v2806_v54 }
 0x177   :  { %9537 = vst [vmem:[#allocation40_spill] sm:$0xff] %v8305_v27  ;;  %v8313_v59 = vsub.f32 %v2745_v35, %v2806_v54  ;;  %v9088_v46 = vand.u32 4294901760, %v9543_v60  ;;  %5611 = vmatprep.subr.bf16.mxu0 %v7297_v9  ;;  %5801 = vmatprep.subr.bf16.mxu1 %v9197_v29  ;;  %v2862_v37 = vand.u32 4294901760, %v2861_v15  ;;  %v2874_v47 = vand.u32 4294901760, %v2873_v30  ;;  %v9561_v9 = vld [vmem:[#allocation100_spill] sm:$0xff] }
 0x178   :  { %9540 = vst [vmem:[#allocation41_spill] sm:$0xff] %v8309_v7  ;;  %9541 = vst [vmem:[#allocation45_spill] sm:$0xff] %v8311_v51  ;;  %v1154_v43 = vadd.f32 %v4644_v22, %v1148_v2  ;;  %v8321_v3 = vsub.f32 %v7275_v24, %v9090_v20  ;;  %v8323_v6 = vsub.f32 %v2748_v62, %v2810_v14  ;;  %2846 = vmatprep.mubr.f32.mxu0 %v9308_v52 }
 0x179   :  { %9542 = vst [vmem:[#allocation46_spill] sm:$0xff] %v8313_v59  ;;  %v8325_v55 = vpack.c.bf16 %v2812_v21, %v2808_v49  ;;  %5092 = vmatprep.mubr.msk.f32.mxu1 %vm6089_vm0, %v9308_v52  ;;  %v8333_v35 = vsub.f32 %v7285_v41, %v9089_v13  ;;  %v9091_v54 = vand.u32 4294901760, %v7295_v50  ;;  %v8336_v15 = vsub.f32 %v2744_v12, %v2808_v49  ;;  %v9551_v13 = vld [vmem:[#allocation91_spill] sm:$0xff] }
 0x17a   :  { %9544 = vst [vmem:[#allocation47_spill] sm:$0xff] %v8323_v6  ;;  %v8338_v30 = vsub.f32 %v2747_v5, %v2812_v21  ;;  %v8340_v62 = vpack.c.bf16 %v3651_v0, %v3648_v17  ;;  %1155 = vst [vmem:[#allocation3 + $0x7] sm:$0x1] %v1154_v43  ;;  %v9096_v14 = vand.u32 4294901760, %v7299_v56  ;;  %5613 = vmatpush1.bf16.msra.mxu0 %v7304_v58  ;;  %5803 = vmatpush3.bf16.msra.mxu1 %v7318_v53  ;;  %v9549_v21 = vld [vmem:[#allocation82_spill] sm:$0xff]  ;;  %v9553_v49 = vld [vmem:[#allocation95_spill] sm:$0xff] }
 0x17b   :  { %9545 = vst [vmem:[#allocation48_spill] sm:$0xff] %v8325_v55  ;;  %v8345_v38 = vsub.f32 %v2746_v40, %v3648_v17  ;;  %v8347_v22 = vsub.f32 %v2749_v19, %v3651_v0  ;;  %v8352_v12 = vsub.f32 %v9543_v60, %v9088_v46  ;;  %5615 = vmatprep.subr.bf16.mxu0 %v7328_v26  ;;  %v2880_v19 = vand.u32 4294901760, %v8333_v35  ;;  %v9552_v35 = vld [vmem:[#allocation92_spill] sm:$0xff]  ;;  %v9554_v0 = vld [vmem:[#allocation93_spill] sm:$0xff]  ;;  %v9555_v43 = vld [vmem:[#allocation94_spill] sm:$0xff] }
 0x17c   :  { %9546 = vst [vmem:[#allocation49_spill] sm:$0xff] %v8340_v62  ;;  %5804 = vmatprep.subr.bf16.mxu1 %v9197_v29  ;;  %v8356_v5 = vpack.c.bf16 %v2874_v47, %v2862_v37  ;;  %v3707_v17 = vsub.f32 %v7295_v50, %v9091_v54  ;;  %v8370_v37 = vsub.f32 %v7299_v56, %v9096_v14  ;;  %v9556_v26 = vld [vmem:[#allocation96_spill] sm:$0xff]  ;;  %v9557_v14 = vld [vmem:[#allocation98_spill] sm:$0xff]  ;;  %v9558_v46 = vand.u32 4294901760, %v9549_v21  ;;  %v9559_v47 = vld [vmem:[#allocation97_spill] sm:$0xff] }
 0x17d   :  { %9547 = vst [vmem:[#allocation50_spill] sm:$0xff] %v8345_v38  ;;  %9548 = vst [vmem:[#allocation51_spill] sm:$0xff] %v8347_v22  ;;  %v3701_v54 = vand.u32 4294901760, %v8352_v12  ;;  %v9560_v58 = vld [vmem:[#allocation99_spill] sm:$0xff]  ;;  %v9562_v2 = vand.u32 4294901760, %v7306_v61  ;;  %v9564_v33 = vand.u32 4294901760, %v7324_v36 }
 0x17e   :  { %5617 = vmatpush1.bf16.msra.mxu0 %v9552_v35  ;;  %5806 = vmatpush3.bf16.msra.mxu1 %v9553_v49  ;;  %v2897_v20 = vsub.f32 %v9549_v21, %v9558_v46  ;;  %v3708_v40 = vand.u32 4294901760, %v3707_v17  ;;  %v9566_v49 = vand.u32 4294901760, %v7326_v28  ;;  %v9567_v17 = vand.u32 4294901760, %v9550_v34  ;;  %v9569_v22 = vld [vmem:[#allocation101_spill] sm:$0xff]  ;;  %v9582_v60 = vld [vmem:[#allocation103_spill] sm:$0xff] }
 0x17f   :  { %5619 = vmatprep.subr.bf16.mxu0 %v9557_v14  ;;  %5807 = vmatprep.subr.bf16.mxu1 %v9197_v29  ;;  %v2891_v53 = vsub.f32 %v7306_v61, %v9562_v2  ;;  %v9563_v14 = vand.u32 4294901760, %v7316_v1  ;;  %v3714_v46 = vsub.f32 %v7324_v36, %v9564_v33  ;;  %v9568_v2 = vand.u32 4294901760, %v9551_v13  ;;  %v9574_v61 = vld [vmem:[#allocation107_spill] sm:$0xff] }
 0x180   :  { %v3721_v12 = vsub.f32 %v7326_v28, %v9566_v49  ;;  %v2909_v35 = vsub.f32 %v9550_v34, %v9567_v17  ;;  %v2886_v33 = vand.u32 4294901760, %v8370_v37  ;;  %v9571_v36 = vand.u32 4294901760, %v9554_v0 }
 0x181   :  { %v2701_v10 = vld [vmem:[#allocation3] sm:$0xff]  ;;  %v2903_v31 = vsub.f32 %v7316_v1, %v9563_v14  ;;  %v2921_v25 = vsub.f32 %v9551_v13, %v9568_v2  ;;  %v9570_v14 = vld [vmem:[#allocation104_spill] sm:$0xff]  ;;  %v9572_v49 = vand.u32 4294901760, %v9555_v43  ;;  %v9573_v17 = vand.u32 4294901760, %v9556_v26 }
 0x182   :  { %v8398_v4 = vand.u32 4294901760, %v2701_v10  ;;  %5621 = vmatpush1.bf16.msra.mxu0 %v9569_v22  ;;  %5809 = vmatpush3.bf16.msra.mxu1 %v9570_v14  ;;  %v2915_v1 = vsub.f32 %v9554_v0, %v9571_v36  ;;  %v2898_v2 = vand.u32 4294901760, %v2897_v20  ;;  %v9575_v14 = vand.u32 4294901760, %v9559_v47 }
 0x183   :  { %v2927_v28 = vsub.f32 %v9555_v43, %v9572_v49  ;;  %v3728_v34 = vsub.f32 %v9556_v26, %v9573_v17  ;;  %5623 = vmatprep.subr.bf16.mxu0 %v9574_v61  ;;  %5810 = vmatprep.subr.bf16.mxu1 %v9197_v29  ;;  %v9576_v22 = vand.u32 4294901760, %v9560_v58  ;;  %v9577_v0 = vand.u32 4294901760, %v9561_v9  ;;  %v9578_v26 = vld [vmem:[#allocation102_spill] sm:$0xff]  ;;  %v9584_v61 = vld [vmem:[#allocation105_spill] sm:$0xff] }
 0x184   :  { %9565 = vst [vmem:[#allocation52_spill] sm:$0xff] %v8398_v4  ;;  %v3735_v37 = vsub.f32 %v9559_v47, %v9575_v14  ;;  %v2892_v43 = vand.u32 4294901760, %v2891_v53  ;;  %v2904_v13 = vand.u32 4294901760, %v2903_v31  ;;  %v3715_v17 = vand.u32 4294901760, %v3714_v46  ;;  %v9580_v14 = vld [vmem:[#allocation110_spill] sm:$0xff]  ;;  %v9581_v47 = vld [vmem:[#allocation111_spill] sm:$0xff] }
 0x185   :  { %v2933_v36 = vsub.f32 %v9560_v58, %v9576_v22  ;;  %v2945_v49 = vsub.f32 %v9561_v9, %v9577_v0  ;;  %v8434_v38 = vsub.f32 %v2701_v10, %v8398_v4  ;;  %v3722_v20 = vand.u32 4294901760, %v3721_v12  ;;  %v9583_v53 = vld [vmem:[#allocation113_spill] sm:$0xff] }
 0x186   :  { %v2910_v21 = vand.u32 4294901760, %v2909_v35  ;;  %v2922_v56 = vand.u32 4294901760, %v2921_v25  ;;  %5625 = vmatpush1.bf16.msra.mxu0 %v9580_v14  ;;  %5812 = vmatpush3.bf16.msra.mxu1 %v9581_v47  ;;  %v2916_v22 = vand.u32 4294901760, %v2915_v1  ;;  %v2928_v58 = vand.u32 4294901760, %v2927_v28 }
 0x187   :  { %9579 = vst [vmem:[#allocation53_spill] sm:$0xff] %v8434_v38  ;;  %v3729_v50 = vand.u32 4294901760, %v3728_v34  ;;  %5627 = vmatprep.subr.bf16.mxu0 %v9583_v53  ;;  %5813 = vmatprep.subr.bf16.mxu1 %v9197_v29  ;;  %v3736_v31 = vand.u32 4294901760, %v3735_v37  ;;  %v2934_v46 = vand.u32 4294901760, %v2933_v36  ;;  %v2946_v10 = vand.u32 4294901760, %v2945_v49  ;;  %v9587_v34 = vld [vmem:[#allocation106_spill] sm:$0xff] }
 0x188   :  { %v9128_v12 = vand.u32 4294901760, %v9584_v61  ;;  %v9585_v25 = vand.u32 4294901760, %v8321_v3  ;;  %v8446_v14 = vpack.c.bf16 %v3708_v40, %v3701_v54  ;;  %v9586_v1 = vand.u32 4294901760, %v9578_v26 }
 0x189   :  { %v9129_v0 = vand.u32 4294901760, %v9587_v34  ;;  %v8453_v53 = vand.u32 4294901760, %v8434_v38  ;;  %v8455_v37 = vpack.c.bf16 %v2898_v2, %v2886_v33  ;;  %v8457_v36 = vpack.c.bf16 %v2904_v13, %v2892_v43 }
 0x18a   :  { %v8444_v35 = vpack.c.bf16 %v2880_v19, %v9585_v25  ;;  %v2939_v28 = vsub.f32 %v9578_v26, %v9586_v1  ;;  %v8459_v49 = vpack.c.bf16 %v3722_v20, %v3715_v17  ;;  %5629 = vmatpush1.bf16.msra.mxu0 %v8087_v45  ;;  %5815 = vmatpush3.bf16.msra.mxu1 %v8210_v57  ;;  %v9589_v40 = vand.u32 4294901760, %v9582_v60  ;;  %v9591_v17 = vld [vmem:[#allocation109_spill] sm:$0xff] }
 0x18b   :  { %9588 = vst [vmem:[#allocation55_spill] sm:$0xff] %v8453_v53  ;;  %v8463_v3 = vpack.c.bf16 %v2922_v56, %v2910_v21  ;;  %v8465_v54 = vpack.c.bf16 %v2928_v58, %v2916_v22  ;;  %5631 = vmatprep.subr.bf16.mxu0 %v8239_v18  ;;  %5816 = vmatprep.subr.bf16.mxu1 %v9197_v29  ;;  %v9590_v56 = vld [vmem:[#allocation108_spill] sm:$0xff]  ;;  %v9592_v22 = vld [vmem:[#allocation57_spill] sm:$0xff]  ;;  %v9597_v18 = vld [vmem:[#allocation22_spill] sm:$0xff]  ;;  %v9609_v4 = vand.u32 4294901760, %v8235_v63 }
 0x18c   :  { %v2951_v19 = vsub.f32 %v9582_v60, %v9589_v40  ;;  %v8472_v13 = vpack.c.bf16 %v3736_v31, %v3729_v50  ;;  %v8474_v43 = vpack.c.bf16 %v2946_v10, %v2934_v46  ;;  %v3742_v33 = vsub.f32 %v9584_v61, %v9128_v12  ;;  %v9593_v31 = vld [vmem:[#allocation56_spill] sm:$0xff]  ;;  %v9594_v10 = vld [vmem:[#allocation18_spill] sm:$0xff] }
 0x18d   :  { %v2940_v58 = vand.u32 4294901760, %v2939_v28  ;;  %v3749_v2 = vsub.f32 %v9587_v34, %v9129_v0  ;;  %v2850_v50 = vsub.f32 %v8434_v38, %v8453_v53  ;;  %v9595_v40 = vld [vmem:[#allocation112_spill] sm:$0xff]  ;;  %v9598_v1 = vand.u32 4294901760, %v9590_v56 }
 0x18e   :  { %5633 = vmatpush1.bf16.msra.mxu0 %v8269_v44  ;;  %5818 = vmatpush3.bf16.msra.mxu1 %v8285_v39  ;;  %v2952_v28 = vand.u32 4294901760, %v2951_v19  ;;  %v9596_v21 = vld [vmem:[#allocation60_spill] sm:$0xff]  ;;  %v3743_v46 = vand.u32 4294901760, %v3742_v33  ;;  %v9599_v0 = vand.u32 4294901760, %v9591_v17  ;;  %v9600_v25 = vand.u32 4294901760, %v9592_v22 }
 0x18f   :  { %5635 = vmatprep.subr.bf16.mxu0 %v8311_v51  ;;  %5819 = vmatprep.subr.bf16.mxu1 %v9197_v29  ;;  %v2957_v12 = vsub.f32 %v9590_v56, %v9598_v1  ;;  %v3750_v19 = vand.u32 4294901760, %v3749_v2  ;;  %v2851_v33 = vand.u32 4294901760, %v2850_v50  ;;  %v9601_v57 = vand.u32 4294901760, %v9593_v31 }
 0x190   :  { %v2969_v20 = vsub.f32 %v9591_v17, %v9599_v0  ;;  %v2963_v51 = vsub.f32 %v9592_v22, %v9600_v25  ;;  %v9602_v53 = vand.u32 4294901760, %v9594_v10  ;;  %v9603_v2 = vand.u32 4294901760, %v9595_v40 }
 0x191   :  { %v2975_v1 = vsub.f32 %v9593_v31, %v9601_v57  ;;  %v9604_v0 = vand.u32 4294901760, %v9596_v21  ;;  %v9605_v50 = vand.u32 4294901760, %v9597_v18  ;;  %v9606_v44 = vand.u32 4294901760, %v8186_v42 }
 0x192   :  { %v3756_v39 = vsub.f32 %v9594_v10, %v9602_v53  ;;  %v3763_v45 = vsub.f32 %v9595_v40, %v9603_v2  ;;  %5637 = vmatpush1.bf16.msra.mxu0 %v8325_v55  ;;  %5821 = vmatpush3.bf16.msra.mxu1 %v8340_v62  ;;  %v8531_v2 = vpack.c.bf16 %v2952_v28, %v2940_v58  ;;  %v9607_v62 = vand.u32 4294901760, %v8194_v32 }
 0x193   :  { %v2981_v25 = vsub.f32 %v9596_v21, %v9604_v0  ;;  %v2993_v57 = vsub.f32 %v9597_v18, %v9605_v50  ;;  %v2987_v53 = vsub.f32 %v8186_v42, %v9606_v44  ;;  %5639 = vmatprep.subr.bf16.mxu0 %v8356_v5  ;;  %5822 = vmatprep.subr.bf16.mxu1 %v9197_v29  ;;  %v9608_v0 = vand.u32 4294901760, %v8221_v48 }
 0x194   :  { %v2999_v55 = vsub.f32 %v8194_v32, %v9607_v62  ;;  %v2958_v38 = vand.u32 4294901760, %v2957_v12  ;;  %v2970_v50 = vand.u32 4294901760, %v2969_v20  ;;  %v3777_v44 = vsub.f32 %v8235_v63, %v9609_v4 }
 0x195   :  { %v3770_v47 = vsub.f32 %v8221_v48, %v9608_v0  ;;  %2852 = vmatmul.mubr.f32.vlgmr.msra.gmra.mrb[2].mxu0 %v2851_v33  ;;  %5093 = vmatmul.mubr.f32.vlgmr.msra.gmra.mrb[2].mxu1 %v2851_v33  ;;  %v8543_v58 = vpack.c.bf16 %v3750_v19, %v3743_v46  ;;  %v2964_v28 = vand.u32 4294901760, %v2963_v51  ;;  %v2976_v42 = vand.u32 4294901760, %v2975_v1 }
 0x196   :  { %v3757_v18 = vand.u32 4294901760, %v3756_v39  ;;  %5641 = vmatpush1.bf16.msra.mxu0 %v8444_v35  ;;  %5824 = vmatpush3.bf16.msra.mxu1 %v8446_v14  ;;  %v3764_v62 = vand.u32 4294901760, %v3763_v45  ;;  %v2982_v12 = vand.u32 4294901760, %v2981_v25  ;;  %v2994_v20 = vand.u32 4294901760, %v2993_v57 }
 0x197   :  { %v2988_v0 = vand.u32 4294901760, %v2987_v53  ;;  %5643 = vmatprep.subr.bf16.mxu0 %v8455_v37  ;;  %5825 = vmatprep.subr.bf16.mxu1 %v9197_v29  ;;  %v3000_v4 = vand.u32 4294901760, %v2999_v55  ;;  %v3771_v5 = vand.u32 4294901760, %v3770_v47  ;;  %v3016_v46 = vand.u32 4294901760, %v8267_v23 }
 0x198   :  { %v3010_v51 = vand.u32 4294901760, %v8281_v11  ;;  %v3778_v19 = vand.u32 4294901760, %v3777_v44  ;;  %v9610_v39 = vand.u32 4294901760, %v8264_v16  ;;  %v3022_v45 = vand.u32 4294901760, %v8283_v8  ;;  %3082 = vmatprep.mubr.f32.mxu0 %v9308_v52  ;;  %5127 = vmatprep.mubr.msk.f32.mxu1 %vm6089_vm0, %v9308_v52 }
 0x199   :  { %v3783_v14 = vand.u32 4294901760, %v8305_v27  ;;  %v5654_v55 = vpack.c.bf16 %v2970_v50, %v2958_v38  ;;  %v3790_v47 = vand.u32 4294901760, %v8309_v7  ;;  %v3028_v37 = vand.u32 4294901760, %v8313_v59 }
 0x19a   :  { %v8554_v35 = vsub.f32 %v8264_v16, %v9610_v39  ;;  %v3040_v33 = vand.u32 4294901760, %v8323_v6  ;;  %5645 = vmatpush1.bf16.msra.mxu0 %v8457_v36  ;;  %5827 = vmatpush3.bf16.msra.mxu1 %v8459_v49  ;;  %v5656_v1 = vpack.c.bf16 %v2976_v42, %v2964_v28  ;;  %v5835_v25 = vpack.c.bf16 %v3764_v62, %v3757_v18 }
 0x19b   :  { %v5658_v57 = vpack.c.bf16 %v2994_v20, %v2982_v12  ;;  %5647 = vmatprep.subr.bf16.mxu0 %v8463_v3  ;;  %5828 = vmatprep.subr.bf16.mxu1 %v9197_v29  ;;  %v8568_v53 = vpack.c.bf16 %v3000_v4, %v2988_v0  ;;  %v3017_v38 = vsub.f32 %v8267_v23, %v3016_v46  ;;  %v3034_v28 = vand.u32 4294901760, %v8336_v15  ;;  %v9615_v0 = vld [vmem:[#allocation78_spill] sm:$0xff] }
 0x19c   :  { %v3011_v50 = vsub.f32 %v8281_v11, %v3010_v51  ;;  %v5838_v44 = vpack.c.bf16 %v3778_v19, %v3771_v5  ;;  %v3006_v39 = vand.u32 4294901760, %v8554_v35  ;;  %v3023_v36 = vsub.f32 %v8283_v8, %v3022_v45  ;;  %v9617_v19 = vld [vmem:[#allocation79_spill] sm:$0xff] }
 0x19d   :  { %9611 = vst [vmem:[#allocation21_spill] sm:$0xff] %v8568_v53  ;;  %v3784_v49 = vsub.f32 %v8305_v27, %v3783_v14  ;;  %v3791_v42 = vsub.f32 %v8309_v7, %v3790_v47  ;;  %v8577_v18 = vsub.f32 %v8313_v59, %v3028_v37  ;;  %v8580_v3 = vsub.f32 %v8323_v6, %v3040_v33  ;;  %v9620_v59 = vld [vmem:[#allocation81_spill] sm:$0xff]  ;;  %v9622_v27 = vld [vmem:[#allocation82_spill] sm:$0xff] }
 0x19e   :  { %5649 = vmatpush1.bf16.msra.mxu0 %v8465_v54  ;;  %5830 = vmatpush3.bf16.msra.mxu1 %v8472_v13  ;;  %v3046_v5 = vand.u32 4294901760, %v8338_v30  ;;  %v9612_v62 = vand.u32 4294901760, %v7275_v24  ;;  %v9613_v12 = vand.u32 4294901760, %v7285_v41  ;;  %v9616_v4 = vand.u32 4294901760, %v9615_v0  ;;  %v9625_v13 = vld [vmem:[#allocation50_spill] sm:$0xff]  ;;  %v9641_v0 = vld [vmem:[#allocation93_spill] sm:$0xff] }
 0x19f   :  { %v9618_v35 = vand.u32 4294901760, %v9617_v19  ;;  %v9621_v7 = vand.u32 4294901760, %v9620_v59  ;;  %v9623_v54 = vand.u32 4294901760, %v9622_v27  ;;  %5651 = vmatprep.subr.bf16.mxu0 %v8474_v43  ;;  %5831 = vmatprep.subr.bf16.mxu1 %v9197_v29  ;;  %v3797_v11 = vand.u32 4294901760, %v9625_v13  ;;  %v9643_v24 = vld [vmem:[#allocation94_spill] sm:$0xff] }
 0x1a0   :  { %v8590_v20 = vpack.c.bf16 %v9613_v12, %v9612_v62  ;;  %v9626_v62 = vld [vmem:[#allocation84_spill] sm:$0xff]  ;;  %v9642_v41 = vand.u32 4294901760, %v9641_v0 }
 0x1a1   :  { %v8596_v6 = vpack.c.bf16 %v9618_v35, %v9616_v4  ;;  %v8602_v8 = vpack.c.bf16 %v9623_v54, %v9621_v7  ;;  %v9627_v12 = vand.u32 4294901760, %v9626_v62  ;;  %v9631_v4 = vld [vmem:[#allocation87_spill] sm:$0xff]  ;;  %v9636_v7 = vld [vmem:[#allocation90_spill] sm:$0xff]  ;;  %v9644_v62 = vand.u32 4294901760, %v9643_v24 }
 0x1a2   :  { %9614 = vst [vmem:[#allocation61_spill] sm:$0xff] %v8590_v20  ;;  %v9628_v20 = vld [vmem:[#allocation85_spill] sm:$0xff]  ;;  %v9632_v35 = vand.u32 4294901760, %v9631_v4  ;;  %v9637_v54 = vand.u32 4294901760, %v9636_v7  ;;  %5653 = vmatpush1.bf16.msra.mxu0 %v8531_v2  ;;  %5833 = vmatpush3.bf16.msra.mxu1 %v8543_v58  ;;  %v9680_v2 = vand.u32 4294901760, %v8235_v63  ;;  %v3018_v58 = vand.u32 4294901760, %v3017_v38 }
 0x1a3   :  { %9619 = vst [vmem:[#allocation23_spill] sm:$0xff] %v8596_v6  ;;  %9624 = vst [vmem:[#allocation25_spill] sm:$0xff] %v8602_v8  ;;  %v9629_v23 = vand.u32 4294901760, %v9628_v20  ;;  %v9633_v6 = vld [vmem:[#allocation88_spill] sm:$0xff]  ;;  %v9638_v8 = vld [vmem:[#allocation91_spill] sm:$0xff]  ;;  %v8629_v53 = vpack.c.bf16 %v9644_v62, %v9642_v41  ;;  %v9658_v41 = vand.u32 4294901760, %v9584_v61  ;;  %5655 = vmatprep.subr.bf16.mxu0 %v5654_v55  ;;  %5834 = vmatprep.subr.bf16.mxu1 %v9197_v29 }
 0x1a4   :  { %v9634_v59 = vand.u32 4294901760, %v9633_v6  ;;  %v9639_v43 = vand.u32 4294901760, %v9638_v8  ;;  %v9659_v62 = vand.u32 4294901760, %v9587_v34  ;;  %v3785_v55 = vand.u32 4294901760, %v3784_v49 }
 0x1a5   :  { %v8611_v52 = vpack.c.bf16 %v9629_v23, %v9627_v12  ;;  %9645 = vst [vmem:[#allocation37_spill] sm:$0xff] %v8629_v53  ;;  %v9646_v23 = vld [vmem:[#allocation96_spill] sm:$0xff]  ;;  %v3035_v38 = vsub.f32 %v8336_v15, %v3034_v28 }
 0x1a6   :  { %v8617_v19 = vpack.c.bf16 %v9634_v59, %v9632_v35  ;;  %v8623_v27 = vpack.c.bf16 %v9639_v43, %v9637_v54  ;;  %v9647_v12 = vand.u32 4294901760, %v9646_v23  ;;  %v9651_v59 = vld [vmem:[#allocation99_spill] sm:$0xff]  ;;  %v9655_v54 = vand.u32 4294901760, %v9578_v26  ;;  %5657 = vmatpush1.bf16.msra.mxu0 %v5656_v1  ;;  %5836 = vmatpush3.bf16.msra.mxu1 %v5835_v25 }
 0x1a7   :  { %9630 = vst [vmem:[#allocation26_spill] sm:$0xff] %v8611_v52  ;;  %v9648_v52 = vld [vmem:[#allocation97_spill] sm:$0xff]  ;;  %v9652_v35 = vand.u32 4294901760, %v9651_v59  ;;  %v9656_v43 = vand.u32 4294901760, %v9582_v60  ;;  %v8653_v53 = vpack.c.bf16 %v9659_v62, %v9658_v41  ;;  %v9670_v41 = vld [vmem:[#allocation51_spill] sm:$0xff]  ;;  %5659 = vmatprep.subr.bf16.mxu0 %v5658_v57  ;;  %5837 = vmatprep.subr.bf16.mxu1 %v9197_v29  ;;  %v3036_v1 = vand.u32 4294901760, %v3035_v38 }
 0x1a8   :  { %9635 = vst [vmem:[#allocation34_spill] sm:$0xff] %v8617_v19  ;;  %9640 = vst [vmem:[#allocation36_spill] sm:$0xff] %v8623_v27  ;;  %v9649_v4 = vand.u32 4294901760, %v9648_v52  ;;  %v9653_v19 = vand.u32 4294901760, %v9561_v9  ;;  %v3804_v62 = vand.u32 4294901760, %v9670_v41  ;;  %v9691_v38 = vld [vmem:[#allocation52_spill] sm:$0xff] }
 0x1a9   :  { %v8647_v27 = vpack.c.bf16 %v9656_v43, %v9655_v54  ;;  %9660 = vst [vmem:[#allocation44_spill] sm:$0xff] %v8653_v53  ;;  %v9667_v54 = vand.u32 4294901760, %v9594_v10  ;;  %v9668_v43 = vand.u32 4294901760, %v9595_v40 }
 0x1aa   :  { %v8635_v20 = vpack.c.bf16 %v9649_v4, %v9647_v12  ;;  %v8641_v7 = vpack.c.bf16 %v9653_v19, %v9652_v35  ;;  %v9661_v4 = vand.u32 4294901760, %v9590_v56  ;;  %v9662_v12 = vand.u32 4294901760, %v9591_v17  ;;  %5839 = vmatpush3.bf16.msra.mxu1 %v5838_v44  ;;  %v9685_v44 = vld [vmem:[#allocation75_spill] sm:$0xff] }
 0x1ab   :  { %9657 = vst [vmem:[#allocation43_spill] sm:$0xff] %v8647_v27  ;;  %v9664_v19 = vand.u32 4294901760, %v9592_v22  ;;  %v9665_v35 = vand.u32 4294901760, %v9593_v31  ;;  %v8671_v27 = vpack.c.bf16 %v9668_v43, %v9667_v54  ;;  %v9679_v54 = vand.u32 4294901760, %v8221_v48  ;;  %5840 = vmatprep.subr.bf16.mxu1 %v9197_v29 }
 0x1ac   :  { %9650 = vst [vmem:[#allocation39_spill] sm:$0xff] %v8635_v20  ;;  %9654 = vst [vmem:[#allocation42_spill] sm:$0xff] %v8641_v7  ;;  %v8659_v20 = vpack.c.bf16 %v9662_v12, %v9661_v4  ;;  %v9671_v4 = vand.u32 4294901760, %v9596_v21  ;;  %v9672_v12 = vld [vmem:[#allocation22_spill] sm:$0xff]  ;;  %v8707_v63 = vpack.c.bf16 %v3804_v62, %v3797_v11 }
 0x1ad   :  { %v8665_v7 = vpack.c.bf16 %v9665_v35, %v9664_v19  ;;  %9669 = vst [vmem:[#allocation64_spill] sm:$0xff] %v8671_v27  ;;  %v9675_v19 = vld [vmem:[#allocation27_spill] sm:$0xff]  ;;  %v8692_v43 = vpack.c.bf16 %v9680_v2, %v9679_v54  ;;  %v9681_v27 = vand.u32 4294901760, %v8264_v16  ;;  %v3024_v54 = vand.u32 4294901760, %v3023_v36 }
 0x1ae   :  { %9663 = vst [vmem:[#allocation62_spill] sm:$0xff] %v8659_v20  ;;  %v9673_v20 = vand.u32 4294901760, %v9672_v12  ;;  %v9676_v35 = vand.u32 4294901760, %v9675_v19  ;;  %v3792_v2 = vand.u32 4294901760, %v3791_v42  ;;  %v9683_v42 = vld [vmem:[#allocation19_spill] sm:$0xff] }
 0x1af   :  { %9666 = vst [vmem:[#allocation63_spill] sm:$0xff] %v8665_v7  ;;  %v9677_v7 = vand.u32 4294901760, %v8194_v32 }
 0x1b0   :  { %v8680_v53 = vpack.c.bf16 %v9673_v20, %v9671_v4  ;;  %v8697_v20 = vpack.c.bf16 %v3016_v46, %v9681_v27  ;;  %v8699_v4 = vpack.c.bf16 %v3022_v45, %v3010_v51  ;;  %v3047_v27 = vsub.f32 %v8338_v30, %v3046_v5 }
 0x1b1   :  { %v8686_v10 = vpack.c.bf16 %v9677_v7, %v9676_v35  ;;  %v3012_v7 = vand.u32 4294901760, %v3011_v50  ;;  %v8703_v35 = vpack.c.bf16 %v3040_v33, %v3028_v37  ;;  %v3798_v46 = vsub.f32 %v9625_v13, %v3797_v11  ;;  %v9682_v50 = vld [vmem:[#allocation21_spill] sm:$0xff] }
 0x1b2   :  { %9674 = vst [vmem:[#allocation65_spill] sm:$0xff] %v8680_v53  ;;  %v8701_v53 = vpack.c.bf16 %v3790_v47, %v3783_v14  ;;  %v3805_v51 = vsub.f32 %v9670_v41, %v3804_v62  ;;  %v5662_v45 = vpack.c.bf16 %v3018_v58, %v3006_v39  ;;  %v3030_v14 = vand.u32 4294901760, %v8577_v18  ;;  %5661 = vmatpush1.bf16.msra.mxu0 %v9682_v50  ;;  %v9684_v18 = vld [vmem:[#allocation20_spill] sm:$0xff]  ;;  %v9687_v62 = vld [vmem:[#allocation78_spill] sm:$0xff]  ;;  %v9688_v58 = vld [vmem:[#allocation79_spill] sm:$0xff] }
 0x1b3   :  { %9678 = vst [vmem:[#allocation66_spill] sm:$0xff] %v8686_v10  ;;  %v8705_v10 = vpack.c.bf16 %v3046_v5, %v3034_v28  ;;  %v3042_v47 = vand.u32 4294901760, %v8580_v3  ;;  %v5664_v37 = vpack.c.bf16 %v3024_v54, %v3012_v7  ;;  %v5841_v33 = vpack.c.bf16 %v3792_v2, %v3785_v55  ;;  %v9686_v28 = vld [vmem:[#allocation77_spill] sm:$0xff]  ;;  %v9690_v55 = vld [vmem:[#allocation82_spill] sm:$0xff] }
 0x1b4   :  { %v3048_v25 = vand.u32 4294901760, %v3047_v27  ;;  %v3799_v36 = vand.u32 4294901760, %v3798_v46  ;;  %v3806_v49 = vand.u32 4294901760, %v3805_v51  ;;  %5663 = vmatprep.subr.bf16.mxu0 %v5662_v45  ;;  %v5670_v3 = vpack.c.bf16 %v9684_v18, %v9683_v42  ;;  %v9689_v54 = vld [vmem:[#allocation81_spill] sm:$0xff]  ;;  %v9692_v27 = vld [vmem:[#allocation84_spill] sm:$0xff]  ;;  %v9694_v45 = vld [vmem:[#allocation87_spill] sm:$0xff] }
 0x1b5   :  { %v5666_v11 = vpack.c.bf16 %v3042_v47, %v3030_v14  ;;  %5842 = vmatpush3.bf16.msra.mxu1 %v5841_v33  ;;  %v5672_v5 = vpack.c.bf16 %v9686_v28, %v9685_v44  ;;  %v5847_v7 = vpack.c.bf16 %v9688_v58, %v9687_v62  ;;  %v5674_v2 = vpack.c.bf16 %v9690_v55, %v9689_v54  ;;  %v9693_v46 = vld [vmem:[#allocation85_spill] sm:$0xff]  ;;  %v9695_v47 = vld [vmem:[#allocation90_spill] sm:$0xff]  ;;  %v9719_v62 = vld [vmem:[#allocation107_spill] sm:$0xff] }
 0x1b6   :  { %5665 = vmatpush1.bf16.msra.mxu0 %v5664_v37  ;;  %v5668_v57 = vpack.c.bf16 %v3048_v25, %v3036_v1  ;;  %v5844_v39 = vpack.c.bf16 %v3806_v49, %v3799_v36  ;;  %5843 = vmatprep.subr.bf16.mxu1 %v9197_v29  ;;  %v5676_v51 = vpack.c.bf16 %v9693_v46, %v9692_v27  ;;  %v9696_v33 = vmov 0.0   ;;  %v9706_v36 = vld [vmem:[#allocation58_spill] sm:$0xff]  ;;  %v9707_v49 = vld [vmem:[#allocation53_spill] sm:$0xff]  ;;  %v9723_v55 = vld [vmem:[#allocation24_spill] sm:$0xff] }
 0x1b7   :  { %5667 = vmatprep.subr.bf16.mxu0 %v5666_v11  ;;  %v5850_v14 = vpack.c.bf16 %v9633_v6, %v9694_v45  ;;  %v5678_v37 = vpack.c.bf16 %v9638_v8, %v9695_v47  ;;  %v5680_v50 = vpack.c.bf16 %v9643_v24, %v9641_v0  ;;  %v5853_v1 = vpack.c.bf16 %v9648_v52, %v9646_v23  ;;  %v9703_v23 = vld [vmem:[#allocation41_spill] sm:$0xff]  ;;  %v9708_v11 = vld [vmem:[#allocation74_spill] sm:$0xff]  ;;  %v9726_v46 = vld [vmem:[#allocation32_spill] sm:$0xff] }
 0x1b8   :  { %v5682_v6 = vpack.c.bf16 %v9561_v9, %v9651_v59  ;;  %v5684_v8 = vpack.c.bf16 %v9582_v60, %v9578_v26  ;;  %v5856_v25 = vpack.c.bf16 %v9587_v34, %v9584_v61  ;;  %v5686_v52 = vpack.c.bf16 %v9591_v17, %v9590_v56  ;;  %v9697_v9 = vld [vmem:[#allocation18_spill] sm:$0xff]  ;;  %v9698_v60 = vld [vmem:[#allocation29_spill] sm:$0xff]  ;;  %v9699_v56 = vld [vmem:[#allocation31_spill] sm:$0xff] }
 0x1b9   :  { %5845 = vmatpush3.bf16.msra.mxu1 %v5844_v39  ;;  %v5688_v24 = vpack.c.bf16 %v9593_v31, %v9592_v22  ;;  %v5859_v0 = vpack.c.bf16 %v9595_v40, %v9697_v9  ;;  %v5690_v61 = vpack.c.bf16 %v9672_v12, %v9596_v21  ;;  %v5692_v26 = vpack.c.bf16 %v8194_v32, %v9675_v19  ;;  %v9700_v22 = vld [vmem:[#allocation33_spill] sm:$0xff]  ;;  %v9701_v31 = vld [vmem:[#allocation35_spill] sm:$0xff]  ;;  %v9702_v21 = vld [vmem:[#allocation40_spill] sm:$0xff] }
 0x1ba   :  { %5669 = vmatpush1.bf16.msra.mxu0 %v5668_v57  ;;  %5846 = vmatprep.subr.bf16.mxu1 %v9197_v29  ;;  %v5862_v34 = vpack.c.bf16 %v9698_v60, %v8221_v48  ;;  %v5694_v17 = vpack.c.bf16 %v9699_v56, %v8264_v16  ;;  %v5696_v40 = vpack.c.bf16 %v9701_v31, %v9700_v22  ;;  %v9704_v32 = vld [vmem:[#allocation46_spill] sm:$0xff]  ;;  %v9705_v12 = vld [vmem:[#allocation47_spill] sm:$0xff]  ;;  %v9709_v57 = vld [vmem:[#allocation76_spill] sm:$0xff]  ;;  %v9730_v47 = vand.u32 4294901760, %v9684_v18 }
 0x1bb   :  { %5671 = vmatprep.subr.bf16.mxu0 %v5670_v3  ;;  %v5865_v59 = vpack.c.bf16 %v9703_v23, %v9702_v21  ;;  %v5698_v48 = vpack.c.bf16 %v9705_v12, %v9704_v32  ;;  %v5700_v19 = vpack.c.bf16 %v8338_v30, %v8336_v15  ;;  %v5868_v16 = vpack.c.bf16 %v9670_v41, %v9625_v13  ;;  %v9710_v15 = vld [vmem:[#allocation80_spill] sm:$0xff]  ;;  %v9711_v30 = vld [vmem:[#allocation83_spill] sm:$0xff]  ;;  %v9712_v13 = vld [vmem:[#allocation86_spill] sm:$0xff] }
 0x1bc   :  { %5128 = vmatmul.mubr.f32.vlgmr.msra.gmra.mrb[2].mxu1 %v9691_v38  ;;  %v9713_v41 = vld [vmem:[#allocation89_spill] sm:$0xff]  ;;  %v9714_v39 = vld [vmem:[#allocation92_spill] sm:$0xff]  ;;  %v9715_v3 = vld [vmem:[#allocation95_spill] sm:$0xff] }
 0x1bd   :  { %3084 = vmatmul.mubr.f32.vlgmr.msra.gmra.mrb[2].mxu0 %v9691_v38  ;;  %5848 = vmatpush3.bf16.msra.mxu1 %v5847_v7  ;;  %v9716_v44 = vld [vmem:[#allocation98_spill] sm:$0xff]  ;;  %v9717_v28 = vld [vmem:[#allocation101_spill] sm:$0xff]  ;;  %v9721_v7 = vld [vmem:[#allocation111_spill] sm:$0xff] }
 0x1be   :  { %5673 = vmatpush1.bf16.msra.mxu0 %v5672_v5  ;;  %5849 = vmatprep.subr.bf16.mxu1 %v9197_v29  ;;  %v9718_v5 = vld [vmem:[#allocation104_spill] sm:$0xff]  ;;  %v9720_v58 = vld [vmem:[#allocation110_spill] sm:$0xff]  ;;  %v9722_v54 = vld [vmem:[#allocation113_spill] sm:$0xff] }
 0x1bf   :  { %5675 = vmatprep.subr.bf16.mxu0 %v5674_v2  ;;  %3218 = vmatprep.mubr.f32.mxu0 %v9696_v33  ;;  %v9724_v2 = vld [vmem:[#allocation28_spill] sm:$0xff]  ;;  %v9725_v27 = vld [vmem:[#allocation30_spill] sm:$0xff]  ;;  %v9728_v45 = vld [vmem:[#allocation45_spill] sm:$0xff] }
 0x1c0   :  { %5162 = vmatprep.mubr.msk.f32.mxu1 %vm6089_vm0, %v9696_v33  ;;  %v9738_v18 = vld [vmem:[#allocation34_spill] sm:$0xff]  ;;  %v9740_v9 = vld [vmem:[#allocation37_spill] sm:$0xff]  ;;  %v9744_v60 = vld [vmem:[#allocation44_spill] sm:$0xff] }
 0x1c1   :  { %5851 = vmatpush3.bf16.msra.mxu1 %v5850_v14  ;;  %v9729_v14 = vand.u32 4294901760, %v9683_v42  ;;  %v9737_v42 = vld [vmem:[#allocation26_spill] sm:$0xff]  ;;  %v9746_v56 = vld [vmem:[#allocation63_spill] sm:$0xff]  ;;  %v9748_v22 = vld [vmem:[#allocation65_spill] sm:$0xff] }
 0x1c2   :  { %5677 = vmatpush1.bf16.msra.mxu0 %v5676_v51  ;;  %5852 = vmatprep.subr.bf16.mxu1 %v9197_v29  ;;  %v9727_v51 = vld [vmem:[#allocation38_spill] sm:$0xff] }
 0x1c3   :  { %5679 = vmatprep.subr.bf16.mxu0 %v5678_v37  ;;  %v5734_v37 = vpack.c.bf16 %v9730_v47, %v9729_v14  ;;  %v9749_v31 = vld [vmem:[#allocation66_spill] sm:$0xff] }
 0x1c5   :  { %5854 = vmatpush3.bf16.msra.mxu1 %v5853_v1  ;;  %v9732_v1 = vld [vmem:[#allocation49_spill] sm:$0xff] }
 0x1c6   :  { %5681 = vmatpush1.bf16.msra.mxu0 %v5680_v50  ;;  %5855 = vmatprep.subr.bf16.mxu1 %v9197_v29  ;;  %v9731_v50 = vld [vmem:[#allocation48_spill] sm:$0xff] }
 0x1c7   :  { %5683 = vmatprep.subr.bf16.mxu0 %v5682_v6  ;;  %v9733_v6 = vld [vmem:[#allocation55_spill] sm:$0xff] }
 0x1c9   :  { %5857 = vmatpush3.bf16.msra.mxu1 %v5856_v25  ;;  %v9735_v25 = vld [vmem:[#allocation23_spill] sm:$0xff] }
 0x1ca   :  { %5685 = vmatpush1.bf16.msra.mxu0 %v5684_v8  ;;  %5858 = vmatprep.subr.bf16.mxu1 %v9197_v29  ;;  %v9734_v8 = vld [vmem:[#allocation61_spill] sm:$0xff] }
 0x1cb   :  { %5687 = vmatprep.subr.bf16.mxu0 %v5686_v52  ;;  %v9736_v52 = vld [vmem:[#allocation25_spill] sm:$0xff] }
 0x1cd   :  { %5860 = vmatpush3.bf16.msra.mxu1 %v5859_v0  ;;  %v9741_v0 = vld [vmem:[#allocation39_spill] sm:$0xff] }
 0x1ce   :  { %5689 = vmatpush1.bf16.msra.mxu0 %v5688_v24  ;;  %5861 = vmatprep.subr.bf16.mxu1 %v9197_v29  ;;  %v9739_v24 = vld [vmem:[#allocation36_spill] sm:$0xff] }
 0x1cf   :  { %5691 = vmatprep.subr.bf16.mxu0 %v5690_v61  ;;  %v9742_v61 = vld [vmem:[#allocation42_spill] sm:$0xff] }
 0x1d1   :  { %5863 = vmatpush3.bf16.msra.mxu1 %v5862_v34  ;;  %v9745_v34 = vld [vmem:[#allocation62_spill] sm:$0xff] }
 0x1d2   :  { %5693 = vmatpush1.bf16.msra.mxu0 %v5692_v26  ;;  %5864 = vmatprep.subr.bf16.mxu1 %v9197_v29  ;;  %v9743_v26 = vld [vmem:[#allocation43_spill] sm:$0xff] }
 0x1d3   :  { %5695 = vmatprep.subr.bf16.mxu0 %v5694_v17  ;;  %v9747_v17 = vld [vmem:[#allocation64_spill] sm:$0xff] }
 0x1d5   :  { %5866 = vmatpush3.bf16.msra.mxu1 %v5865_v59 }
 0x1d6   :  { %5697 = vmatpush1.bf16.msra.mxu0 %v5696_v40  ;;  %5867 = vmatprep.subr.bf16.mxu1 %v9197_v29 }
 0x1d7   :  { %5699 = vmatprep.subr.bf16.mxu0 %v5698_v48 }
 0x1d9   :  { %5869 = vmatpush3.bf16.msra.mxu1 %v5868_v16 }
 0x1da   :  { %5701 = vmatpush1.bf16.msra.mxu0 %v5700_v19  ;;  %5870 = vmatprep.subr.bf16.mxu1 %v9197_v29 }
 0x1db   :  { %5703 = vmatprep.subr.bf16.mxu0 %v9706_v36 }
 0x1dc   :  { %5163 = vmatmul.mubr.f32.vlgmr.msra.gmra.mrb[2].mxu1 %v9707_v49 }
 0x1dd   :  { %3221 = vmatmul.mubr.f32.vlgmr.msra.gmra.mrb[2].mxu0 %v9707_v49  ;;  %5872 = vmatpush3.bf16.msra.mxu1 %v9709_v57 }
 0x1de   :  { %5705 = vmatpush1.bf16.msra.mxu0 %v9708_v11  ;;  %5873 = vmatprep.subr.bf16.mxu1 %v9197_v29 }
 0x1df   :  { %5707 = vmatprep.subr.bf16.mxu0 %v9710_v15  ;;  %3323 = vmatprep.mubr.f32.mxu0 %v9696_v33 }
 0x1e0   :  { %5197 = vmatprep.mubr.msk.f32.mxu1 %vm6089_vm0, %v9696_v33 }
 0x1e1   :  { %5875 = vmatpush3.bf16.msra.mxu1 %v9712_v13 }
 0x1e2   :  { %5709 = vmatpush1.bf16.msra.mxu0 %v9711_v30  ;;  %5876 = vmatprep.subr.bf16.mxu1 %v9197_v29 }
 0x1e3   :  { %5711 = vmatprep.subr.bf16.mxu0 %v9713_v41 }
 0x1e5   :  { %5878 = vmatpush3.bf16.msra.mxu1 %v9715_v3 }
 0x1e6   :  { %5713 = vmatpush1.bf16.msra.mxu0 %v9714_v39  ;;  %5879 = vmatprep.subr.bf16.mxu1 %v9197_v29 }
 0x1e7   :  { %5715 = vmatprep.subr.bf16.mxu0 %v9716_v44 }
 0x1e9   :  { %5881 = vmatpush3.bf16.msra.mxu1 %v9718_v5 }
 0x1ea   :  { %5717 = vmatpush1.bf16.msra.mxu0 %v9717_v28  ;;  %5882 = vmatprep.subr.bf16.mxu1 %v9197_v29 }
 0x1eb   :  { %5719 = vmatprep.subr.bf16.mxu0 %v9719_v62 }
 0x1ed   :  { %5884 = vmatpush3.bf16.msra.mxu1 %v9721_v7 }
 0x1ee   :  { %5721 = vmatpush1.bf16.msra.mxu0 %v9720_v58  ;;  %5885 = vmatprep.subr.bf16.mxu1 %v9197_v29 }
 0x1ef   :  { %5723 = vmatprep.subr.bf16.mxu0 %v9722_v54 }
 0x1f1   :  { %5887 = vmatpush3.bf16.msra.mxu1 %v9724_v2 }
 0x1f2   :  { %5725 = vmatpush1.bf16.msra.mxu0 %v9723_v55  ;;  %5888 = vmatprep.subr.bf16.mxu1 %v9197_v29 }
 0x1f3   :  { %5727 = vmatprep.subr.bf16.mxu0 %v9725_v27 }
 0x1f5   :  { %5890 = vmatpush3.bf16.msra.mxu1 %v9727_v51 }
 0x1f6   :  { %5729 = vmatpush1.bf16.msra.mxu0 %v9726_v46  ;;  %5891 = vmatprep.subr.bf16.mxu1 %v9197_v29 }
 0x1f7   :  { %5731 = vmatprep.subr.bf16.mxu0 %v9728_v45 }
 0x1f9   :  { %5893 = vmatpush3.bf16.msra.mxu1 %v9732_v1 }
 0x1fa   :  { %5733 = vmatpush1.bf16.msra.mxu0 %v9731_v50  ;;  %5894 = vmatprep.subr.bf16.mxu1 %v9197_v29 }
 0x1fb   :  { %5735 = vmatprep.subr.bf16.mxu0 %v5734_v37 }
 0x1fc   :  { %5198 = vmatmul.mubr.f32.vlgmr.msra.gmra.mrb[2].mxu1 %v9733_v6 }
 0x1fd   :  { %3327 = vmatmul.mubr.f32.vlgmr.msra.gmra.mrb[2].mxu0 %v9733_v6  ;;  %5896 = vmatpush3.bf16.msra.mxu1 %v9735_v25 }
 0x1fe   :  { %5737 = vmatpush1.bf16.msra.mxu0 %v9734_v8  ;;  %5897 = vmatprep.subr.bf16.mxu1 %v9197_v29 }
 0x1ff   :  { %5739 = vmatprep.subr.bf16.mxu0 %v9736_v52  ;;  %3493 = vmatprep.mubr.f32.mxu0 %v9696_v33 }
 0x200   :  { %5232 = vmatprep.mubr.msk.f32.mxu1 %vm6089_vm0, %v9696_v33 }
 0x201   :  { %5899 = vmatpush3.bf16.msra.mxu1 %v9738_v18 }
 0x202   :  { %5741 = vmatpush1.bf16.msra.mxu0 %v9737_v42  ;;  %5900 = vmatprep.subr.bf16.mxu1 %v9197_v29 }
 0x203   :  { %5743 = vmatprep.subr.bf16.mxu0 %v9739_v24 }
 0x205   :  { %5902 = vmatpush3.bf16.msra.mxu1 %v9741_v0 }
 0x206   :  { %5745 = vmatpush1.bf16.msra.mxu0 %v9740_v9  ;;  %5903 = vmatprep.subr.bf16.mxu1 %v9197_v29 }
 0x207   :  { %5747 = vmatprep.subr.bf16.mxu0 %v9742_v61 }
 0x209   :  { %5905 = vmatpush3.bf16.msra.mxu1 %v9744_v60 }
 0x20a   :  { %5749 = vmatpush1.bf16.msra.mxu0 %v9743_v26  ;;  %5906 = vmatprep.subr.bf16.mxu1 %v9197_v29 }
 0x20b   :  { %5751 = vmatprep.subr.bf16.mxu0 %v9745_v34 }
 0x20d   :  { %5908 = vmatpush3.bf16.msra.mxu1 %v9747_v17 }
 0x20e   :  { %5753 = vmatpush1.bf16.msra.mxu0 %v9746_v56  ;;  %5909 = vmatprep.subr.bf16.mxu1 %v9197_v29 }
 0x20f   :  { %5755 = vmatprep.subr.bf16.mxu0 %v9748_v22 }
 0x211   :  { %5911 = vmatpush3.bf16.msra.mxu1 %v8692_v43 }
 0x212   :  { %5757 = vmatpush1.bf16.msra.mxu0 %v9749_v31  ;;  %5912 = vmatprep.subr.bf16.mxu1 %v9197_v29 }
 0x213   :  { %5759 = vmatprep.subr.bf16.mxu0 %v8697_v20 }
 0x215   :  { %5914 = vmatpush3.bf16.msra.mxu1 %v8701_v53 }
 0x216   :  { %5761 = vmatpush1.bf16.msra.mxu0 %v8699_v4  ;;  %5915 = vmatprep.subr.bf16.mxu1 %v9197_v29 }
 0x217   :  { %5763 = vmatprep.subr.bf16.mxu0 %v8703_v35 }
 0x219   :  { %5917 = vmatpush3.bf16.msra.mxu1 %v8707_v63 }
 0x21a   :  { %5765 = vmatpush1.bf16.msra.mxu0 %v8705_v10  ;;  %5918 = vmatprep.subr.bf16.mxu1 %v9197_v29 }
 0x21b   :  { %5767 = vmatprep.subr.bf16.mxu0 %v9706_v36 }
 0x21c   :  { %5233 = vmatmul.mubr.f32.vlgmr.msra.gmra.mrb[2].mxu1 %v9691_v38 }
 0x21d   :  { %3495 = vmatmul.mubr.f32.vlgmr.msra.gmra.mrb[2].mxu0 %v9691_v38  ;;  %5920 = vmatpush3.bf16.msra.mxu1 %v9709_v57 }
 0x21e   :  { %5769 = vmatpush1.bf16.msra.mxu0 %v9708_v11  ;;  %5921 = vmatprep.subr.bf16.mxu1 %v9197_v29 }
 0x21f   :  { %5771 = vmatprep.subr.bf16.mxu0 %v9710_v15  ;;  %3597 = vmatprep.mubr.f32.mxu0 %v9696_v33 }
 0x220   :  { %5267 = vmatprep.mubr.msk.f32.mxu1 %vm6089_vm0, %v9696_v33  ;;  %vm4285_vm0 = vcmask 7168  }
 0x221   :  { %5923 = vmatpush3.bf16.msra.mxu1 %v9712_v13 }
 0x222   :  { %5773 = vmatpush1.bf16.msra.mxu0 %v9711_v30  ;;  %5924 = vmatprep.subr.bf16.mxu1 %v9197_v29 }
 0x223   :  { %5775 = vmatprep.subr.bf16.mxu0 %v9713_v41 }
 0x225   :  { %5926 = vmatpush3.bf16.msra.mxu1 %v9715_v3 }
 0x226   :  { %5777 = vmatpush1.bf16.msra.mxu0 %v9714_v39  ;;  %5927 = vmatprep.subr.bf16.mxu1 %v9197_v29 }
 0x227   :  { %5779 = vmatprep.subr.bf16.mxu0 %v9716_v44 }
 0x229   :  { %5929 = vmatpush3.bf16.msra.mxu1 %v9718_v5  ;;  %v4274_v5 = vstv %s8905_s0 }
 0x22a   :  { %5781 = vmatpush1.bf16.msra.mxu0 %v9717_v28  ;;  %5930 = vmatprep.subr.bf16.mxu1 %v9197_v29 }
 0x22b   :  { %5783 = vmatprep.subr.bf16.mxu0 %v9719_v62 }
 0x22d   :  { %5932 = vmatpush3.bf16.msra.mxu1 %v9721_v7 }
 0x22e   :  { %5785 = vmatpush1.bf16.msra.mxu0 %v9720_v58  ;;  %5933 = vmatprep.subr.bf16.mxu1 %v9197_v29  ;;  %v4277_v58 = vstv %s8906_s1 }
 0x22f   :  { %5787 = vmatprep.subr.bf16.mxu0 %v9722_v54 }
 0x231   :  { %5935 = vmatpush3.bf16.msra.mxu1 %v9724_v2 }
 0x232   :  { %5789 = vmatpush1.bf16.msra.mxu0 %v9723_v55  ;;  %5936 = vmatprep.subr.bf16.mxu1 %v9197_v29 }
 0x233   :  { %5791 = vmatprep.subr.bf16.mxu0 %v9725_v27 }
 0x235   :  { %5938 = vmatpush3.bf16.msra.mxu1 %v9727_v51 }
 0x236   :  { %5793 = vmatpush1.bf16.msra.mxu0 %v9726_v46  ;;  %5939 = vmatprep.subr.bf16.mxu1 %v9197_v29 }
 0x237   :  { %5795 = vmatprep.subr.bf16.mxu0 %v9728_v45 }
 0x239   :  { %5941 = vmatpush3.bf16.msra.mxu1 %v9732_v1 }
 0x23a   :  { %5797 = vmatpush1.bf16.msra.mxu0 %v9731_v50 }
 0x23c   :  { %5268 = vmatmul.mubr.f32.vlgmr.msra.gmra.mrb[2].mxu1 %v9691_v38 }
 0x23d   :  { %3599 = vmatmul.mubr.f32.vlgmr.msra.gmra.mrb[2].mxu0 %v9691_v38 }
 0x248   :  { %v2055_v63 = vpop.f32.mrb[0].mxu0  ;;  %v2697_v10 = vpop.f32.mrb[0].mxu1 }
 0x249   :  { %v4253_v53 = vmul.f32 %v2055_v63, %v2055_v63  ;;  %v2057_v43 = vpop.f32.mrb[1].mxu0  ;;  %v5059_v20 = vpop.f32.mrb[1].mxu1  ;;  %v4255_v35 = vmul.f32 %v2697_v10, %v2697_v10 }
 0x24a   :  { %v4254_v4 = vmul.f32 %v2057_v43, %v2057_v43 }
 0x24c   :  { %v4256_v33 = vadd.f32 %v4254_v4, %v4253_v53 }
 0x24e   :  { %v4257_v40 = vadd.f32 %v4256_v33, %v4255_v35 }
 0x250   :  { %4258 = vadd.xlane.f32.xlu0 %v4257_v40 }
 0x2dd   :  { %v4259_v15 = vpop.xlane.xlu0 %4258 }
 0x2de   :  { %v4267_v30 = vmax.f32 %v4259_v15, 1e-16 }
 0x2e0   :  { %5993 = vrsqrt.f32 %v4267_v30 }
 0x2ea   :  { %v5994_v3 = vpop.eup %5993 }
 0x30f   :  { %v4242_v29 = vpop.f32.mrb[2].mxu1 }
 0x310   :  { %v3600_v21 = vpop.f32.mrb[2].mxu0  ;;  %v4248_v32 = vmul.f32 %v4242_v29, %v2697_v10  ;;  %v5269_v48 = vpop.f32.mrb[3].mxu1  ;;  %v4262_v38 = vmul.f32 %v4242_v29, %v4242_v29 }
 0x311   :  { %v4246_v23 = vmul.f32 %v3600_v21, %v2055_v63  ;;  %v4260_v59 = vmul.f32 %v3600_v21, %v3600_v21  ;;  %v3602_v12 = vpop.f32.mrb[3].mxu0 }
 0x312   :  { %v4247_v19 = vmul.f32 %v3602_v12, %v2057_v43  ;;  %v4261_v16 = vmul.f32 %v3602_v12, %v3602_v12 }
 0x314   :  { %v4263_v36 = vadd.f32 %v4261_v16, %v4260_v59  ;;  %v4249_v49 = vadd.f32 %v4247_v19, %v4246_v23 }
 0x316   :  { %v4264_v11 = vadd.f32 %v4263_v36, %v4262_v38  ;;  %v4250_v57 = vadd.f32 %v4249_v49, %v4248_v32 }
 0x318   :  { %4265 = vadd.xlane.f32.xlu0 %v4264_v11  ;;  %4251 = vadd.xlane.f32.xlu1 %v4250_v57 }
 0x3a5   :  { %v4266_v13 = vpop.xlane.xlu0 %4265  ;;  %v4252_v39 = vpop.xlane.xlu1 %4251 }
 0x3a6   :  { %v4270_v41 = vmax.f32 %v4266_v13, 1e-16  ;;  %v4269_v44 = vmul.f32 %v5994_v3, %v4252_v39 }
 0x3a8   :  { %5995 = vrsqrt.f32 %v4270_v41 }
 0x3b2   :  { %v5996_v28 = vpop.eup %5995 }
 0x3b3   :  { %v4272_v62 = vmul.f32 %v5996_v28, %v4269_v44 }
 0x3b5   :  { %v4275_v7 = vmul.f32 %v4274_v5, %v4272_v62 }
 0x3b7   :  { %v4278_v54 = vadd.f32 %v4277_v58, %v4275_v7 }
 0x3b9   :  { %v4645_v55 = vmul.f32 -1.442695, %v4278_v54 }
 0x3bb   :  { %5997 = vpow2.f32 %v4645_v55 }
 0x3c5   :  { %v5998_v2 = vpop.eup %5997 }
 0x3c6   :  { %v4282_v27 = vadd.f32 1.0, %v5998_v2 }
 0x3c8   :  { %5999 = vrcp.f32 %v4282_v27 }
 0x3d2   :  { %v6000_v46 = vpop.eup %5999 }
 0x3d3   :  { %4286 = vst.msk [vmem:[%s8911_s6] sm:$0xff] %vm4285_vm0, %v6000_v46 }
 0x3d4   :  { %4291 = vsyncpa [#allocation7], 1 }
 0x3d5   :  { %4292 = vsyncpa [#allocation13], 1 }
 0x3d6   :  { %4293 = vsyncpa [#allocation8], 1 }
 0x3d7   :  { %4294 = vsyncpa [#allocation10], 1 }

</bundles_post_ra>
